<compile_context>
chip_gen: v7x
topology: tpu7x:2x2x1
jax: 0.10.0
libtpu: 0.0.40
codegen_flags: <defaults>
</compile_context>

<pallas_src>
import jax
import jax.numpy as jnp
from jax.experimental import pallas as pl
from jax.experimental.pallas import tpu as pltpu

NC_PAD = 128                 # lane-dense padded class dimension
NEG_BIG = -1e30              # bias fill for padded logit columns (kills them in max / exp-sum)
ROW_TILE = 128               # adj row-panel height for the tiled fallback path
_FUSED_VMEM_BUDGET = 20 << 20  # conservative resident-adj budget (safe on v7x's smaller VMEM)


def _log_softmax_rows(logits):
    m = jnp.max(logits, axis=1, keepdims=True)
    z = logits - m
    lse = jnp.log(jnp.sum(jnp.exp(z), axis=1, keepdims=True))
    return z - lse


# ----------------------------- fused kernel (primary) -----------------------------

def _fused_gcn_kernel(adj_ref, x_ref, w1_ref, b1_ref, w2_ref, b2_ref, out_ref):
    """Both GCN layers with adj resident in VMEM (adj read from HBM exactly once)."""
    bf = adj_ref.dtype
    adj = adj_ref[...]
    s1 = jnp.dot(x_ref[...], w1_ref[...], preferred_element_type=jnp.float32)
    h1 = jnp.maximum(
        jnp.dot(adj, s1.astype(bf), preferred_element_type=jnp.float32) + b1_ref[...],
        0.0)
    # TODO(synk): training-mode dropout would need pltpu.prng_seed + prng_random_bits;
    # eval mode (self.training=False) makes F.dropout the identity.
    s2 = jnp.dot(h1.astype(bf), w2_ref[...], preferred_element_type=jnp.float32)
    logits = jnp.dot(adj, s2.astype(bf), preferred_element_type=jnp.float32) + b2_ref[...]
    out_ref[...] = _log_softmax_rows(logits).astype(out_ref.dtype)


def _forward_fused(adj_p, x_p, w1_b, b1_f, w2_p, b2_p):
    n_pad, nfeat = x_p.shape
    nhid = w1_b.shape[1]
    return pl.pallas_call(
        _fused_gcn_kernel,
        out_shape=jax.ShapeDtypeStruct((n_pad, NC_PAD), jnp.float32),
        grid_spec=pltpu.PrefetchScalarGridSpec(
            num_scalar_prefetch=0,
            grid=(1,),
            in_specs=[
                pl.BlockSpec((n_pad, n_pad), lambda i: (0, 0)),    # adj (resident)
                pl.BlockSpec((n_pad, nfeat), lambda i: (0, 0)),    # features
                pl.BlockSpec((nfeat, nhid), lambda i: (0, 0)),     # W1
                pl.BlockSpec((1, nhid), lambda i: (0, 0)),         # b1
                pl.BlockSpec((nhid, NC_PAD), lambda i: (0, 0)),    # W2 (class-padded)
                pl.BlockSpec((1, NC_PAD), lambda i: (0, 0)),       # b2 (class-padded)
            ],
            out_specs=pl.BlockSpec((n_pad, NC_PAD), lambda i: (0, 0)),
        ),
        compiler_params=pltpu.CompilerParams(
            dimension_semantics=("arbitrary",),
            vmem_limit_bytes=32 << 20,
        ),
    )(adj_p, x_p, w1_b, b1_f, w2_p, b2_p)


# ----------------------------- tiled fallback path -----------------------------

def _panel_relu_kernel(adj_ref, s_ref, b_ref, out_ref):
    """H1[i] = relu(A[i, :] @ S1 + b1) for one full-width row panel of adj."""
    acc = jnp.dot(adj_ref[...], s_ref[...], preferred_element_type=jnp.float32)
    out_ref[...] = jnp.maximum(acc + b_ref[...], 0.0).astype(out_ref.dtype)


def _panel_logsoftmax_kernel(adj_ref, s_ref, b_ref, out_ref):
    """out[i] = log_softmax(A[i, :] @ S2 + b2) for one full-width row panel of adj."""
    logits = (jnp.dot(adj_ref[...], s_ref[...], preferred_element_type=jnp.float32)
              + b_ref[...])
    out_ref[...] = _log_softmax_rows(logits).astype(out_ref.dtype)


def _spmm_epilogue_call(kernel, adj_p, s, b, out_dtype, row_tile):
    n_pad = adj_p.shape[0]
    d = s.shape[1]
    return pl.pallas_call(
        kernel,
        out_shape=jax.ShapeDtypeStruct((n_pad, d), out_dtype),
        grid_spec=pltpu.PrefetchScalarGridSpec(
            num_scalar_prefetch=0,
            grid=(n_pad // row_tile,),
            in_specs=[
                pl.BlockSpec((row_tile, n_pad), lambda i: (i, 0)),   # adj row panel
                pl.BlockSpec((n_pad, d), lambda i: (0, 0)),          # dense transform S
                pl.BlockSpec((1, d), lambda i: (0, 0)),              # bias
            ],
            out_specs=pl.BlockSpec((row_tile, d), lambda i: (i, 0)),
        ),
        compiler_params=pltpu.CompilerParams(
            dimension_semantics=("parallel",),
            vmem_limit_bytes=32 << 20,
        ),
    )(adj_p, s, b)


def _forward_tiled(adj_p, x_p, w1_b, b1_f, w2_p, b2_p, row_tile):
    bf = adj_p.dtype
    # Hoisted dense transforms (tiny matmuls; computed once, not per row block).
    s1 = jnp.dot(x_p, w1_b, preferred_element_type=jnp.float32).astype(bf)
    h1 = _spmm_epilogue_call(_panel_relu_kernel, adj_p, s1, b1_f, bf, row_tile)
    s2 = jnp.dot(h1, w2_p, preferred_element_type=jnp.float32).astype(bf)
    return _spmm_epilogue_call(_panel_logsoftmax_kernel, adj_p, s2, b2_p,
                               jnp.float32, row_tile)


# ----------------------------- wrapper -----------------------------

def preprocess_graph(features, adj, dtype=jnp.bfloat16):
    """Pad node dim to a multiple of 128 and cast to the compute dtype.

    Do this ONCE per graph (not per forward) so the padded-adj materialization
    amortizes.  Padded adj rows/cols are exactly zero, so padded nodes never
    contaminate real rows (H1's padded rows are relu(b1) but are multiplied by
    zero adj columns).
    """
    n = features.shape[0]
    n_pad = pl.cdiv(n, 128) * 128
    adj_p = jnp.pad(adj.astype(dtype), ((0, n_pad - n), (0, n_pad - n)))
    x_p = jnp.pad(features.astype(dtype), ((0, n_pad - n), (0, 0)))
    return adj_p, x_p, n


def _prep_params(w1, b1, w2, b2, dtype=jnp.bfloat16):
    nhid = w1.shape[1]
    nclass = w2.shape[1]
    w1_b = w1.astype(dtype)
    b1_f = b1.astype(jnp.float32).reshape(1, nhid)
    w2_p = jnp.zeros((nhid, NC_PAD), dtype=dtype).at[:, :nclass].set(w2.astype(dtype))
    b2_p = jnp.full((1, NC_PAD), NEG_BIG, dtype=jnp.float32).at[0, :nclass].set(
        b2.astype(jnp.float32).reshape(-1))
    return w1_b, b1_f, w2_p, b2_p


def gcn_forward(features, adj, w1, b1, w2, b2, *, fused=None, row_tile=ROW_TILE):
    """log_softmax( adj @ relu(adj @ (features @ W1) + b1) @ W2 + b2 , axis=1)."""
    adj_p, x_p, n = preprocess_graph(features, adj)
    w1_b, b1_f, w2_p, b2_p = _prep_params(w1, b1, w2, b2)
    n_pad, nfeat = x_p.shape
    nhid = w1.shape[1]
    nclass = w2.shape[1]

    if fused is None:
        need = (2 * n_pad * n_pad                      # adj bf16 (resident)
                + 2 * n_pad * nfeat                    # features bf16
                + 4 * n_pad * (2 * NC_PAD + nhid)      # s2 / logits / h1 in f32
                + 4 * n_pad * NC_PAD)                  # output f32
        fused = need < _FUSED_VMEM_BUDGET

    if fused:
        out_p = _forward_fused(adj_p, x_p, w1_b, b1_f, w2_p, b2_p)
    else:
        out_p = _forward_tiled(adj_p, x_p, w1_b, b1_f, w2_p, b2_p, row_tile)
    return out_p[:n, :nclass]


def reference_forward(features, adj, w1, b1, w2, b2):
    """Pure-JAX reference using the same bf16 operand / f32 accumulation path."""
    bf = jnp.bfloat16
    a = adj.astype(bf)
    s1 = jnp.dot(features.astype(bf), w1.astype(bf),
                 preferred_element_type=jnp.float32)
    h1 = jnp.maximum(jnp.dot(a, s1.astype(bf), preferred_element_type=jnp.float32)
                     + b1.astype(jnp.float32), 0.0)
    s2 = jnp.dot(h1.astype(bf), w2.astype(bf), preferred_element_type=jnp.float32)
    h2 = (jnp.dot(a, s2.astype(bf), preferred_element_type=jnp.float32)
          + b2.astype(jnp.float32))
    return jax.nn.log_softmax(h2, axis=1)


if __name__ == "__main__":
    # Deterministic problem (non-multiple of 128 to exercise padding + slicing):
    # N=600 nodes, nfeat=64, nhid=32, nclass=8.
    N, NFEAT, NHID, NCLASS = 600, 64, 32, 8
    key = jax.random.PRNGKey(0)
    k_feat, k_adj, k_w1, k_b1, k_w2, k_b2 = jax.random.split(key, 6)

    features = jax.random.normal(k_feat, (N, NFEAT), dtype=jnp.float32)

    # Symmetric, row-normalized adjacency with self-loops (typical GCN preprocessing).
    a = (jax.random.uniform(k_adj, (N, N)) > 0.5).astype(jnp.float32)
    a = jnp.maximum(a, a.T) + jnp.eye(N, dtype=jnp.float32)
    adj = a / jnp.sum(a, axis=1, keepdims=True)

    w1 = jax.random.normal(k_w1, (NFEAT, NHID), dtype=jnp.float32) * (1.0 / jnp.sqrt(NFEAT))
    b1 = jax.random.normal(k_b1, (1, NHID), dtype=jnp.float32) * 0.1
    w2 = jax.random.normal(k_w2, (NHID, NCLASS), dtype=jnp.float32) * (1.0 / jnp.sqrt(NHID))
    b2 = jax.random.normal(k_b2, (1, NCLASS), dtype=jnp.float32) * 0.1

    ref = reference_forward(features, adj, w1, b1, w2, b2)

    # Primary fused path (adj read once, H1 stays in VMEM).
    out_fused = jax.block_until_ready(gcn_forward(features, adj, w1, b1, w2, b2, fused=True))
    assert out_fused.shape == (N, NCLASS)
    assert jnp.allclose(out_fused, ref, atol=2e-3, rtol=2e-3), "fused path mismatch vs reference"

    # Tiled fallback path (validated here too so the large-N branch is exercised).
    out_tiled = jax.block_until_ready(gcn_forward(features, adj, w1, b1, w2, b2, fused=False))
    assert out_tiled.shape == (N, NCLASS)
    assert jnp.allclose(out_tiled, ref, atol=2e-3, rtol=2e-3), "tiled path mismatch vs reference"

    print("KERNEL_OK")
</pallas_src>

<mosaic_0001>
module attributes {stable_mosaic.version = 11 : i64} {
  func.func @_fused_gcn_kernel(%arg0: i32, %arg1: memref<640x640xbf16, #tpu.memory_space<vmem>>, %arg2: memref<640x64xbf16, #tpu.memory_space<vmem>>, %arg3: memref<64x32xbf16, #tpu.memory_space<vmem>>, %arg4: memref<1x32xf32, #tpu.memory_space<vmem>>, %arg5: memref<32x128xbf16, #tpu.memory_space<vmem>>, %arg6: memref<1x128xf32, #tpu.memory_space<vmem>>, %arg7: memref<640x128xf32, #tpu.memory_space<vmem>>) attributes {dimension_semantics = [#tpu.dimension_semantics<arbitrary>], iteration_bounds = array<i64: 1>, scalar_prefetch = 0 : i64, scratch_operands = 0 : i64, tpu.core_type = #tpu.core_type<tc>, window_params = [{pipeline_mode = #tpu.pipeline_mode<synchronous>, transform_indices = @transform_0, window_bounds = array<i64: 640, 640>}, {pipeline_mode = #tpu.pipeline_mode<synchronous>, transform_indices = @transform_1, window_bounds = array<i64: 640, 64>}, {pipeline_mode = #tpu.pipeline_mode<synchronous>, transform_indices = @transform_2, window_bounds = array<i64: 64, 32>}, {pipeline_mode = #tpu.pipeline_mode<synchronous>, transform_indices = @transform_3, window_bounds = array<i64: 1, 32>}, {pipeline_mode = #tpu.pipeline_mode<synchronous>, transform_indices = @transform_4, window_bounds = array<i64: 32, 128>}, {pipeline_mode = #tpu.pipeline_mode<synchronous>, transform_indices = @transform_5, window_bounds = array<i64: 1, 128>}, {pipeline_mode = #tpu.pipeline_mode<synchronous>, transform_indices = @transform_6, window_bounds = array<i64: 640, 128>}]} {
    %c0 = arith.constant 0 : index
    %c0_0 = arith.constant 0 : index
    %0 = vector.load %arg1[%c0, %c0_0] : memref<640x640xbf16, #tpu.memory_space<vmem>>, vector<640x640xbf16>
    %c0_1 = arith.constant 0 : index
    %c0_2 = arith.constant 0 : index
    %1 = vector.load %arg2[%c0_1, %c0_2] : memref<640x64xbf16, #tpu.memory_space<vmem>>, vector<640x64xbf16>
    %c0_3 = arith.constant 0 : index
    %c0_4 = arith.constant 0 : index
    %2 = vector.load %arg3[%c0_3, %c0_4] : memref<64x32xbf16, #tpu.memory_space<vmem>>, vector<64x32xbf16>
    %cst = arith.constant dense<0.000000e+00> : vector<640x32xf32>
    %3 = tpu.matmul %1, %2, %cst {dimension_numbers = #tpu.dot_dimension_numbers<[1], [0], [0], [1], [0, 0, 1, 1], [], []>} : vector<640x64xbf16>, vector<64x32xbf16>, vector<640x32xf32> -> vector<640x32xf32>
    %4 = arith.truncf %3 : vector<640x32xf32> to vector<640x32xbf16>
    %cst_5 = arith.constant dense<0.000000e+00> : vector<640x32xf32>
    %5 = tpu.matmul %0, %4, %cst_5 {dimension_numbers = #tpu.dot_dimension_numbers<[1], [0], [0], [1], [0, 0, 1, 1], [], []>} : vector<640x640xbf16>, vector<640x32xbf16>, vector<640x32xf32> -> vector<640x32xf32>
    %c0_6 = arith.constant 0 : index
    %c0_7 = arith.constant 0 : index
    %6 = vector.load %arg4[%c0_6, %c0_7] : memref<1x32xf32, #tpu.memory_space<vmem>>, vector<1x32xf32>
    %7 = vector.broadcast %6 : vector<1x32xf32> to vector<640x32xf32>
    %8 = arith.addf %5, %7 : vector<640x32xf32>
    %cst_8 = arith.constant 0.000000e+00 : f32
    %9 = vector.broadcast %cst_8 : f32 to vector<640x32xf32>
    %10 = arith.maximumf %8, %9 : vector<640x32xf32>
    %11 = arith.truncf %10 : vector<640x32xf32> to vector<640x32xbf16>
    %c0_9 = arith.constant 0 : index
    %c0_10 = arith.constant 0 : index
    %12 = vector.load %arg5[%c0_9, %c0_10] : memref<32x128xbf16, #tpu.memory_space<vmem>>, vector<32x128xbf16>
    %cst_11 = arith.constant dense<0.000000e+00> : vector<640x128xf32>
    %13 = tpu.matmul %11, %12, %cst_11 {dimension_numbers = #tpu.dot_dimension_numbers<[1], [0], [0], [1], [0, 0, 1, 1], [], []>} : vector<640x32xbf16>, vector<32x128xbf16>, vector<640x128xf32> -> vector<640x128xf32>
    %14 = arith.truncf %13 : vector<640x128xf32> to vector<640x128xbf16>
    %cst_12 = arith.constant dense<0.000000e+00> : vector<640x128xf32>
    %15 = tpu.matmul %0, %14, %cst_12 {dimension_numbers = #tpu.dot_dimension_numbers<[1], [0], [0], [1], [0, 0, 1, 1], [], []>} : vector<640x640xbf16>, vector<640x128xbf16>, vector<640x128xf32> -> vector<640x128xf32>
    %c0_13 = arith.constant 0 : index
    %c0_14 = arith.constant 0 : index
    %16 = vector.load %arg6[%c0_13, %c0_14] : memref<1x128xf32, #tpu.memory_space<vmem>>, vector<1x128xf32>
    %17 = vector.broadcast %16 : vector<1x128xf32> to vector<640x128xf32>
    %18 = arith.addf %15, %17 : vector<640x128xf32>
    %cst_15 = arith.constant dense<0xFF800000> : vector<640xf32>
    %19 = vector.multi_reduction <maximumf>, %18, %cst_15 [1] : vector<640x128xf32> to vector<640xf32>
    %20 = vector.shape_cast %19 : vector<640xf32> to vector<640x1xf32>
    %21 = vector.broadcast %20 : vector<640x1xf32> to vector<640x128xf32>
    %22 = arith.subf %18, %21 : vector<640x128xf32>
    %23 = math.exp %22 : vector<640x128xf32>
    %cst_16 = arith.constant dense<0.000000e+00> : vector<640xf32>
    %24 = vector.multi_reduction <add>, %23, %cst_16 [1] : vector<640x128xf32> to vector<640xf32>
    %25 = vector.shape_cast %24 : vector<640xf32> to vector<640x1xf32>
    %26 = math.log %25 : vector<640x1xf32>
    %27 = vector.broadcast %26 : vector<640x1xf32> to vector<640x128xf32>
    %28 = arith.subf %22, %27 : vector<640x128xf32>
    %c0_17 = arith.constant 0 : index
    %c0_18 = arith.constant 0 : index
    %29 = vector.load %arg7[%c0_17, %c0_18] : memref<640x128xf32, #tpu.memory_space<vmem>>, vector<640x128xf32>
    tpu.vector_store %arg7[%c0_17, %c0_18], %28 {strides = array<i32>} : memref<640x128xf32, #tpu.memory_space<vmem>>, vector<640x128xf32>,
    return
  }
  func.func @transform_0(%arg0: i32) -> (i32, i32) {
    %c0_i32 = arith.constant 0 : i32
    %c0_i32_0 = arith.constant 0 : i32
    %c0_i32_1 = arith.constant 0 : i32
    return %c0_i32, %c0_i32_0 : i32, i32
  }
  func.func @transform_1(%arg0: i32) -> (i32, i32) {
    %c0_i32 = arith.constant 0 : i32
    %c0_i32_0 = arith.constant 0 : i32
    %c0_i32_1 = arith.constant 0 : i32
    return %c0_i32, %c0_i32_0 : i32, i32
  }
  func.func @transform_2(%arg0: i32) -> (i32, i32) {
    %c0_i32 = arith.constant 0 : i32
    %c0_i32_0 = arith.constant 0 : i32
    %c0_i32_1 = arith.constant 0 : i32
    return %c0_i32, %c0_i32_0 : i32, i32
  }
  func.func @transform_3(%arg0: i32) -> (i32, i32) {
    %c0_i32 = arith.constant 0 : i32
    %c0_i32_0 = arith.constant 0 : i32
    %c0_i32_1 = arith.constant 0 : i32
    return %c0_i32, %c0_i32_0 : i32, i32
  }
  func.func @transform_4(%arg0: i32) -> (i32, i32) {
    %c0_i32 = arith.constant 0 : i32
    %c0_i32_0 = arith.constant 0 : i32
    %c0_i32_1 = arith.constant 0 : i32
    return %c0_i32, %c0_i32_0 : i32, i32
  }
  func.func @transform_5(%arg0: i32) -> (i32, i32) {
    %c0_i32 = arith.constant 0 : i32
    %c0_i32_0 = arith.constant 0 : i32
    %c0_i32_1 = arith.constant 0 : i32
    return %c0_i32, %c0_i32_0 : i32, i32
  }
  func.func @transform_6(%arg0: i32) -> (i32, i32) {
    %c0_i32 = arith.constant 0 : i32
    %c0_i32_0 = arith.constant 0 : i32
    %c0_i32_1 = arith.constant 0 : i32
    return %c0_i32, %c0_i32_0 : i32, i32
  }
}

</mosaic_0001>

<bundles_post_ra>
// kernel: tpu_custom_call.1
= control target key start
LH: loop header
LB: loop body
LE: loop exit
PB: predicated region body
PF: predicated region fallthrough
CT: control target
= control target key end

     0   :  { %11 = vsyncpa [#allocation3], 0  ;;  %s9729_s0 = inlined_call_operand.hbm [shape: bf16[640,640], index: 0, kind: input, shape index: {}]   ;;  %s9730_s1 = inlined_call_operand.vmem [shape: bf16[640,64], index: 1, kind: input, shape index: {}]   ;;  %s9731_s2 = inlined_call_operand.vmem [shape: bf16[64,32], index: 2, kind: input, shape index: {}]   ;;  %s9732_s3 = inlined_call_operand.vmem [shape: f32[1,32], index: 3, kind: input, shape index: {}]   ;;  %s9733_s4 = inlined_call_operand.vmem [shape: bf16[32,128], index: 4, kind: input, shape index: {}]   ;;  %s9734_s5 = inlined_call_operand.vmem [shape: f32[1,128], index: 5, kind: input, shape index: {}]   ;;  %s9735_s6 = inlined_call_operand.hbm [shape: f32[640,128], index: 6, kind: output, shape index: {}]  }
   0x1   :  { %12 = vsyncpa [#allocation4], 0  ;;  %s8081_s21 = smov [#allocation2]   ;;  %s8033_s25 = scalar_lea.hbm %s9729_s0, 25600 }
   0x2   :  { %s18_s22 = sshll.u32 %s8081_s21, 4  ;;  %p8034_p0 = scmp.ne.s32.totalorder %s9729_s0, %s8033_s25  ;;  %s19_s22 = int_to_ptr.vmem [resolvable:$true] %s18_s22 }
   0x3   :  { %p8037_p1 = scmp.lt.u32.totalorder %s8033_s25, %s9729_s0 }
   0x5   :  { %p8039_p2 = pnand %p8037_p1, %p8034_p0 }
   0x7   :  { %8042 = shalt.err (!%p8039_p2)
}
   0x8   :  { %s8043_s30 = scalar_lea.vmem %s19_s22, 25600  ;;  %p8048_p4 = scmp.lt.s32.totalorder %s19_s22, %s19_s22 }
   0x9   :  { %p8044_p3 = scmp.ne.s32.totalorder %s19_s22, %s8043_s30  ;;  %p8049_p5 = scmp.lt.s32.totalorder %s8043_s30, %s8043_s30 }
   0xb   :  { %p8050_p6 = por %p8049_p5, %p8048_p4 }
   0xd   :  { %p8051_p7 = pnand %p8050_p6, %p8044_p3 }
   0xf   :  { %8054 = shalt.err (!%p8051_p7)
}
  0x10   :  { %s8082_s7 = smov 320   ;;  %s8083_s8 = smov 20  }
  0x11   :  { %24 = dma.hbm_to_vmem [thread:$0]  %s9729_s0, 25600, %s19_s22, [#allocation3], %s8082_s7, %s8082_s7, %s8083_s8  }
  0x12   :  { %8077 = dma.done.wait [#allocation3], 25600  }
  0x13   :  { %8078 = vsyncadd [#allocation3], 4294941696  ;;  %v7185_v0 = vld [vmem:[%s9731_s2] sm:$0xff]   ;;  %v7186_v1 = vld [vmem:[%s9731_s2 + $0x8] sm:$0xff]   ;;  %vm591_vm0 = vcmask 523264   ;;  %v9736_v29 = vmov 0  }
  0x14   :  { %6334 = vmatprep.subr.bf16.mxu1 %v7185_v0  ;;  %v7187_v2 = vld [vmem:[%s9731_s2 + $0x10] sm:$0xff]   ;;  %v7189_v3 = vld [vmem:[%s9730_s1] sm:$0xff]   ;;  %v7188_v4 = vld [vmem:[%s9731_s2 + $0x18] sm:$0xff]   ;;  %vm3347_vm1 = vcmask 261120  }
  0x15   :  { %6335 = vmatpush3.bf16.msra.mxu1 %v7185_v0  ;;  %6342 = vmatprep.mubr.msk.bf16.mxu1 %vm591_vm0, %v7189_v3  ;;  %v7190_v5 = vld [vmem:[%s9730_s1 + $0x8] sm:$0xff]   ;;  %v7191_v6 = vld [vmem:[%s9730_s1 + $0x10] sm:$0xff]   ;;  %v7192_v7 = vld [vmem:[%s9730_s1 + $0x18] sm:$0xff]  }
  0x16   :  { %6336 = vmatprep.subr.bf16.mxu1 %v7186_v1  ;;  %v7193_v8 = vld [vmem:[%s9730_s1 + $0x20] sm:$0xff]   ;;  %v7194_v9 = vld [vmem:[%s9730_s1 + $0x28] sm:$0xff]   ;;  %v7195_v10 = vld [vmem:[%s9730_s1 + $0x30] sm:$0xff]  }
  0x17   :  { %v7196_v11 = vld [vmem:[%s9730_s1 + $0x38] sm:$0xff]   ;;  %v7197_v12 = vld [vmem:[%s9730_s1 + $0x40] sm:$0xff]   ;;  %v7198_v13 = vld [vmem:[%s9730_s1 + $0x48] sm:$0xff]  }
  0x18   :  { %v7199_v14 = vld [vmem:[%s9730_s1 + $0x50] sm:$0xff]   ;;  %v7200_v15 = vld [vmem:[%s9730_s1 + $0x58] sm:$0xff]   ;;  %v7201_v16 = vld [vmem:[%s9730_s1 + $0x60] sm:$0xff]  }
  0x19   :  { %6337 = vmatpush3.bf16.msra.mxu1 %v7186_v1  ;;  %v7202_v17 = vld [vmem:[%s9730_s1 + $0x68] sm:$0xff]   ;;  %v7203_v18 = vld [vmem:[%s9730_s1 + $0x70] sm:$0xff]   ;;  %v7204_v19 = vld [vmem:[%s9730_s1 + $0x78] sm:$0xff]  }
  0x1a   :  { %6338 = vmatprep.subr.bf16.mxu1 %v7187_v2  ;;  %v7205_v20 = vld [vmem:[%s9730_s1 + $0x80] sm:$0xff]   ;;  %v7206_v21 = vld [vmem:[%s9730_s1 + $0x88] sm:$0xff]   ;;  %v7207_v22 = vld [vmem:[%s9730_s1 + $0x90] sm:$0xff]  }
  0x1b   :  { %v7208_v23 = vld [vmem:[%s9730_s1 + $0x98] sm:$0xff]   ;;  %v7209_v24 = vld [vmem:[%s9730_s1 + $0xa0] sm:$0xff]   ;;  %v7210_v25 = vld [vmem:[%s9730_s1 + $0xa8] sm:$0xff]  }
  0x1c   :  { %v7211_v26 = vld [vmem:[%s9730_s1 + $0xb0] sm:$0xff]   ;;  %v7212_v27 = vld [vmem:[%s9730_s1 + $0xb8] sm:$0xff]   ;;  %v7213_v28 = vld [vmem:[%s9730_s1 + $0xc0] sm:$0xff]  }
  0x1d   :  { %6339 = vmatpush3.bf16.msra.mxu1 %v7187_v2  ;;  %v7214_v30 = vld [vmem:[%s9730_s1 + $0xc8] sm:$0xff]   ;;  %v7215_v31 = vld [vmem:[%s9730_s1 + $0xd0] sm:$0xff]   ;;  %v7216_v32 = vld [vmem:[%s9730_s1 + $0xd8] sm:$0xff]  }
  0x1e   :  { %6340 = vmatprep.subr.bf16.mxu1 %v7188_v4  ;;  %v7217_v33 = vld [vmem:[%s9730_s1 + $0xe0] sm:$0xff]   ;;  %v7218_v34 = vld [vmem:[%s9730_s1 + $0xe8] sm:$0xff]   ;;  %v7219_v35 = vld [vmem:[%s9730_s1 + $0xf0] sm:$0xff]  }
  0x1f   :  { %v7220_v36 = vld [vmem:[%s9730_s1 + $0xf8] sm:$0xff]   ;;  %v7221_v37 = vld [vmem:[%s9730_s1 + $0x100] sm:$0xff]   ;;  %v7222_v38 = vld [vmem:[%s9730_s1 + $0x108] sm:$0xff]  }
  0x20   :  { %v7223_v39 = vld [vmem:[%s9730_s1 + $0x110] sm:$0xff]   ;;  %v7224_v40 = vld [vmem:[%s9730_s1 + $0x118] sm:$0xff]   ;;  %v7225_v41 = vld [vmem:[%s9730_s1 + $0x120] sm:$0xff]  }
  0x21   :  { %6341 = vmatpush3.bf16.msra.mxu1 %v7188_v4  ;;  %v7226_v42 = vld [vmem:[%s9730_s1 + $0x128] sm:$0xff]   ;;  %v7227_v43 = vld [vmem:[%s9730_s1 + $0x130] sm:$0xff]   ;;  %v7228_v44 = vld [vmem:[%s9730_s1 + $0x138] sm:$0xff]  }
  0x22   :  { %2152 = vmatprep.subr.bf16.mxu1 %v9736_v29  ;;  %v7231_v45 = vld [vmem:[#allocation2 + $0x4] ss:$20 sps:$4 sm:$0xff]  }
  0x24   :  { %6343 = vmatmul.mubr.msk.bf16.vlgmr.msra.gmra.mrb[0].mxu1 %vm591_vm0, %v7190_v5 }
  0x25   :  { %6346 = vmatprep.mubr.msk.bf16.mxu1 %vm591_vm0, %v7191_v6 }
  0x2c   :  { %6347 = vmatmul.mubr.msk.bf16.gmra.mrb[4].mxu1 %vm591_vm0, %v7192_v7 }
  0x2d   :  { %6350 = vmatprep.mubr.msk.bf16.mxu1 %vm591_vm0, %v7193_v8 }
  0x34   :  { %6351 = vmatmul.mubr.msk.bf16.gmra.mrb[8].mxu1 %vm591_vm0, %v7194_v9 }
  0x35   :  { %6354 = vmatprep.mubr.msk.bf16.mxu1 %vm591_vm0, %v7195_v10 }
  0x3c   :  { %6355 = vmatmul.mubr.msk.bf16.gmra.mrb[12].mxu1 %vm591_vm0, %v7196_v11 }
  0x3d   :  { %6358 = vmatprep.mubr.msk.bf16.mxu1 %vm591_vm0, %v7197_v12 }
  0x44   :  { %6359 = vmatmul.mubr.msk.bf16.gmra.mrb[16].mxu1 %vm591_vm0, %v7198_v13 }
  0x45   :  { %6362 = vmatprep.mubr.msk.bf16.mxu1 %vm591_vm0, %v7199_v14 }
  0x4c   :  { %6363 = vmatmul.mubr.msk.bf16.gmra.mrb[20].mxu1 %vm591_vm0, %v7200_v15 }
  0x4d   :  { %6366 = vmatprep.mubr.msk.bf16.mxu1 %vm591_vm0, %v7201_v16 }
  0x54   :  { %6367 = vmatmul.mubr.msk.bf16.gmra.mrb[24].mxu1 %vm591_vm0, %v7202_v17 }
  0x55   :  { %6370 = vmatprep.mubr.msk.bf16.mxu1 %vm591_vm0, %v7203_v18 }
  0x5c   :  { %6371 = vmatmul.mubr.msk.bf16.gmra.mrb[28].mxu1 %vm591_vm0, %v7204_v19 }
  0x5d   :  { %6374 = vmatprep.mubr.msk.bf16.mxu1 %vm591_vm0, %v7205_v20 }
  0x64   :  { %6375 = vmatmul.mubr.msk.bf16.gmra.mrb[32].mxu1 %vm591_vm0, %v7206_v21 }
  0x65   :  { %6378 = vmatprep.mubr.msk.bf16.mxu1 %vm591_vm0, %v7207_v22 }
  0x6c   :  { %6379 = vmatmul.mubr.msk.bf16.gmra.mrb[36].mxu1 %vm591_vm0, %v7208_v23 }
  0x6d   :  { %6382 = vmatprep.mubr.msk.bf16.mxu1 %vm591_vm0, %v7209_v24 }
  0x74   :  { %6383 = vmatmul.mubr.msk.bf16.gmra.mrb[40].mxu1 %vm591_vm0, %v7210_v25 }
  0x75   :  { %6386 = vmatprep.mubr.msk.bf16.mxu1 %vm591_vm0, %v7211_v26 }
  0x7c   :  { %6387 = vmatmul.mubr.msk.bf16.gmra.mrb[44].mxu1 %vm591_vm0, %v7212_v27 }
  0x7d   :  { %6390 = vmatprep.mubr.msk.bf16.mxu1 %vm591_vm0, %v7213_v28 }
  0x84   :  { %6391 = vmatmul.mubr.msk.bf16.gmra.mrb[48].mxu1 %vm591_vm0, %v7214_v30 }
  0x85   :  { %6394 = vmatprep.mubr.msk.bf16.mxu1 %vm591_vm0, %v7215_v31 }
  0x8c   :  { %6395 = vmatmul.mubr.msk.bf16.gmra.mrb[52].mxu1 %vm591_vm0, %v7216_v32  ;;  %v7229_v32 = vld [vmem:[#allocation2] ss:$20 sps:$4 sm:$0xff]  }
  0x8d   :  { %6398 = vmatprep.mubr.msk.bf16.mxu1 %vm591_vm0, %v7217_v33 }
  0x94   :  { %6399 = vmatmul.mubr.msk.bf16.gmra.mrb[56].mxu1 %vm591_vm0, %v7218_v34  ;;  %v7232_v34 = vld [vmem:[#allocation2 + $0x2c] ss:$20 sps:$4 sm:$0xff]  }
  0x95   :  { %6402 = vmatprep.mubr.msk.bf16.mxu1 %vm591_vm0, %v7219_v35 }
  0x9c   :  { %6403 = vmatmul.mubr.msk.bf16.gmra.mrb[60].mxu1 %vm591_vm0, %v7220_v36 }
  0x9d   :  { %6406 = vmatprep.mubr.msk.bf16.mxu1 %vm591_vm0, %v7221_v37 }
  0xa4   :  { %6407 = vmatmul.mubr.msk.bf16.gmra.mrb[64].mxu1 %vm591_vm0, %v7222_v38 }
  0xa5   :  { %6410 = vmatprep.mubr.msk.bf16.mxu1 %vm591_vm0, %v7223_v39 }
  0xac   :  { %6411 = vmatmul.mubr.msk.bf16.gmra.mrb[68].mxu1 %vm591_vm0, %v7224_v40  ;;  %v7234_v40 = vld [vmem:[#allocation2 + $0x28] ss:$20 sps:$4 sm:$0xff]  }
  0xad   :  { %6414 = vmatprep.mubr.msk.bf16.mxu1 %vm591_vm0, %v7225_v41 }
  0xb4   :  { %6415 = vmatmul.mubr.msk.bf16.gmra.mrb[72].mxu1 %vm591_vm0, %v7226_v42  ;;  %v7235_v42 = vld [vmem:[#allocation2 + $0x54] ss:$20 sps:$4 sm:$0xff]  }
  0xb5   :  { %6418 = vmatprep.mubr.msk.bf16.mxu1 %vm591_vm0, %v7227_v43 }
  0xbc   :  { %6419 = vmatmul.mubr.msk.bf16.gmra.mrb[76].mxu1 %vm591_vm0, %v7228_v44 }
  0xbd   :  { %2184 = vmatprep.mubr.bf16.mxu1 %v7231_v45 }
  0xf7   :  { %v6344_v46 = vpop.f32.mrb[0].mxu1 }
  0xf8   :  { %v746_v47 = vpop.f32.mrb[1].mxu1 }
  0xf9   :  { %v6345_v48 = vpop.f32.mrb[2].mxu1 }
  0xfa   :  { %v1066_v49 = vpack.c.bf16 %v6345_v48, %v6344_v46  ;;  %v749_v50 = vpop.f32.mrb[3].mxu1  ;;  %v7237_v48 = vld [vmem:[#allocation2 + $0x50] ss:$20 sps:$4 sm:$0xff]  }
  0xfb   :  { %v1065_v51 = vpack.c.bf16 %v749_v50, %v746_v47  ;;  %v7238_v50 = vld [vmem:[#allocation2 + $0x7c] ss:$20 sps:$4 sm:$0xff]  }
  0xfd   :  { %2153 = vmatpush1.bf16.msra.mxu1 %v1065_v51 }
  0xfe   :  { %2154 = vmatprep.subr.bf16.mxu1 %v9736_v29 }
  0xff   :  { %v6348_v52 = vpop.f32.mrb[4].mxu1 }
 0x100   :  { %v762_v53 = vpop.f32.mrb[5].mxu1 }
 0x101   :  { %v6349_v54 = vpop.f32.mrb[6].mxu1  ;;  %2155 = vmatpush1.bf16.msra.mxu1 %v1066_v49 }
 0x102   :  { %v1068_v55 = vpack.c.bf16 %v6349_v54, %v6348_v52  ;;  %v765_v56 = vpop.f32.mrb[7].mxu1  ;;  %2156 = vmatprep.subr.bf16.mxu1 %v9736_v29 }
 0x103   :  { %v1067_v57 = vpack.c.bf16 %v765_v56, %v762_v53  ;;  %v7240_v56 = vld [vmem:[#allocation2 + $0x78] ss:$20 sps:$4 sm:$0xff]  }
 0x105   :  { %2157 = vmatpush1.bf16.msra.mxu1 %v1067_v57 }
 0x106   :  { %2158 = vmatprep.subr.bf16.mxu1 %v9736_v29 }
 0x107   :  { %v6352_v58 = vpop.f32.mrb[8].mxu1 }
 0x108   :  { %v778_v59 = vpop.f32.mrb[9].mxu1 }
 0x109   :  { %v6353_v60 = vpop.f32.mrb[10].mxu1  ;;  %2159 = vmatpush1.bf16.msra.mxu1 %v1068_v55 }
 0x10a   :  { %v1070_v61 = vpack.c.bf16 %v6353_v60, %v6352_v58  ;;  %v781_v62 = vpop.f32.mrb[11].mxu1  ;;  %2160 = vmatprep.subr.bf16.mxu1 %v9736_v29  ;;  %v7241_v58 = vld [vmem:[#allocation2 + $0xa4] ss:$20 sps:$4 sm:$0xff]  }
 0x10b   :  { %v1069_v63 = vpack.c.bf16 %v781_v62, %v778_v59 }
 0x10d   :  { %2161 = vmatpush1.bf16.msra.mxu1 %v1069_v63 }
 0x10e   :  { %2162 = vmatprep.subr.bf16.mxu1 %v9736_v29 }
 0x10f   :  { %v6356_v0 = vpop.f32.mrb[12].mxu1 }
 0x110   :  { %v794_v1 = vpop.f32.mrb[13].mxu1 }
 0x111   :  { %v6357_v2 = vpop.f32.mrb[14].mxu1  ;;  %2163 = vmatpush1.bf16.msra.mxu1 %v1070_v61 }
 0x112   :  { %v1072_v3 = vpack.c.bf16 %v6357_v2, %v6356_v0  ;;  %v797_v4 = vpop.f32.mrb[15].mxu1  ;;  %2164 = vmatprep.subr.bf16.mxu1 %v9736_v29  ;;  %v7243_v0 = vld [vmem:[#allocation2 + $0xa0] ss:$20 sps:$4 sm:$0xff]  }
 0x113   :  { %v1071_v5 = vpack.c.bf16 %v797_v4, %v794_v1  ;;  %v7244_v2 = vld [vmem:[#allocation2 + $0xcc] ss:$20 sps:$4 sm:$0xff]  }
 0x115   :  { %2165 = vmatpush1.bf16.msra.mxu1 %v1071_v5 }
 0x116   :  { %2166 = vmatprep.subr.bf16.mxu1 %v9736_v29 }
 0x117   :  { %v6360_v6 = vpop.f32.mrb[16].mxu1 }
 0x118   :  { %v810_v7 = vpop.f32.mrb[17].mxu1 }
 0x119   :  { %v6361_v8 = vpop.f32.mrb[18].mxu1  ;;  %2167 = vmatpush1.bf16.msra.mxu1 %v1072_v3 }
 0x11a   :  { %v1074_v9 = vpack.c.bf16 %v6361_v8, %v6360_v6  ;;  %v813_v10 = vpop.f32.mrb[19].mxu1  ;;  %2168 = vmatprep.subr.bf16.mxu1 %v9736_v29  ;;  %v7246_v8 = vld [vmem:[#allocation2 + $0xc8] ss:$20 sps:$4 sm:$0xff]  }
 0x11b   :  { %v1073_v11 = vpack.c.bf16 %v813_v10, %v810_v7  ;;  %v7247_v10 = vld [vmem:[#allocation2 + $0xf4] ss:$20 sps:$4 sm:$0xff]  }
 0x11d   :  { %2169 = vmatpush1.bf16.msra.mxu1 %v1073_v11 }
 0x11e   :  { %2170 = vmatprep.subr.bf16.mxu1 %v9736_v29 }
 0x11f   :  { %v6364_v12 = vpop.f32.mrb[20].mxu1 }
 0x120   :  { %v826_v13 = vpop.f32.mrb[21].mxu1 }
 0x121   :  { %v6365_v14 = vpop.f32.mrb[22].mxu1  ;;  %2171 = vmatpush1.bf16.msra.mxu1 %v1074_v9 }
 0x122   :  { %v1076_v15 = vpack.c.bf16 %v6365_v14, %v6364_v12  ;;  %v829_v16 = vpop.f32.mrb[23].mxu1  ;;  %2172 = vmatprep.subr.bf16.mxu1 %v9736_v29 }
 0x123   :  { %v1075_v17 = vpack.c.bf16 %v829_v16, %v826_v13  ;;  %v7249_v16 = vld [vmem:[#allocation2 + $0xf0] ss:$20 sps:$4 sm:$0xff]  }
 0x125   :  { %2173 = vmatpush1.bf16.msra.mxu1 %v1075_v17 }
 0x126   :  { %2174 = vmatprep.subr.bf16.mxu1 %v9736_v29 }
 0x127   :  { %v6368_v18 = vpop.f32.mrb[24].mxu1 }
 0x128   :  { %v842_v19 = vpop.f32.mrb[25].mxu1 }
 0x129   :  { %v6369_v20 = vpop.f32.mrb[26].mxu1  ;;  %2175 = vmatpush1.bf16.msra.mxu1 %v1076_v15 }
 0x12a   :  { %v1078_v21 = vpack.c.bf16 %v6369_v20, %v6368_v18  ;;  %v845_v22 = vpop.f32.mrb[27].mxu1  ;;  %2176 = vmatprep.subr.bf16.mxu1 %v9736_v29  ;;  %v7250_v18 = vld [vmem:[#allocation2 + $0x11c] ss:$20 sps:$4 sm:$0xff]  }
 0x12b   :  { %v1077_v23 = vpack.c.bf16 %v845_v22, %v842_v19 }
 0x12d   :  { %2177 = vmatpush1.bf16.msra.mxu1 %v1077_v23 }
 0x12e   :  { %2178 = vmatprep.subr.bf16.mxu1 %v9736_v29 }
 0x12f   :  { %v6372_v24 = vpop.f32.mrb[28].mxu1 }
 0x130   :  { %v858_v25 = vpop.f32.mrb[29].mxu1 }
 0x131   :  { %v6373_v26 = vpop.f32.mrb[30].mxu1  ;;  %2179 = vmatpush1.bf16.msra.mxu1 %v1078_v21 }
 0x132   :  { %v1080_v27 = vpack.c.bf16 %v6373_v26, %v6372_v24  ;;  %v861_v28 = vpop.f32.mrb[31].mxu1  ;;  %2180 = vmatprep.subr.bf16.mxu1 %v9736_v29  ;;  %v7252_v24 = vld [vmem:[#allocation2 + $0x118] ss:$20 sps:$4 sm:$0xff]  }
 0x133   :  { %v1079_v30 = vpack.c.bf16 %v861_v28, %v858_v25  ;;  %v7253_v26 = vld [vmem:[#allocation2 + $0x144] ss:$20 sps:$4 sm:$0xff]  }
 0x135   :  { %2181 = vmatpush1.bf16.msra.mxu1 %v1079_v30 }
 0x136   :  { %2182 = vmatprep.subr.bf16.mxu1 %v9736_v29 }
 0x137   :  { %v6376_v31 = vpop.f32.mrb[32].mxu1 }
 0x138   :  { %v874_v33 = vpop.f32.mrb[33].mxu1 }
 0x139   :  { %2183 = vmatpush1.bf16.msra.mxu1 %v1080_v27  ;;  %v6377_v35 = vpop.f32.mrb[34].mxu1 }
 0x13a   :  { %v1082_v36 = vpack.c.bf16 %v6377_v35, %v6376_v31  ;;  %v877_v37 = vpop.f32.mrb[35].mxu1  ;;  %2505 = vmatprep.subr.bf16.mxu1 %v9736_v29  ;;  %v7256_v35 = vld [vmem:[#allocation2 + $0x16c] ss:$20 sps:$4 sm:$0xff]  }
 0x13b   :  { %v1081_v38 = vpack.c.bf16 %v877_v37, %v874_v33  ;;  %v7255_v33 = vld [vmem:[#allocation2 + $0x140] ss:$20 sps:$4 sm:$0xff]  }
 0x13c   :  { %2185 = vmatmul.mubr.bf16.vlgmr.msra.gmra.mrb[80].mxu1 %v7229_v32 }
 0x13d   :  { %2192 = vmatprep.mubr.bf16.mxu1 %v7232_v34  ;;  %2506 = vmatpush1.bf16.msra.mxu1 %v1081_v38 }
 0x13e   :  { %2507 = vmatprep.subr.bf16.mxu1 %v9736_v29 }
 0x13f   :  { %v6380_v39 = vpop.f32.mrb[36].mxu1 }
 0x140   :  { %v890_v41 = vpop.f32.mrb[37].mxu1 }
 0x141   :  { %v6381_v43 = vpop.f32.mrb[38].mxu1  ;;  %2508 = vmatpush1.bf16.msra.mxu1 %v1082_v36 }
 0x142   :  { %v1084_v44 = vpack.c.bf16 %v6381_v43, %v6380_v39  ;;  %v893_v45 = vpop.f32.mrb[39].mxu1  ;;  %2509 = vmatprep.subr.bf16.mxu1 %v9736_v29  ;;  %v7259_v43 = vld [vmem:[#allocation2 + $0x194] ss:$20 sps:$4 sm:$0xff]  }
 0x143   :  { %v1083_v46 = vpack.c.bf16 %v893_v45, %v890_v41  ;;  %v7258_v41 = vld [vmem:[#allocation2 + $0x168] ss:$20 sps:$4 sm:$0xff]  }
 0x144   :  { %2193 = vmatmul.mubr.bf16.gmra.mrb[84].mxu1 %v7234_v40 }
 0x145   :  { %2200 = vmatprep.mubr.bf16.mxu1 %v7235_v42  ;;  %2510 = vmatpush1.bf16.msra.mxu1 %v1083_v46 }
 0x146   :  { %2511 = vmatprep.subr.bf16.mxu1 %v9736_v29 }
 0x147   :  { %v6384_v47 = vpop.f32.mrb[40].mxu1 }
 0x148   :  { %v906_v49 = vpop.f32.mrb[41].mxu1 }
 0x149   :  { %v6385_v51 = vpop.f32.mrb[42].mxu1  ;;  %2512 = vmatpush1.bf16.msra.mxu1 %v1084_v44 }
 0x14a   :  { %v1086_v52 = vpack.c.bf16 %v6385_v51, %v6384_v47  ;;  %v909_v53 = vpop.f32.mrb[43].mxu1  ;;  %2513 = vmatprep.subr.bf16.mxu1 %v9736_v29  ;;  %v7262_v51 = vld [vmem:[#allocation2 + $0x1bc] ss:$20 sps:$4 sm:$0xff]  }
 0x14b   :  { %v1085_v54 = vpack.c.bf16 %v909_v53, %v906_v49  ;;  %v7261_v49 = vld [vmem:[#allocation2 + $0x190] ss:$20 sps:$4 sm:$0xff]  }
 0x14c   :  { %2201 = vmatmul.mubr.bf16.gmra.mrb[88].mxu1 %v7237_v48 }
 0x14d   :  { %2208 = vmatprep.mubr.bf16.mxu1 %v7238_v50  ;;  %2514 = vmatpush1.bf16.msra.mxu1 %v1085_v54 }
 0x14e   :  { %2515 = vmatprep.subr.bf16.mxu1 %v9736_v29 }
 0x14f   :  { %v6388_v55 = vpop.f32.mrb[44].mxu1 }
 0x150   :  { %v922_v57 = vpop.f32.mrb[45].mxu1 }
 0x151   :  { %v6389_v59 = vpop.f32.mrb[46].mxu1  ;;  %2516 = vmatpush1.bf16.msra.mxu1 %v1086_v52 }
 0x152   :  { %v1088_v60 = vpack.c.bf16 %v6389_v59, %v6388_v55  ;;  %v925_v61 = vpop.f32.mrb[47].mxu1  ;;  %2517 = vmatprep.subr.bf16.mxu1 %v9736_v29  ;;  %v7265_v59 = vld [vmem:[#allocation2 + $0x1e4] ss:$20 sps:$4 sm:$0xff]  }
 0x153   :  { %v1087_v62 = vpack.c.bf16 %v925_v61, %v922_v57  ;;  %v7264_v57 = vld [vmem:[#allocation2 + $0x1b8] ss:$20 sps:$4 sm:$0xff]  }
 0x154   :  { %2209 = vmatmul.mubr.bf16.gmra.mrb[92].mxu1 %v7240_v56 }
 0x155   :  { %2216 = vmatprep.mubr.bf16.mxu1 %v7241_v58  ;;  %2518 = vmatpush1.bf16.msra.mxu1 %v1087_v62 }
 0x156   :  { %2519 = vmatprep.subr.bf16.mxu1 %v9736_v29 }
 0x157   :  { %v6392_v63 = vpop.f32.mrb[48].mxu1 }
 0x158   :  { %v938_v1 = vpop.f32.mrb[49].mxu1 }
 0x159   :  { %v6393_v3 = vpop.f32.mrb[50].mxu1  ;;  %2520 = vmatpush1.bf16.msra.mxu1 %v1088_v60 }
 0x15a   :  { %v1090_v4 = vpack.c.bf16 %v6393_v3, %v6392_v63  ;;  %v941_v5 = vpop.f32.mrb[51].mxu1  ;;  %2521 = vmatprep.subr.bf16.mxu1 %v9736_v29  ;;  %v7271_v3 = vld [vmem:[#allocation2 + $0x234] ss:$20 sps:$4 sm:$0xff]  }
 0x15b   :  { %v1089_v6 = vpack.c.bf16 %v941_v5, %v938_v1  ;;  %v7268_v1 = vld [vmem:[#allocation2 + $0x20c] ss:$20 sps:$4 sm:$0xff]   ;;  %v7274_v5 = vld [vmem:[#allocation2 + $0x25c] ss:$20 sps:$4 sm:$0xff]  }
 0x15c   :  { %2217 = vmatmul.mubr.bf16.gmra.mrb[96].mxu1 %v7243_v0  ;;  %v7267_v0 = vld [vmem:[#allocation2 + $0x1e0] ss:$20 sps:$4 sm:$0xff]  }
 0x15d   :  { %2224 = vmatprep.mubr.bf16.mxu1 %v7244_v2  ;;  %2522 = vmatpush1.bf16.msra.mxu1 %v1089_v6  ;;  %v7270_v2 = vld [vmem:[#allocation2 + $0x208] ss:$20 sps:$4 sm:$0xff]   ;;  %v7276_v6 = vld [vmem:[#allocation2 + $0x258] ss:$20 sps:$4 sm:$0xff]  }
 0x15e   :  { %2523 = vmatprep.subr.bf16.mxu1 %v9736_v29 }
 0x15f   :  { %v6396_v7 = vpop.f32.mrb[52].mxu1 }
 0x160   :  { %v954_v9 = vpop.f32.mrb[53].mxu1 }
 0x161   :  { %v6397_v11 = vpop.f32.mrb[54].mxu1  ;;  %2524 = vmatpush1.bf16.msra.mxu1 %v1090_v4  ;;  %v7273_v4 = vld [vmem:[#allocation2 + $0x230] ss:$20 sps:$4 sm:$0xff]  }
 0x162   :  { %v1092_v12 = vpack.c.bf16 %v6397_v11, %v6396_v7  ;;  %v957_v13 = vpop.f32.mrb[55].mxu1  ;;  %2525 = vmatprep.subr.bf16.mxu1 %v9736_v29  ;;  %v7277_v7 = vld [vmem:[#allocation2 + $0x284] ss:$20 sps:$4 sm:$0xff]   ;;  %v7283_v11 = vld [vmem:[#allocation2 + $0x2d4] ss:$20 sps:$4 sm:$0xff]  }
 0x163   :  { %v1091_v14 = vpack.c.bf16 %v957_v13, %v954_v9  ;;  %v7280_v9 = vld [vmem:[#allocation2 + $0x2ac] ss:$20 sps:$4 sm:$0xff]   ;;  %v7286_v13 = vld [vmem:[#allocation2 + $0x2fc] ss:$20 sps:$4 sm:$0xff]  }
 0x164   :  { %2225 = vmatmul.mubr.bf16.gmra.mrb[100].mxu1 %v7246_v8  ;;  %v7279_v8 = vld [vmem:[#allocation2 + $0x280] ss:$20 sps:$4 sm:$0xff]  }
 0x165   :  { %2232 = vmatprep.mubr.bf16.mxu1 %v7247_v10  ;;  %2526 = vmatpush1.bf16.msra.mxu1 %v1091_v14  ;;  %v7282_v10 = vld [vmem:[#allocation2 + $0x2a8] ss:$20 sps:$4 sm:$0xff]   ;;  %v7288_v14 = vld [vmem:[#allocation2 + $0x2f8] ss:$20 sps:$4 sm:$0xff]  }
 0x166   :  { %2527 = vmatprep.subr.bf16.mxu1 %v9736_v29 }
 0x167   :  { %v6400_v15 = vpop.f32.mrb[56].mxu1 }
 0x168   :  { %v970_v17 = vpop.f32.mrb[57].mxu1 }
 0x169   :  { %v6401_v19 = vpop.f32.mrb[58].mxu1  ;;  %2528 = vmatpush1.bf16.msra.mxu1 %v1092_v12  ;;  %v7285_v12 = vld [vmem:[#allocation2 + $0x2d0] ss:$20 sps:$4 sm:$0xff]  }
 0x16a   :  { %v1094_v20 = vpack.c.bf16 %v6401_v19, %v6400_v15  ;;  %v973_v21 = vpop.f32.mrb[59].mxu1  ;;  %2529 = vmatprep.subr.bf16.mxu1 %v9736_v29  ;;  %v7289_v15 = vld [vmem:[#allocation2 + $0x324] ss:$20 sps:$4 sm:$0xff]   ;;  %v7295_v19 = vld [vmem:[#allocation2 + $0x374] ss:$20 sps:$4 sm:$0xff]  }
 0x16b   :  { %v1093_v22 = vpack.c.bf16 %v973_v21, %v970_v17  ;;  %v7292_v17 = vld [vmem:[#allocation2 + $0x34c] ss:$20 sps:$4 sm:$0xff]   ;;  %v7298_v21 = vld [vmem:[#allocation2 + $0x39c] ss:$20 sps:$4 sm:$0xff]  }
 0x16c   :  { %2233 = vmatmul.mubr.bf16.gmra.mrb[104].mxu1 %v7249_v16  ;;  %v7291_v16 = vld [vmem:[#allocation2 + $0x320] ss:$20 sps:$4 sm:$0xff]  }
 0x16d   :  { %2240 = vmatprep.mubr.bf16.mxu1 %v7250_v18  ;;  %2530 = vmatpush1.bf16.msra.mxu1 %v1093_v22  ;;  %v7294_v18 = vld [vmem:[#allocation2 + $0x348] ss:$20 sps:$4 sm:$0xff]   ;;  %v7300_v22 = vld [vmem:[#allocation2 + $0x398] ss:$20 sps:$4 sm:$0xff]  }
 0x16e   :  { %2531 = vmatprep.subr.bf16.mxu1 %v9736_v29 }
 0x16f   :  { %v6404_v23 = vpop.f32.mrb[60].mxu1 }
 0x170   :  { %v986_v25 = vpop.f32.mrb[61].mxu1 }
 0x171   :  { %v6405_v27 = vpop.f32.mrb[62].mxu1  ;;  %2532 = vmatpush1.bf16.msra.mxu1 %v1094_v20  ;;  %v7297_v20 = vld [vmem:[#allocation2 + $0x370] ss:$20 sps:$4 sm:$0xff]  }
 0x172   :  { %v1096_v28 = vpack.c.bf16 %v6405_v27, %v6404_v23  ;;  %v989_v30 = vpop.f32.mrb[63].mxu1  ;;  %2533 = vmatprep.subr.bf16.mxu1 %v9736_v29  ;;  %v7301_v23 = vld [vmem:[#allocation2 + $0x3c4] ss:$20 sps:$4 sm:$0xff]  }
 0x173   :  { %v1095_v31 = vpack.c.bf16 %v989_v30, %v986_v25  ;;  %v7304_v25 = vld [vmem:[#allocation2 + $0x3ec] ss:$20 sps:$4 sm:$0xff]   ;;  %v7307_v30 = vld [vmem:[#allocation2 + $0x414] ss:$20 sps:$4 sm:$0xff]  }
 0x174   :  { %2241 = vmatmul.mubr.bf16.gmra.mrb[108].mxu1 %v7252_v24  ;;  %v7303_v24 = vld [vmem:[#allocation2 + $0x3c0] ss:$20 sps:$4 sm:$0xff]   ;;  %v7353_v27 = vld [vmem:[#allocation2 + $0x38] ss:$20 sps:$4 sm:$0xff]  }
 0x175   :  { %2248 = vmatprep.mubr.bf16.mxu1 %v7253_v26  ;;  %2534 = vmatpush1.bf16.msra.mxu1 %v1095_v31  ;;  %v7352_v26 = vld [vmem:[#allocation2 + $0x10] ss:$20 sps:$4 sm:$0xff]  }
 0x176   :  { %2535 = vmatprep.subr.bf16.mxu1 %v9736_v29  ;;  %6438 = vmatprep.mubr.bf16.mxu0 %v7352_v26  ;;  %v7309_v31 = vld [vmem:[#allocation2 + $0x410] ss:$20 sps:$4 sm:$0xff]   ;;  %v7370_v26 = vld [vmem:[#allocation2 + $0xd4] ss:$20 sps:$4 sm:$0xff]  }
 0x177   :  { %v6408_v32 = vpop.f32.mrb[64].mxu1 }
 0x178   :  { %v1002_v34 = vpop.f32.mrb[65].mxu1 }
 0x179   :  { %v6409_v36 = vpop.f32.mrb[66].mxu1  ;;  %2536 = vmatpush1.bf16.msra.mxu1 %v1096_v28  ;;  %v7306_v28 = vld [vmem:[#allocation2 + $0x3e8] ss:$20 sps:$4 sm:$0xff]  }
 0x17a   :  { %v1098_v37 = vpack.c.bf16 %v6409_v36, %v6408_v32  ;;  %v1005_v38 = vpop.f32.mrb[67].mxu1  ;;  %v7310_v32 = vld [vmem:[#allocation2 + $0x43c] ss:$20 sps:$4 sm:$0xff]   ;;  %v7313_v36 = vld [vmem:[#allocation2 + $0x464] ss:$20 sps:$4 sm:$0xff]  }
 0x17b   :  { %v1097_v39 = vpack.c.bf16 %v1005_v38, %v1002_v34  ;;  %v7361_v34 = vld [vmem:[#allocation2 + $0x88] ss:$20 sps:$4 sm:$0xff]   ;;  %v7316_v38 = vld [vmem:[#allocation2 + $0x48c] ss:$20 sps:$4 sm:$0xff]  }
 0x17c   :  { %2249 = vmatmul.mubr.bf16.gmra.mrb[112].mxu1 %v7255_v33  ;;  %v7360_v33 = vld [vmem:[#allocation2 + $0x60] ss:$20 sps:$4 sm:$0xff]  }
 0x17d   :  { %2256 = vmatprep.mubr.bf16.mxu1 %v7256_v35  ;;  %6422 = vmatprep.subr.bf16.mxu0 %v1097_v39  ;;  %v7312_v35 = vld [vmem:[#allocation2 + $0x438] ss:$20 sps:$4 sm:$0xff]  }
 0x17e   :  { %6423 = vmatpush3.bf16.msra.mxu0 %v1097_v39  ;;  %v7368_v39 = vld [vmem:[#allocation2 + $0xb0] ss:$20 sps:$4 sm:$0xff]  }
 0x17f   :  { %v6412_v40 = vpop.f32.mrb[68].mxu1  ;;  %6424 = vmatprep.subr.bf16.mxu0 %v1098_v37 }
 0x180   :  { %v1018_v42 = vpop.f32.mrb[69].mxu1 }
 0x181   :  { %v6413_v44 = vpop.f32.mrb[70].mxu1 }
 0x182   :  { %v1100_v45 = vpack.c.bf16 %v6413_v44, %v6412_v40  ;;  %v1021_v46 = vpop.f32.mrb[71].mxu1  ;;  %6425 = vmatpush3.bf16.msra.mxu0 %v1098_v37  ;;  %v7315_v37 = vld [vmem:[#allocation2 + $0x460] ss:$20 sps:$4 sm:$0xff]   ;;  %v7369_v40 = vld [vmem:[#allocation2 + $0xd8] ss:$20 sps:$4 sm:$0xff]  }
 0x183   :  { %v1099_v47 = vpack.c.bf16 %v1021_v46, %v1018_v42  ;;  %v7319_v42 = vld [vmem:[#allocation2 + $0x4b4] ss:$20 sps:$4 sm:$0xff]   ;;  %v7322_v44 = vld [vmem:[#allocation2 + $0x4dc] ss:$20 sps:$4 sm:$0xff]  }
 0x184   :  { %2257 = vmatmul.mubr.bf16.gmra.mrb[116].mxu1 %v7258_v41  ;;  %v7318_v41 = vld [vmem:[#allocation2 + $0x488] ss:$20 sps:$4 sm:$0xff]  }
 0x185   :  { %2264 = vmatprep.mubr.bf16.mxu1 %v7259_v43  ;;  %6426 = vmatprep.subr.bf16.mxu0 %v1099_v47  ;;  %v7321_v43 = vld [vmem:[#allocation2 + $0x4b0] ss:$20 sps:$4 sm:$0xff]   ;;  %v7377_v46 = vld [vmem:[#allocation2 + $0x128] ss:$20 sps:$4 sm:$0xff]  }
 0x186   :  { %6427 = vmatpush3.bf16.msra.mxu0 %v1099_v47  ;;  %v7324_v47 = vld [vmem:[#allocation2 + $0x4d8] ss:$20 sps:$4 sm:$0xff]  }
 0x187   :  { %v6416_v48 = vpop.f32.mrb[72].mxu1  ;;  %6428 = vmatprep.subr.bf16.mxu0 %v1100_v45 }
 0x188   :  { %v1034_v50 = vpop.f32.mrb[73].mxu1 }
 0x189   :  { %v6417_v52 = vpop.f32.mrb[74].mxu1 }
 0x18a   :  { %v1102_v53 = vpack.c.bf16 %v6417_v52, %v6416_v48  ;;  %v1037_v54 = vpop.f32.mrb[75].mxu1  ;;  %6429 = vmatpush3.bf16.msra.mxu0 %v1100_v45  ;;  %v7376_v45 = vld [vmem:[#allocation2 + $0x100] ss:$20 sps:$4 sm:$0xff]   ;;  %v7325_v48 = vld [vmem:[#allocation2 + $0x504] ss:$20 sps:$4 sm:$0xff]  }
 0x18b   :  { %v1101_v55 = vpack.c.bf16 %v1037_v54, %v1034_v50  ;;  %v7328_v50 = vld [vmem:[#allocation2 + $0x52c] ss:$20 sps:$4 sm:$0xff]   ;;  %v7331_v54 = vld [vmem:[#allocation2 + $0x554] ss:$20 sps:$4 sm:$0xff]  }
 0x18c   :  { %2265 = vmatmul.mubr.bf16.gmra.mrb[120].mxu1 %v7261_v49  ;;  %v7327_v49 = vld [vmem:[#allocation2 + $0x500] ss:$20 sps:$4 sm:$0xff]   ;;  %v7385_v52 = vld [vmem:[#allocation2 + $0x178] ss:$20 sps:$4 sm:$0xff]  }
 0x18d   :  { %2272 = vmatprep.mubr.bf16.mxu1 %v7262_v51  ;;  %6430 = vmatprep.subr.bf16.mxu0 %v1101_v55  ;;  %v7384_v51 = vld [vmem:[#allocation2 + $0x150] ss:$20 sps:$4 sm:$0xff]  }
 0x18e   :  { %6431 = vmatpush3.bf16.msra.mxu0 %v1101_v55  ;;  %v7333_v55 = vld [vmem:[#allocation2 + $0x550] ss:$20 sps:$4 sm:$0xff]  }
 0x18f   :  { %v6420_v56 = vpop.f32.mrb[76].mxu1  ;;  %6432 = vmatprep.subr.bf16.mxu0 %v1102_v53 }
 0x190   :  { %v1050_v58 = vpop.f32.mrb[77].mxu1 }
 0x191   :  { %v6421_v60 = vpop.f32.mrb[78].mxu1 }
 0x192   :  { %v1104_v61 = vpack.c.bf16 %v6421_v60, %v6420_v56  ;;  %v1053_v62 = vpop.f32.mrb[79].mxu1  ;;  %6433 = vmatpush3.bf16.msra.mxu0 %v1102_v53  ;;  %v7330_v53 = vld [vmem:[#allocation2 + $0x528] ss:$20 sps:$4 sm:$0xff]   ;;  %v7337_v60 = vld [vmem:[#allocation2 + $0x5a4] ss:$20 sps:$4 sm:$0xff]  }
 0x193   :  { %v1103_v63 = vpack.c.bf16 %v1053_v62, %v1050_v58  ;;  %v7334_v56 = vld [vmem:[#allocation2 + $0x57c] ss:$20 sps:$4 sm:$0xff]   ;;  %v7340_v62 = vld [vmem:[#allocation2 + $0x5cc] ss:$20 sps:$4 sm:$0xff]  }
 0x194   :  { %2273 = vmatmul.mubr.bf16.gmra.mrb[124].mxu1 %v7264_v57  ;;  %v7392_v57 = vld [vmem:[#allocation2 + $0x1a0] ss:$20 sps:$4 sm:$0xff]   ;;  %v7393_v58 = vld [vmem:[#allocation2 + $0x1c8] ss:$20 sps:$4 sm:$0xff]  }
 0x195   :  { %2280 = vmatprep.mubr.bf16.mxu1 %v7265_v59  ;;  %6434 = vmatprep.subr.bf16.mxu0 %v1103_v63  ;;  %v7336_v59 = vld [vmem:[#allocation2 + $0x578] ss:$20 sps:$4 sm:$0xff]  }
 0x196   :  { %6435 = vmatpush3.bf16.msra.mxu0 %v1103_v63  ;;  %v7400_v63 = vld [vmem:[#allocation2 + $0x1f0] ss:$20 sps:$4 sm:$0xff]  }
 0x197   :  { %6436 = vmatprep.subr.bf16.mxu0 %v1104_v61 }
 0x19a   :  { %6437 = vmatpush3.bf16.msra.mxu0 %v1104_v61  ;;  %v7339_v61 = vld [vmem:[#allocation2 + $0x5a0] ss:$20 sps:$4 sm:$0xff]  }
 0x19c   :  { %2281 = vmatmul.mubr.bf16.gmra.mrb[128].mxu1 %v7267_v0  ;;  %v7401_v0 = vld [vmem:[#allocation2 + $0x218] ss:$20 sps:$4 sm:$0xff]  }
 0x19d   :  { %2288 = vmatprep.mubr.bf16.mxu1 %v7268_v1  ;;  %6439 = vmatmul.mubr.bf16.vlgmr.msra.gmra.mrb[0].mxu0 %v7353_v27  ;;  %v7342_v1 = vld [vmem:[#allocation2 + $0x5c8] ss:$20 sps:$4 sm:$0xff]   ;;  %v7436_v27 = vld [vmem:[#allocation2 + $0x3d0] ss:$20 sps:$4 sm:$0xff]  }
 0x19e   :  { %6442 = vmatprep.mubr.bf16.mxu0 %v7360_v33  ;;  %v7442_v33 = vld [vmem:[#allocation2 + $0x448] ss:$20 sps:$4 sm:$0xff]  }
 0x1a4   :  { %2289 = vmatmul.mubr.bf16.gmra.mrb[132].mxu1 %v7270_v2  ;;  %v7343_v2 = vld [vmem:[#allocation2 + $0x5f4] ss:$20 sps:$4 sm:$0xff]  }
 0x1a5   :  { %2296 = vmatprep.mubr.bf16.mxu1 %v7271_v3  ;;  %6443 = vmatmul.mubr.bf16.gmra.mrb[4].mxu0 %v7361_v34  ;;  %v7345_v3 = vld [vmem:[#allocation2 + $0x5f0] ss:$20 sps:$4 sm:$0xff]   ;;  %v7375_v34 = vld [vmem:[#allocation2 + $0xf8] ss:$20 sps:$4 sm:$0xff]  }
 0x1a6   :  { %6446 = vmatprep.mubr.bf16.mxu0 %v7368_v39  ;;  %v7381_v39 = vld [vmem:[#allocation2 + $0x14c] ss:$20 sps:$4 sm:$0xff]  }
 0x1ac   :  { %2297 = vmatmul.mubr.bf16.gmra.mrb[136].mxu1 %v7273_v4  ;;  %v7346_v4 = vld [vmem:[#allocation2 + $0x61c] ss:$20 sps:$4 sm:$0xff]  }
 0x1ad   :  { %2304 = vmatprep.mubr.bf16.mxu1 %v7274_v5  ;;  %6447 = vmatmul.mubr.bf16.gmra.mrb[8].mxu0 %v7369_v40  ;;  %v7408_v5 = vld [vmem:[#allocation2 + $0x240] ss:$20 sps:$4 sm:$0xff]  }
 0x1ae   :  { %6450 = vmatprep.mubr.bf16.mxu0 %v7376_v45  ;;  %v7451_v40 = vld [vmem:[#allocation2 + $0x4c0] ss:$20 sps:$4 sm:$0xff]   ;;  %v7457_v45 = vld [vmem:[#allocation2 + $0x538] ss:$20 sps:$4 sm:$0xff]  }
 0x1b4   :  { %2305 = vmatmul.mubr.bf16.gmra.mrb[140].mxu1 %v7276_v6  ;;  %v7409_v6 = vld [vmem:[#allocation2 + $0x268] ss:$20 sps:$4 sm:$0xff]  }
 0x1b5   :  { %2312 = vmatprep.mubr.bf16.mxu1 %v7277_v7  ;;  %6451 = vmatmul.mubr.bf16.gmra.mrb[12].mxu0 %v7377_v46  ;;  %v7348_v7 = vld [vmem:[#allocation2 + $0x618] ss:$20 sps:$4 sm:$0xff]   ;;  %v7388_v46 = vld [vmem:[#allocation2 + $0x170] ss:$20 sps:$4 sm:$0xff]  }
 0x1b6   :  { %6454 = vmatprep.mubr.bf16.mxu0 %v7384_v51  ;;  %v7394_v51 = vld [vmem:[#allocation2 + $0x1c4] ss:$20 sps:$4 sm:$0xff]  }
 0x1bc   :  { %2313 = vmatmul.mubr.bf16.gmra.mrb[144].mxu1 %v7279_v8  ;;  %v7351_v8 = vld [vmem:[#allocation2 + $0xc] ss:$20 sps:$4 sm:$0xff]  }
 0x1bd   :  { %2320 = vmatprep.mubr.bf16.mxu1 %v7280_v9  ;;  %6455 = vmatmul.mubr.bf16.gmra.mrb[16].mxu0 %v7385_v52  ;;  %v7349_v9 = vld [vmem:[#allocation2 + $0x8] ss:$20 sps:$4 sm:$0xff]   ;;  %v7466_v52 = vld [vmem:[#allocation2 + $0x5b0] ss:$20 sps:$4 sm:$0xff]  }
 0x1be   :  { %6458 = vmatprep.mubr.bf16.mxu0 %v7392_v57 }
 0x1c4   :  { %2321 = vmatmul.mubr.bf16.gmra.mrb[148].mxu1 %v7282_v10  ;;  %v7354_v10 = vld [vmem:[#allocation2 + $0x34] ss:$20 sps:$4 sm:$0xff]  }
 0x1c5   :  { %2328 = vmatprep.mubr.bf16.mxu1 %v7283_v11  ;;  %6459 = vmatmul.mubr.bf16.gmra.mrb[20].mxu0 %v7393_v58  ;;  %v7416_v11 = vld [vmem:[#allocation2 + $0x290] ss:$20 sps:$4 sm:$0xff]  }
 0x1c6   :  { %6462 = vmatprep.mubr.bf16.mxu0 %v7400_v63  ;;  %v7473_v63 = vld [vmem:[%s9733_s4] sm:$0xff]  }
 0x1c7   :  { %6518 = vmatprep.subr.bf16.mxu0 %v7473_v63 }
 0x1c8   :  { %6519 = vmatpush3.bf16.msra.mxu0 %v7473_v63  ;;  %v8413_v63 = vld [vmem:[%s9732_s3] ss:$0 sm:$0xff] }
 0x1cc   :  { %2329 = vmatmul.mubr.bf16.gmra.mrb[152].mxu1 %v7285_v12  ;;  %v7417_v12 = vld [vmem:[#allocation2 + $0x2b8] ss:$20 sps:$4 sm:$0xff]  }
 0x1cd   :  { %2336 = vmatprep.mubr.bf16.mxu1 %v7286_v13  ;;  %6463 = vmatmul.mubr.bf16.gmra.mrb[24].mxu0 %v7401_v0  ;;  %v7356_v13 = vld [vmem:[#allocation2 + $0x30] ss:$20 sps:$4 sm:$0xff]   ;;  %v7402_v0 = vld [vmem:[#allocation2 + $0x214] ss:$20 sps:$4 sm:$0xff]  }
 0x1ce   :  { %6466 = vmatprep.mubr.bf16.mxu0 %v7408_v5 }
 0x1d4   :  { %2337 = vmatmul.mubr.bf16.gmra.mrb[156].mxu1 %v7288_v14  ;;  %v7357_v14 = vld [vmem:[#allocation2 + $0x5c] ss:$20 sps:$4 sm:$0xff]  }
 0x1d5   :  { %2344 = vmatprep.mubr.bf16.mxu1 %v7289_v15  ;;  %6467 = vmatmul.mubr.bf16.gmra.mrb[28].mxu0 %v7409_v6  ;;  %v7421_v15 = vld [vmem:[#allocation2 + $0x2e0] ss:$20 sps:$4 sm:$0xff]  }
 0x1d6   :  { %6470 = vmatprep.mubr.bf16.mxu0 %v7416_v11 }
 0x1dc   :  { %2345 = vmatmul.mubr.bf16.gmra.mrb[160].mxu1 %v7291_v16  ;;  %v7422_v16 = vld [vmem:[#allocation2 + $0x308] ss:$20 sps:$4 sm:$0xff]  }
 0x1dd   :  { %2352 = vmatprep.mubr.bf16.mxu1 %v7292_v17  ;;  %6471 = vmatmul.mubr.bf16.gmra.mrb[32].mxu0 %v7417_v12  ;;  %v7359_v17 = vld [vmem:[#allocation2 + $0x58] ss:$20 sps:$4 sm:$0xff]  }
 0x1de   :  { %6474 = vmatprep.mubr.bf16.mxu0 %v7421_v15  ;;  %v7413_v12 = vld [vmem:[#allocation2 + $0x28c] ss:$20 sps:$4 sm:$0xff]  }
 0x1e4   :  { %2353 = vmatmul.mubr.bf16.gmra.mrb[164].mxu1 %v7294_v18  ;;  %v7362_v18 = vld [vmem:[#allocation2 + $0x84] ss:$20 sps:$4 sm:$0xff]  }
 0x1e5   :  { %2360 = vmatprep.mubr.bf16.mxu1 %v7295_v19  ;;  %6475 = vmatmul.mubr.bf16.gmra.mrb[36].mxu0 %v7422_v16  ;;  %v7426_v19 = vld [vmem:[#allocation2 + $0x330] ss:$20 sps:$4 sm:$0xff]   ;;  %v7415_v16 = vld [vmem:[#allocation2 + $0x288] ss:$20 sps:$4 sm:$0xff]  }
 0x1e6   :  { %6478 = vmatprep.mubr.bf16.mxu0 %v7426_v19 }
 0x1ec   :  { %2361 = vmatmul.mubr.bf16.gmra.mrb[168].mxu1 %v7297_v20  ;;  %v7427_v20 = vld [vmem:[#allocation2 + $0x358] ss:$20 sps:$4 sm:$0xff]  }
 0x1ed   :  { %2368 = vmatprep.mubr.bf16.mxu1 %v7298_v21  ;;  %6479 = vmatmul.mubr.bf16.gmra.mrb[40].mxu0 %v7427_v20  ;;  %v7364_v21 = vld [vmem:[#allocation2 + $0x80] ss:$20 sps:$4 sm:$0xff]   ;;  %v7423_v20 = vld [vmem:[#allocation2 + $0x2dc] ss:$20 sps:$4 sm:$0xff]  }
 0x1f4   :  { %2369 = vmatmul.mubr.bf16.gmra.mrb[172].mxu1 %v7300_v22  ;;  %v7365_v22 = vld [vmem:[#allocation2 + $0xac] ss:$20 sps:$4 sm:$0xff]  }
 0x1f5   :  { %2376 = vmatprep.mubr.bf16.mxu1 %v7301_v23  ;;  %v7431_v23 = vld [vmem:[#allocation2 + $0x380] ss:$20 sps:$4 sm:$0xff]  }
 0x1f6   :  { %6482 = vmatprep.mubr.bf16.mxu0 %v7431_v23 }
 0x1fc   :  { %2377 = vmatmul.mubr.bf16.gmra.mrb[176].mxu1 %v7303_v24  ;;  %v7432_v24 = vld [vmem:[#allocation2 + $0x3a8] ss:$20 sps:$4 sm:$0xff]  }
 0x1fd   :  { %2384 = vmatprep.mubr.bf16.mxu1 %v7304_v25  ;;  %6483 = vmatmul.mubr.bf16.gmra.mrb[44].mxu0 %v7432_v24  ;;  %v7367_v25 = vld [vmem:[#allocation2 + $0xa8] ss:$20 sps:$4 sm:$0xff]   ;;  %v7425_v24 = vld [vmem:[#allocation2 + $0x2d8] ss:$20 sps:$4 sm:$0xff]  }
 0x1fe   :  { %6486 = vmatprep.mubr.bf16.mxu0 %v7436_v27 }
 0x204   :  { %2385 = vmatmul.mubr.bf16.gmra.mrb[180].mxu1 %v7306_v28  ;;  %v7437_v28 = vld [vmem:[#allocation2 + $0x3f8] ss:$20 sps:$4 sm:$0xff]  }
 0x205   :  { %2392 = vmatprep.mubr.bf16.mxu1 %v7307_v30  ;;  %6487 = vmatmul.mubr.bf16.gmra.mrb[48].mxu0 %v7437_v28  ;;  %v7372_v30 = vld [vmem:[#allocation2 + $0xd0] ss:$20 sps:$4 sm:$0xff]   ;;  %v7433_v28 = vld [vmem:[#allocation2 + $0x32c] ss:$20 sps:$4 sm:$0xff]  }
 0x20c   :  { %2393 = vmatmul.mubr.bf16.gmra.mrb[184].mxu1 %v7309_v31  ;;  %v7373_v31 = vld [vmem:[#allocation2 + $0xfc] ss:$20 sps:$4 sm:$0xff]  }
 0x20d   :  { %2400 = vmatprep.mubr.bf16.mxu1 %v7310_v32  ;;  %v7441_v32 = vld [vmem:[#allocation2 + $0x420] ss:$20 sps:$4 sm:$0xff]  }
 0x20e   :  { %6490 = vmatprep.mubr.bf16.mxu0 %v7441_v32 }
 0x20f   :  { %6491 = vmatmul.mubr.bf16.gmra.mrb[52].mxu0 %v7442_v33  ;;  %v7435_v33 = vld [vmem:[#allocation2 + $0x328] ss:$20 sps:$4 sm:$0xff]  }
 0x214   :  { %2401 = vmatmul.mubr.bf16.gmra.mrb[188].mxu1 %v7312_v35  ;;  %v7378_v35 = vld [vmem:[#allocation2 + $0x124] ss:$20 sps:$4 sm:$0xff]  }
 0x215   :  { %2408 = vmatprep.mubr.bf16.mxu1 %v7313_v36  ;;  %v7446_v36 = vld [vmem:[#allocation2 + $0x470] ss:$20 sps:$4 sm:$0xff]  }
 0x216   :  { %6494 = vmatprep.mubr.bf16.mxu0 %v7446_v36 }
 0x21c   :  { %2409 = vmatmul.mubr.bf16.gmra.mrb[192].mxu1 %v7315_v37  ;;  %v7447_v37 = vld [vmem:[#allocation2 + $0x498] ss:$20 sps:$4 sm:$0xff]  }
 0x21d   :  { %2416 = vmatprep.mubr.bf16.mxu1 %v7316_v38  ;;  %6495 = vmatmul.mubr.bf16.gmra.mrb[56].mxu0 %v7447_v37  ;;  %v7380_v38 = vld [vmem:[#allocation2 + $0x120] ss:$20 sps:$4 sm:$0xff]   ;;  %v7443_v37 = vld [vmem:[#allocation2 + $0x37c] ss:$20 sps:$4 sm:$0xff]  }
 0x21e   :  { %6498 = vmatprep.mubr.bf16.mxu0 %v7451_v40 }
 0x224   :  { %2417 = vmatmul.mubr.bf16.gmra.mrb[196].mxu1 %v7318_v41  ;;  %v7452_v41 = vld [vmem:[#allocation2 + $0x4e8] ss:$20 sps:$4 sm:$0xff]  }
 0x225   :  { %2424 = vmatprep.mubr.bf16.mxu1 %v7319_v42  ;;  %6499 = vmatmul.mubr.bf16.gmra.mrb[60].mxu0 %v7452_v41  ;;  %v7383_v42 = vld [vmem:[#allocation2 + $0x148] ss:$20 sps:$4 sm:$0xff]   ;;  %v7445_v41 = vld [vmem:[#allocation2 + $0x378] ss:$20 sps:$4 sm:$0xff]  }
 0x22c   :  { %2425 = vmatmul.mubr.bf16.gmra.mrb[200].mxu1 %v7321_v43  ;;  %v7386_v43 = vld [vmem:[#allocation2 + $0x174] ss:$20 sps:$4 sm:$0xff]  }
 0x22d   :  { %2432 = vmatprep.mubr.bf16.mxu1 %v7322_v44  ;;  %v7456_v44 = vld [vmem:[#allocation2 + $0x510] ss:$20 sps:$4 sm:$0xff]  }
 0x22e   :  { %6502 = vmatprep.mubr.bf16.mxu0 %v7456_v44 }
 0x22f   :  { %6503 = vmatmul.mubr.bf16.gmra.mrb[64].mxu0 %v7457_v45  ;;  %v7453_v45 = vld [vmem:[#allocation2 + $0x3cc] ss:$20 sps:$4 sm:$0xff]  }
 0x234   :  { %2433 = vmatmul.mubr.bf16.gmra.mrb[204].mxu1 %v7324_v47  ;;  %v7389_v47 = vld [vmem:[#allocation2 + $0x19c] ss:$20 sps:$4 sm:$0xff]  }
 0x235   :  { %2440 = vmatprep.mubr.bf16.mxu1 %v7325_v48  ;;  %v7461_v48 = vld [vmem:[#allocation2 + $0x560] ss:$20 sps:$4 sm:$0xff]  }
 0x236   :  { %6506 = vmatprep.mubr.bf16.mxu0 %v7461_v48 }
 0x23c   :  { %2441 = vmatmul.mubr.bf16.gmra.mrb[208].mxu1 %v7327_v49  ;;  %v7462_v49 = vld [vmem:[#allocation2 + $0x588] ss:$20 sps:$4 sm:$0xff]  }
 0x23d   :  { %2448 = vmatprep.mubr.bf16.mxu1 %v7328_v50  ;;  %6507 = vmatmul.mubr.bf16.gmra.mrb[68].mxu0 %v7462_v49  ;;  %v7391_v50 = vld [vmem:[#allocation2 + $0x198] ss:$20 sps:$4 sm:$0xff]   ;;  %v7455_v49 = vld [vmem:[#allocation2 + $0x3c8] ss:$20 sps:$4 sm:$0xff]  }
 0x23e   :  { %6510 = vmatprep.mubr.bf16.mxu0 %v7466_v52 }
 0x244   :  { %2449 = vmatmul.mubr.bf16.gmra.mrb[212].mxu1 %v7330_v53  ;;  %v7467_v53 = vld [vmem:[#allocation2 + $0x5d8] ss:$20 sps:$4 sm:$0xff]  }
 0x245   :  { %2456 = vmatprep.mubr.bf16.mxu1 %v7331_v54  ;;  %v7396_v54 = vld [vmem:[#allocation2 + $0x1c0] ss:$20 sps:$4 sm:$0xff]   ;;  %6511 = vmatmul.mubr.bf16.gmra.mrb[72].mxu0 %v7467_v53  ;;  %v7463_v53 = vld [vmem:[#allocation2 + $0x41c] ss:$20 sps:$4 sm:$0xff]  }
 0x24c   :  { %2457 = vmatmul.mubr.bf16.gmra.mrb[216].mxu1 %v7333_v55 }
 0x24d   :  { %2464 = vmatprep.mubr.bf16.mxu1 %v7334_v56  ;;  %v7397_v56 = vld [vmem:[#allocation2 + $0x1ec] ss:$20 sps:$4 sm:$0xff]  }
 0x254   :  { %2465 = vmatmul.mubr.bf16.gmra.mrb[220].mxu1 %v7336_v59 }
 0x255   :  { %2472 = vmatprep.mubr.bf16.mxu1 %v7337_v60  ;;  %v7471_v60 = vld [vmem:[#allocation2 + $0x600] ss:$20 sps:$4 sm:$0xff]  }
 0x256   :  { %6514 = vmatprep.mubr.bf16.mxu0 %v7471_v60 }
 0x25c   :  { %2473 = vmatmul.mubr.bf16.gmra.mrb[224].mxu1 %v7339_v61  ;;  %v7472_v61 = vld [vmem:[#allocation2 + $0x628] ss:$20 sps:$4 sm:$0xff]  }
 0x25d   :  { %2480 = vmatprep.mubr.bf16.mxu1 %v7340_v62  ;;  %v7399_v62 = vld [vmem:[#allocation2 + $0x1e8] ss:$20 sps:$4 sm:$0xff]   ;;  %6515 = vmatmul.mubr.bf16.gmra.mrb[76].mxu0 %v7472_v61  ;;  %v7465_v61 = vld [vmem:[#allocation2 + $0x418] ss:$20 sps:$4 sm:$0xff]  }
 0x264   :  { %2481 = vmatmul.mubr.bf16.gmra.mrb[228].mxu1 %v7342_v1  ;;  %v7477_v1 = vld [vmem:[%s9733_s4 + $0x8] sm:$0xff]  }
 0x265   :  { %2488 = vmatprep.mubr.bf16.mxu1 %v7343_v2  ;;  %6520 = vmatprep.subr.bf16.mxu0 %v7477_v1  ;;  %v7404_v2 = vld [vmem:[#allocation2 + $0x210] ss:$20 sps:$4 sm:$0xff]  }
 0x266   :  { %6521 = vmatpush3.bf16.msra.mxu0 %v7477_v1 }
 0x267   :  { %3868 = vmatprep.subr.bf16.mxu0 %v9736_v29 }
 0x26c   :  { %2489 = vmatmul.mubr.bf16.gmra.mrb[232].mxu1 %v7345_v3 }
 0x26d   :  { %2496 = vmatprep.mubr.bf16.mxu1 %v7346_v4  ;;  %v7405_v4 = vld [vmem:[#allocation2 + $0x23c] ss:$20 sps:$4 sm:$0xff]  }
 0x270   :  { %v8339_v55 = vpop.f32.mrb[0].mxu0 }
 0x271   :  { %v8341_v57 = vpop.f32.mrb[1].mxu0 }
 0x272   :  { %v8343_v58 = vpop.f32.mrb[2].mxu0 }
 0x273   :  { %v8345_v59 = vpop.f32.mrb[3].mxu0 }
 0x274   :  { %2497 = vmatmul.mubr.bf16.gmra.mrb[236].mxu1 %v7348_v7 }
 0x275   :  { %2537 = vmatprep.mubr.bf16.mxu1 %v7351_v8  ;;  %v7407_v8 = vld [vmem:[#allocation2 + $0x238] ss:$20 sps:$4 sm:$0xff]  }
 0x278   :  { %v8353_v3 = vpop.f32.mrb[4].mxu0 }
 0x279   :  { %v8356_v5 = vpop.f32.mrb[5].mxu0 }
 0x27a   :  { %v8358_v6 = vpop.f32.mrb[6].mxu0 }
 0x27b   :  { %v8360_v7 = vpop.f32.mrb[7].mxu0 }
 0x27c   :  { %2538 = vmatmul.mubr.bf16.vlgmr.msra.gmra.mrb[80].mxu1 %v7349_v9  ;;  %v7410_v9 = vld [vmem:[#allocation2 + $0x264] ss:$20 sps:$4 sm:$0xff]  }
 0x27d   :  { %2545 = vmatprep.mubr.bf16.mxu1 %v7354_v10  ;;  %v7412_v10 = vld [vmem:[#allocation2 + $0x260] ss:$20 sps:$4 sm:$0xff]  }
 0x280   :  { %v8362_v11 = vpop.f32.mrb[8].mxu0 }
 0x284   :  { %2546 = vmatmul.mubr.bf16.gmra.mrb[84].mxu1 %v7356_v13  ;;  %v8364_v13 = vpop.f32.mrb[9].mxu0 }
 0x285   :  { %2553 = vmatprep.mubr.bf16.mxu1 %v7357_v14  ;;  %v8366_v14 = vpop.f32.mrb[10].mxu0 }
 0x286   :  { %v8368_v15 = vpop.f32.mrb[11].mxu0 }
 0x288   :  { %v8370_v19 = vpop.f32.mrb[12].mxu0 }
 0x28c   :  { %2554 = vmatmul.mubr.bf16.gmra.mrb[88].mxu1 %v7359_v17  ;;  %v7418_v17 = vld [vmem:[#allocation2 + $0x2b4] ss:$20 sps:$4 sm:$0xff]  }
 0x28d   :  { %2561 = vmatprep.mubr.bf16.mxu1 %v7362_v18  ;;  %v7420_v18 = vld [vmem:[#allocation2 + $0x2b0] ss:$20 sps:$4 sm:$0xff]  }
 0x294   :  { %2562 = vmatmul.mubr.bf16.gmra.mrb[92].mxu1 %v7364_v21  ;;  %v8372_v21 = vpop.f32.mrb[13].mxu0 }
 0x295   :  { %2569 = vmatprep.mubr.bf16.mxu1 %v7365_v22  ;;  %v8374_v22 = vpop.f32.mrb[14].mxu0 }
 0x296   :  { %v8376_v23 = vpop.f32.mrb[15].mxu0 }
 0x297   :  { %v8378_v27 = vpop.f32.mrb[16].mxu0 }
 0x29c   :  { %2570 = vmatmul.mubr.bf16.gmra.mrb[96].mxu1 %v7367_v25  ;;  %v7428_v25 = vld [vmem:[#allocation2 + $0x304] ss:$20 sps:$4 sm:$0xff]  }
 0x29d   :  { %2577 = vmatprep.mubr.bf16.mxu1 %v7370_v26  ;;  %v7430_v26 = vld [vmem:[#allocation2 + $0x300] ss:$20 sps:$4 sm:$0xff]  }
 0x2a4   :  { %2578 = vmatmul.mubr.bf16.gmra.mrb[100].mxu1 %v7372_v30  ;;  %v8380_v30 = vpop.f32.mrb[17].mxu0 }
 0x2a5   :  { %2585 = vmatprep.mubr.bf16.mxu1 %v7373_v31  ;;  %v8382_v31 = vpop.f32.mrb[18].mxu0 }
 0x2a6   :  { %v8384_v32 = vpop.f32.mrb[19].mxu0 }
 0x2a7   :  { %v8386_v36 = vpop.f32.mrb[20].mxu0 }
 0x2ac   :  { %2586 = vmatmul.mubr.bf16.gmra.mrb[104].mxu1 %v7375_v34  ;;  %v7438_v34 = vld [vmem:[#allocation2 + $0x354] ss:$20 sps:$4 sm:$0xff]  }
 0x2ad   :  { %2593 = vmatprep.mubr.bf16.mxu1 %v7378_v35  ;;  %v7440_v35 = vld [vmem:[#allocation2 + $0x350] ss:$20 sps:$4 sm:$0xff]  }
 0x2b4   :  { %2594 = vmatmul.mubr.bf16.gmra.mrb[108].mxu1 %v7380_v38  ;;  %v8388_v38 = vpop.f32.mrb[21].mxu0 }
 0x2b5   :  { %2601 = vmatprep.mubr.bf16.mxu1 %v7381_v39  ;;  %v8390_v39 = vpop.f32.mrb[22].mxu0 }
 0x2b6   :  { %v8392_v40 = vpop.f32.mrb[23].mxu0 }
 0x2b7   :  { %v8394_v44 = vpop.f32.mrb[24].mxu0 }
 0x2bc   :  { %2602 = vmatmul.mubr.bf16.gmra.mrb[112].mxu1 %v7383_v42  ;;  %v7448_v42 = vld [vmem:[#allocation2 + $0x3a4] ss:$20 sps:$4 sm:$0xff]  }
 0x2bd   :  { %2609 = vmatprep.mubr.bf16.mxu1 %v7386_v43  ;;  %v7450_v43 = vld [vmem:[#allocation2 + $0x3a0] ss:$20 sps:$4 sm:$0xff]  }
 0x2c4   :  { %2610 = vmatmul.mubr.bf16.gmra.mrb[116].mxu1 %v7388_v46  ;;  %v8396_v46 = vpop.f32.mrb[25].mxu0 }
 0x2c5   :  { %2617 = vmatprep.mubr.bf16.mxu1 %v7389_v47  ;;  %v8398_v47 = vpop.f32.mrb[26].mxu0 }
 0x2c6   :  { %v8400_v48 = vpop.f32.mrb[27].mxu0 }
 0x2c7   :  { %v8402_v52 = vpop.f32.mrb[28].mxu0 }
 0x2cc   :  { %2618 = vmatmul.mubr.bf16.gmra.mrb[120].mxu1 %v7391_v50  ;;  %v7458_v50 = vld [vmem:[#allocation2 + $0x3f4] ss:$20 sps:$4 sm:$0xff]  }
 0x2cd   :  { %2625 = vmatprep.mubr.bf16.mxu1 %v7394_v51  ;;  %v7460_v51 = vld [vmem:[#allocation2 + $0x3f0] ss:$20 sps:$4 sm:$0xff]  }
 0x2d4   :  { %2626 = vmatmul.mubr.bf16.gmra.mrb[124].mxu1 %v7396_v54  ;;  %v8404_v54 = vpop.f32.mrb[29].mxu0 }
 0x2d5   :  { %2633 = vmatprep.mubr.bf16.mxu1 %v7397_v56  ;;  %v8406_v56 = vpop.f32.mrb[30].mxu0 }
 0x2d6   :  { %v8408_v60 = vpop.f32.mrb[31].mxu0 }
 0x2dc   :  { %2634 = vmatmul.mubr.bf16.gmra.mrb[128].mxu1 %v7399_v62  ;;  %v7468_v62 = vld [vmem:[#allocation2 + $0x444] ss:$20 sps:$4 sm:$0xff]  }
 0x2dd   :  { %2641 = vmatprep.mubr.bf16.mxu1 %v7402_v0 }
 0x2e4   :  { %2642 = vmatmul.mubr.bf16.gmra.mrb[132].mxu1 %v7404_v2 }
 0x2e5   :  { %2649 = vmatprep.mubr.bf16.mxu1 %v7405_v4  ;;  %v7470_v4 = vld [vmem:[#allocation2 + $0x440] ss:$20 sps:$4 sm:$0xff]  }
 0x2ec   :  { %2650 = vmatmul.mubr.bf16.gmra.mrb[136].mxu1 %v7407_v8  ;;  %v8416_v8 = vpop.f32.mrb[32].mxu0 }
 0x2ed   :  { %2657 = vmatprep.mubr.bf16.mxu1 %v7410_v9 }
 0x2f4   :  { %2658 = vmatmul.mubr.bf16.gmra.mrb[140].mxu1 %v7412_v10  ;;  %v7474_v10 = vld [vmem:[#allocation2 + $0x46c] ss:$20 sps:$4 sm:$0xff]  }
 0x2f5   :  { %2665 = vmatprep.mubr.bf16.mxu1 %v7413_v12  ;;  %v8418_v12 = vpop.f32.mrb[33].mxu0 }
 0x2fc   :  { %2666 = vmatmul.mubr.bf16.gmra.mrb[144].mxu1 %v7415_v16 }
 0x2fd   :  { %2673 = vmatprep.mubr.bf16.mxu1 %v7418_v17 }
 0x304   :  { %2674 = vmatmul.mubr.bf16.gmra.mrb[148].mxu1 %v7420_v18 }
 0x305   :  { %2681 = vmatprep.mubr.bf16.mxu1 %v7423_v20  ;;  %v8422_v20 = vpop.f32.mrb[34].mxu0 }
 0x30c   :  { %2682 = vmatmul.mubr.bf16.gmra.mrb[152].mxu1 %v7425_v24  ;;  %v8424_v24 = vpop.f32.mrb[35].mxu0 }
 0x30d   :  { %2689 = vmatprep.mubr.bf16.mxu1 %v7428_v25 }
 0x314   :  { %2690 = vmatmul.mubr.bf16.gmra.mrb[156].mxu1 %v7430_v26 }
 0x315   :  { %2697 = vmatprep.mubr.bf16.mxu1 %v7433_v28 }
 0x31c   :  { %2698 = vmatmul.mubr.bf16.gmra.mrb[160].mxu1 %v7435_v33 }
 0x31d   :  { %2705 = vmatprep.mubr.bf16.mxu1 %v7438_v34 }
 0x324   :  { %2706 = vmatmul.mubr.bf16.gmra.mrb[164].mxu1 %v7440_v35 }
 0x325   :  { %2713 = vmatprep.mubr.bf16.mxu1 %v7443_v37 }
 0x32c   :  { %2714 = vmatmul.mubr.bf16.gmra.mrb[168].mxu1 %v7445_v41  ;;  %v7476_v41 = vld [vmem:[#allocation2 + $0x468] ss:$20 sps:$4 sm:$0xff]  }
 0x32d   :  { %2721 = vmatprep.mubr.bf16.mxu1 %v7448_v42 }
 0x334   :  { %2722 = vmatmul.mubr.bf16.gmra.mrb[172].mxu1 %v7450_v43 }
 0x335   :  { %2729 = vmatprep.mubr.bf16.mxu1 %v7453_v45 }
 0x33c   :  { %2730 = vmatmul.mubr.bf16.gmra.mrb[176].mxu1 %v7455_v49 }
 0x33d   :  { %2737 = vmatprep.mubr.bf16.mxu1 %v7458_v50 }
 0x344   :  { %2738 = vmatmul.mubr.bf16.gmra.mrb[180].mxu1 %v7460_v51 }
 0x345   :  { %2745 = vmatprep.mubr.bf16.mxu1 %v7463_v53 }
 0x34c   :  { %2746 = vmatmul.mubr.bf16.gmra.mrb[184].mxu1 %v7465_v61 }
 0x34d   :  { %2753 = vmatprep.mubr.bf16.mxu1 %v7468_v62 }
 0x34f   :  { %v2539_v0 = vpop.f32.mrb[80].mxu1 }
 0x350   :  { %v6698_v1 = vadd.f32 %v8413_v63, %v2539_v0  ;;  %v2541_v2 = vpop.f32.mrb[81].mxu1 }
 0x351   :  { %v2542_v9 = vpop.f32.mrb[82].mxu1  ;;  %v8433_v2 = vpop.f32.mrb[36].mxu0 }
 0x352   :  { %v6699_v16 = vadd.f32 %v8413_v63, %v2542_v9  ;;  %v2893_v17 = vadd.f32 %v6698_v1, %v8341_v57  ;;  %v2544_v18 = vpop.f32.mrb[83].mxu1  ;;  %v7478_v57 = vld [vmem:[#allocation2 + $0x494] ss:$20 sps:$4 sm:$0xff]   ;;  %v7480_v1 = vld [vmem:[#allocation2 + $0x490] ss:$20 sps:$4 sm:$0xff]   ;;  %v8435_v9 = vpop.f32.mrb[37].mxu0 }
 0x354   :  { %v2896_v25 = vadd.f32 %v6699_v16, %v8345_v59  ;;  %2754 = vmatmul.mubr.bf16.gmra.mrb[188].mxu1 %v7470_v4  ;;  %v3211_v26 = vmax.f32 %v2893_v17, 0.0  ;;  %v7481_v4 = vld [vmem:[#allocation2 + $0x4bc] ss:$20 sps:$4 sm:$0xff]   ;;  %v8440_v17 = vpop.f32.mrb[38].mxu0 }
 0x355   :  { %2761 = vmatprep.mubr.bf16.mxu1 %v7474_v10  ;;  %v8442_v18 = vpop.f32.mrb[39].mxu0 }
 0x356   :  { %v3212_v28 = vmax.f32 %v2896_v25, 0.0 }
 0x357   :  { %v2547_v33 = vpop.f32.mrb[84].mxu1 }
 0x358   :  { %v6700_v34 = vadd.f32 %v8413_v63, %v2547_v33  ;;  %v2549_v35 = vpop.f32.mrb[85].mxu1  ;;  %v3291_v37 = vpack.c.bf16 %v3212_v28, %v3211_v26 }
 0x359   :  { %v2550_v42 = vpop.f32.mrb[86].mxu1 }
 0x35a   :  { %v2901_v43 = vadd.f32 %v6700_v34, %v8339_v55  ;;  %v6701_v45 = vadd.f32 %v8413_v63, %v2550_v42  ;;  %v2552_v49 = vpop.f32.mrb[87].mxu1  ;;  %6522 = vmatprep.mubr.msk.bf16.mxu0 %vm3347_vm1, %v3291_v37  ;;  %v7484_v42 = vld [vmem:[#allocation2 + $0x4e4] ss:$20 sps:$4 sm:$0xff]  }
 0x35c   :  { %v2904_v59 = vadd.f32 %v6701_v45, %v8343_v58  ;;  %2762 = vmatmul.mubr.bf16.gmra.mrb[192].mxu1 %v7476_v41  ;;  %v3213_v50 = vmax.f32 %v2901_v43, 0.0  ;;  %v7483_v41 = vld [vmem:[#allocation2 + $0x4b8] ss:$20 sps:$4 sm:$0xff]  }
 0x35d   :  { %2769 = vmatprep.mubr.bf16.mxu1 %v7478_v57 }
 0x35e   :  { %v3214_v51 = vmax.f32 %v2904_v59, 0.0 }
 0x35f   :  { %v2555_v53 = vpop.f32.mrb[88].mxu1 }
 0x360   :  { %v3292_v61 = vpack.c.bf16 %v3214_v51, %v3213_v50  ;;  %v6702_v62 = vadd.f32 %v8413_v63, %v2555_v53  ;;  %v2557_v0 = vpop.f32.mrb[89].mxu1 }
 0x361   :  { %v2558_v55 = vpop.f32.mrb[90].mxu1  ;;  %v8451_v0 = vpop.f32.mrb[40].mxu0 }
 0x362   :  { %v6703_v10 = vadd.f32 %v8413_v63, %v2558_v55  ;;  %v2909_v58 = vadd.f32 %v6702_v62, %v8356_v5  ;;  %v2560_v16 = vpop.f32.mrb[91].mxu1  ;;  %6523 = vmatmul.mubr.msk.bf16.vlgmr.msra.gmra.mrb[80].mxu0 %vm3347_vm1, %v3292_v61  ;;  %v7486_v62 = vld [vmem:[#allocation2 + $0x4e0] ss:$20 sps:$4 sm:$0xff]   ;;  %v8453_v55 = vpop.f32.mrb[41].mxu0 }
 0x364   :  { %v2912_v25 = vadd.f32 %v6703_v10, %v8360_v7  ;;  %2770 = vmatmul.mubr.bf16.gmra.mrb[196].mxu1 %v7480_v1  ;;  %v3215_v26 = vmax.f32 %v2909_v58, 0.0  ;;  %v7487_v1 = vld [vmem:[#allocation2 + $0x50c] ss:$20 sps:$4 sm:$0xff]   ;;  %v8458_v58 = vpop.f32.mrb[42].mxu0 }
 0x365   :  { %2777 = vmatprep.mubr.bf16.mxu1 %v7481_v4  ;;  %v8460_v16 = vpop.f32.mrb[43].mxu0 }
 0x366   :  { %v3216_v28 = vmax.f32 %v2912_v25, 0.0 }
 0x367   :  { %v2563_v33 = vpop.f32.mrb[92].mxu1 }
 0x368   :  { %v6704_v34 = vadd.f32 %v8413_v63, %v2563_v33  ;;  %v2565_v35 = vpop.f32.mrb[93].mxu1  ;;  %v3293_v37 = vpack.c.bf16 %v3216_v28, %v3215_v26 }
 0x369   :  { %v2566_v5 = vpop.f32.mrb[94].mxu1 }
 0x36a   :  { %v2917_v57 = vadd.f32 %v6704_v34, %v8353_v3  ;;  %v6705_v43 = vadd.f32 %v8413_v63, %v2566_v5  ;;  %v2568_v45 = vpop.f32.mrb[95].mxu1  ;;  %6526 = vmatprep.mubr.msk.bf16.mxu0 %vm3347_vm1, %v3293_v37  ;;  %v7490_v5 = vld [vmem:[#allocation2 + $0x534] ss:$20 sps:$4 sm:$0xff]  }
 0x36c   :  { %v2920_v7 = vadd.f32 %v6705_v43, %v8358_v6  ;;  %2778 = vmatmul.mubr.bf16.gmra.mrb[200].mxu1 %v7483_v41  ;;  %v3217_v49 = vmax.f32 %v2917_v57, 0.0  ;;  %v7489_v41 = vld [vmem:[#allocation2 + $0x508] ss:$20 sps:$4 sm:$0xff]  }
 0x36d   :  { %2785 = vmatprep.mubr.bf16.mxu1 %v7484_v42 }
 0x36e   :  { %v3218_v59 = vmax.f32 %v2920_v7, 0.0 }
 0x36f   :  { %v2571_v50 = vpop.f32.mrb[96].mxu1 }
 0x370   :  { %v3294_v51 = vpack.c.bf16 %v3218_v59, %v3217_v49  ;;  %v6706_v53 = vadd.f32 %v8413_v63, %v2571_v50  ;;  %v2573_v61 = vpop.f32.mrb[97].mxu1 }
 0x371   :  { %v2574_v3 = vpop.f32.mrb[98].mxu1  ;;  %v8469_v61 = vpop.f32.mrb[44].mxu0 }
 0x372   :  { %v6707_v4 = vadd.f32 %v8413_v63, %v2574_v3  ;;  %v2925_v6 = vadd.f32 %v6706_v53, %v8364_v13  ;;  %v2576_v10 = vpop.f32.mrb[99].mxu1  ;;  %6527 = vmatmul.mubr.msk.bf16.gmra.mrb[84].mxu0 %vm3347_vm1, %v3294_v51  ;;  %v7492_v53 = vld [vmem:[#allocation2 + $0x530] ss:$20 sps:$4 sm:$0xff]   ;;  %v8471_v3 = vpop.f32.mrb[45].mxu0 }
 0x374   :  { %v2928_v25 = vadd.f32 %v6707_v4, %v8368_v15  ;;  %2786 = vmatmul.mubr.bf16.gmra.mrb[204].mxu1 %v7486_v62  ;;  %v3219_v26 = vmax.f32 %v2925_v6, 0.0  ;;  %v7493_v62 = vld [vmem:[#allocation2 + $0x55c] ss:$20 sps:$4 sm:$0xff]   ;;  %v8476_v6 = vpop.f32.mrb[46].mxu0 }
 0x375   :  { %2793 = vmatprep.mubr.bf16.mxu1 %v7487_v1  ;;  %v8478_v10 = vpop.f32.mrb[47].mxu0 }
 0x376   :  { %v3220_v28 = vmax.f32 %v2928_v25, 0.0 }
 0x377   :  { %v2579_v33 = vpop.f32.mrb[100].mxu1 }
 0x378   :  { %v6708_v34 = vadd.f32 %v8413_v63, %v2579_v33  ;;  %v2581_v35 = vpop.f32.mrb[101].mxu1  ;;  %v3295_v37 = vpack.c.bf16 %v3220_v28, %v3219_v26 }
 0x379   :  { %v2582_v13 = vpop.f32.mrb[102].mxu1 }
 0x37a   :  { %v2933_v42 = vadd.f32 %v6708_v34, %v8362_v11  ;;  %v6709_v57 = vadd.f32 %v8413_v63, %v2582_v13  ;;  %v2584_v43 = vpop.f32.mrb[103].mxu1  ;;  %6530 = vmatprep.mubr.msk.bf16.mxu0 %vm3347_vm1, %v3295_v37  ;;  %v7496_v13 = vld [vmem:[#allocation2 + $0x584] ss:$20 sps:$4 sm:$0xff]  }
 0x37c   :  { %v2936_v15 = vadd.f32 %v6709_v57, %v8366_v14  ;;  %2794 = vmatmul.mubr.bf16.gmra.mrb[208].mxu1 %v7489_v41  ;;  %v3221_v45 = vmax.f32 %v2933_v42, 0.0  ;;  %v7495_v41 = vld [vmem:[#allocation2 + $0x558] ss:$20 sps:$4 sm:$0xff]  }
 0x37d   :  { %2801 = vmatprep.mubr.bf16.mxu1 %v7490_v5 }
 0x37e   :  { %v3222_v7 = vmax.f32 %v2936_v15, 0.0 }
 0x37f   :  { %v2587_v49 = vpop.f32.mrb[104].mxu1 }
 0x380   :  { %v3296_v59 = vpack.c.bf16 %v3222_v7, %v3221_v45  ;;  %v6710_v50 = vadd.f32 %v8413_v63, %v2587_v49  ;;  %v2589_v51 = vpop.f32.mrb[105].mxu1 }
 0x381   :  { %v2590_v11 = vpop.f32.mrb[106].mxu1  ;;  %v8487_v51 = vpop.f32.mrb[48].mxu0 }
 0x382   :  { %v6711_v1 = vadd.f32 %v8413_v63, %v2590_v11  ;;  %v2941_v14 = vadd.f32 %v6710_v50, %v8372_v21  ;;  %v2592_v4 = vpop.f32.mrb[107].mxu1  ;;  %6531 = vmatmul.mubr.msk.bf16.gmra.mrb[88].mxu0 %vm3347_vm1, %v3296_v59  ;;  %v7498_v50 = vld [vmem:[#allocation2 + $0x580] ss:$20 sps:$4 sm:$0xff]   ;;  %v8489_v11 = vpop.f32.mrb[49].mxu0 }
 0x384   :  { %v2944_v25 = vadd.f32 %v6711_v1, %v8376_v23  ;;  %2802 = vmatmul.mubr.bf16.gmra.mrb[212].mxu1 %v7492_v53  ;;  %v3223_v26 = vmax.f32 %v2941_v14, 0.0  ;;  %v7499_v53 = vld [vmem:[#allocation2 + $0x5ac] ss:$20 sps:$4 sm:$0xff]   ;;  %v8494_v14 = vpop.f32.mrb[50].mxu0 }
 0x385   :  { %2809 = vmatprep.mubr.bf16.mxu1 %v7493_v62  ;;  %v8496_v4 = vpop.f32.mrb[51].mxu0 }
 0x386   :  { %v3224_v28 = vmax.f32 %v2944_v25, 0.0 }
 0x387   :  { %v2595_v33 = vpop.f32.mrb[108].mxu1 }
 0x388   :  { %v6712_v34 = vadd.f32 %v8413_v63, %v2595_v33  ;;  %v2597_v35 = vpop.f32.mrb[109].mxu1  ;;  %v3297_v37 = vpack.c.bf16 %v3224_v28, %v3223_v26 }
 0x389   :  { %v2598_v21 = vpop.f32.mrb[110].mxu1 }
 0x38a   :  { %v2949_v5 = vadd.f32 %v6712_v34, %v8370_v19  ;;  %v6713_v42 = vadd.f32 %v8413_v63, %v2598_v21  ;;  %v2600_v57 = vpop.f32.mrb[111].mxu1  ;;  %6534 = vmatprep.mubr.msk.bf16.mxu0 %vm3347_vm1, %v3297_v37  ;;  %v7502_v21 = vld [vmem:[#allocation2 + $0x5d4] ss:$20 sps:$4 sm:$0xff]  }
 0x38c   :  { %v2952_v23 = vadd.f32 %v6713_v42, %v8374_v22  ;;  %2810 = vmatmul.mubr.bf16.gmra.mrb[216].mxu1 %v7495_v41  ;;  %v3225_v43 = vmax.f32 %v2949_v5, 0.0  ;;  %v7501_v41 = vld [vmem:[#allocation2 + $0x5a8] ss:$20 sps:$4 sm:$0xff]  }
 0x38d   :  { %2817 = vmatprep.mubr.bf16.mxu1 %v7496_v13  ;;  %v8500_v13 = vpop.f32.mrb[52].mxu0 }
 0x38e   :  { %v3226_v15 = vmax.f32 %v2952_v23, 0.0 }
 0x38f   :  { %v2603_v45 = vpop.f32.mrb[112].mxu1 }
 0x390   :  { %v3298_v7 = vpack.c.bf16 %v3226_v15, %v3225_v43  ;;  %v6714_v49 = vadd.f32 %v8413_v63, %v2603_v45  ;;  %v2605_v59 = vpop.f32.mrb[113].mxu1 }
 0x391   :  { %v2606_v19 = vpop.f32.mrb[114].mxu1 }
 0x392   :  { %v6715_v62 = vadd.f32 %v8413_v63, %v2606_v19  ;;  %v2957_v22 = vadd.f32 %v6714_v49, %v8380_v30  ;;  %v2608_v1 = vpop.f32.mrb[115].mxu1  ;;  %6535 = vmatmul.mubr.msk.bf16.gmra.mrb[92].mxu0 %vm3347_vm1, %v3298_v7 }
 0x394   :  { %v2960_v25 = vadd.f32 %v6715_v62, %v8384_v32  ;;  %2818 = vmatmul.mubr.bf16.gmra.mrb[220].mxu1 %v7498_v50  ;;  %v3227_v26 = vmax.f32 %v2957_v22, 0.0  ;;  %v8505_v32 = vpop.f32.mrb[53].mxu0  ;;  %v7504_v22 = vld [vmem:[#allocation2 + $0x5d0] ss:$20 sps:$4 sm:$0xff]  }
 0x395   :  { %2825 = vmatprep.mubr.bf16.mxu1 %v7499_v53  ;;  %v8507_v23 = vpop.f32.mrb[54].mxu0 }
 0x396   :  { %v3228_v28 = vmax.f32 %v2960_v25, 0.0  ;;  %v8510_v15 = vpop.f32.mrb[55].mxu0  ;;  %v7505_v25 = vld [vmem:[#allocation2 + $0x5fc] ss:$20 sps:$4 sm:$0xff]  }
 0x397   :  { %v2611_v33 = vpop.f32.mrb[116].mxu1  ;;  %v8512_v45 = vpop.f32.mrb[56].mxu0 }
 0x398   :  { %v6716_v34 = vadd.f32 %v8413_v63, %v2611_v33  ;;  %v2613_v35 = vpop.f32.mrb[117].mxu1  ;;  %v3299_v37 = vpack.c.bf16 %v3228_v28, %v3227_v26 }
 0x399   :  { %v2614_v30 = vpop.f32.mrb[118].mxu1 }
 0x39a   :  { %v2965_v5 = vadd.f32 %v6716_v34, %v8378_v27  ;;  %v6717_v42 = vadd.f32 %v8413_v63, %v2614_v30  ;;  %v2616_v57 = vpop.f32.mrb[119].mxu1  ;;  %6538 = vmatprep.mubr.msk.bf16.mxu0 %vm3347_vm1, %v3299_v37  ;;  %v8514_v27 = vpop.f32.mrb[57].mxu0 }
 0x39b   :  { %v8516_v50 = vpop.f32.mrb[58].mxu0 }
 0x39c   :  { %v2968_v43 = vadd.f32 %v6717_v42, %v8382_v31  ;;  %2826 = vmatmul.mubr.bf16.gmra.mrb[224].mxu1 %v7501_v41  ;;  %v3229_v7 = vmax.f32 %v2965_v5, 0.0  ;;  %v8519_v1 = vpop.f32.mrb[59].mxu0 }
 0x39d   :  { %2833 = vmatprep.mubr.bf16.mxu1 %v7502_v21  ;;  %v8521_v26 = vpop.f32.mrb[60].mxu0 }
 0x39e   :  { %v3230_v49 = vmax.f32 %v2968_v43, 0.0  ;;  %v8526_v35 = vpop.f32.mrb[61].mxu0 }
 0x39f   :  { %v2619_v59 = vpop.f32.mrb[120].mxu1  ;;  %v8528_v37 = vpop.f32.mrb[62].mxu0 }
 0x3a0   :  { %v3300_v19 = vpack.c.bf16 %v3230_v49, %v3229_v7  ;;  %v6718_v53 = vadd.f32 %v8413_v63, %v2619_v59  ;;  %v2621_v62 = vpop.f32.mrb[121].mxu1  ;;  %v8531_v30 = vpop.f32.mrb[63].mxu0 }
 0x3a1   :  { %v2622_v31 = vpop.f32.mrb[122].mxu1  ;;  %v8533_v21 = vpop.f32.mrb[64].mxu0  ;;  %v7508_v62 = vld [vmem:[#allocation2 + $0x624] ss:$20 sps:$4 sm:$0xff]  }
 0x3a2   :  { %v6719_v28 = vadd.f32 %v8413_v63, %v2622_v31  ;;  %v2973_v33 = vadd.f32 %v6718_v53, %v8388_v38  ;;  %v2624_v34 = vpop.f32.mrb[123].mxu1  ;;  %6539 = vmatmul.mubr.msk.bf16.gmra.mrb[96].mxu0 %vm3347_vm1, %v3300_v19  ;;  %v8535_v57 = vpop.f32.mrb[65].mxu0  ;;  %v7507_v19 = vld [vmem:[#allocation2 + $0x5f8] ss:$20 sps:$4 sm:$0xff]  }
 0x3a3   :  { %v8537_v43 = vpop.f32.mrb[66].mxu0 }
 0x3a4   :  { %v2976_v41 = vadd.f32 %v6719_v28, %v8392_v40  ;;  %2834 = vmatmul.mubr.bf16.gmra.mrb[228].mxu1 %v7504_v22  ;;  %v3231_v5 = vmax.f32 %v2973_v33, 0.0  ;;  %v8540_v53 = vpop.f32.mrb[67].mxu0 }
 0x3a5   :  { %2841 = vmatprep.mubr.bf16.mxu1 %v7505_v25  ;;  %v8542_v22 = vpop.f32.mrb[68].mxu0 }
 0x3a6   :  { %v3232_v42 = vmax.f32 %v2976_v41, 0.0  ;;  %9785 = vst [vmem:[#allocation8_spill] sm:$0xff] %v8542_v22  ;;  %v8547_v33 = vpop.f32.mrb[69].mxu0 }
 0x3a7   :  { %v2627_v38 = vpop.f32.mrb[124].mxu1  ;;  %v8549_v34 = vpop.f32.mrb[70].mxu0 }
 0x3a8   :  { %v6720_v7 = vadd.f32 %v8413_v63, %v2627_v38  ;;  %v2629_v49 = vpop.f32.mrb[125].mxu1  ;;  %v3301_v59 = vpack.c.bf16 %v3232_v42, %v3231_v5  ;;  %9786 = vst [vmem:[#allocation9_spill] sm:$0xff] %v8549_v34  ;;  %v8552_v5 = vpop.f32.mrb[71].mxu0  ;;  %v7510_v34 = vld [vmem:[#allocation2 + $0x620] ss:$20 sps:$4 sm:$0xff]  }
 0x3a9   :  { %v2630_v40 = vpop.f32.mrb[126].mxu1  ;;  %v8554_v42 = vpop.f32.mrb[72].mxu0 }
 0x3aa   :  { %v2981_v31 = vadd.f32 %v6720_v7, %v8386_v36  ;;  %v6721_v25 = vadd.f32 %v8413_v63, %v2630_v40  ;;  %v2632_v28 = vpop.f32.mrb[127].mxu1  ;;  %6542 = vmatprep.mubr.msk.bf16.mxu0 %vm3347_vm1, %v3301_v59  ;;  %9787 = vst [vmem:[#allocation10_spill] sm:$0xff] %v8554_v42  ;;  %v8556_v36 = vpop.f32.mrb[73].mxu0 }
 0x3ab   :  { %v8558_v40 = vpop.f32.mrb[74].mxu0 }
 0x3ac   :  { %v2984_v41 = vadd.f32 %v6721_v25, %v8390_v39  ;;  %2842 = vmatmul.mubr.bf16.gmra.mrb[232].mxu1 %v7507_v19  ;;  %v3233_v38 = vmax.f32 %v2981_v31, 0.0  ;;  %9788 = vst [vmem:[#allocation11_spill] sm:$0xff] %v8558_v40  ;;  %v8561_v22 = vpop.f32.mrb[75].mxu0 }
 0x3ad   :  { %2849 = vmatprep.mubr.bf16.mxu1 %v7508_v62  ;;  %v8563_v19 = vpop.f32.mrb[76].mxu0 }
 0x3ae   :  { %v3234_v49 = vmax.f32 %v2984_v41, 0.0  ;;  %9789 = vst [vmem:[#allocation12_spill] sm:$0xff] %v8563_v19  ;;  %v8568_v41 = vpop.f32.mrb[77].mxu0 }
 0x3af   :  { %v2635_v7 = vpop.f32.mrb[128].mxu1  ;;  %9790 = vst [vmem:[#allocation13_spill] sm:$0xff] %v8568_v41  ;;  %v8570_v40 = vpop.f32.mrb[78].mxu0 }
 0x3b0   :  { %v3302_v59 = vpack.c.bf16 %v3234_v49, %v3233_v38  ;;  %v6722_v28 = vadd.f32 %v8413_v63, %v2635_v7  ;;  %v2637_v29 = vpop.f32.mrb[129].mxu1  ;;  %9791 = vst [vmem:[#allocation14_spill] sm:$0xff] %v8570_v40  ;;  %v7831_v49 = vld [vmem:[#allocation2 + $0x10] ss:$20 sps:$4 sm:$0xff]  }
 0x3b1   :  { %v2638_v39 = vpop.f32.mrb[130].mxu1  ;;  %v8573_v29 = vpop.f32.mrb[79].mxu0 }
 0x3b2   :  { %v6723_v62 = vadd.f32 %v8413_v63, %v2638_v39  ;;  %v2989_v31 = vadd.f32 %v6722_v28, %v8396_v46  ;;  %v2640_v25 = vpop.f32.mrb[131].mxu1  ;;  %6543 = vmatmul.mubr.msk.bf16.gmra.mrb[100].mxu0 %vm3347_vm1, %v3302_v59  ;;  %9792 = vst [vmem:[#allocation15_spill] sm:$0xff] %v8573_v29 }
 0x3b4   :  { %v2992_v38 = vadd.f32 %v6723_v62, %v8400_v48  ;;  %2850 = vmatmul.mubr.bf16.gmra.mrb[236].mxu1 %v7510_v34  ;;  %v3235_v7 = vmax.f32 %v2989_v31, 0.0 }
 0x3b5   :  { %6618 = vmatprep.mubr.bf16.mxu1 %v7831_v49 }
 0x3b6   :  { %v3236_v19 = vmax.f32 %v2992_v38, 0.0 }
 0x3b7   :  { %v2643_v42 = vpop.f32.mrb[132].mxu1 }
 0x3b8   :  { %v6724_v39 = vadd.f32 %v8413_v63, %v2643_v42  ;;  %v2645_v46 = vpop.f32.mrb[133].mxu1  ;;  %v3303_v28 = vpack.c.bf16 %v3236_v19, %v3235_v7 }
 0x3b9   :  { %v2646_v25 = vpop.f32.mrb[134].mxu1 }
 0x3ba   :  { %v2997_v59 = vadd.f32 %v6724_v39, %v8394_v44  ;;  %v6725_v41 = vadd.f32 %v8413_v63, %v2646_v25  ;;  %v2648_v40 = vpop.f32.mrb[135].mxu1  ;;  %6546 = vmatprep.mubr.msk.bf16.mxu0 %vm3347_vm1, %v3303_v28 }
 0x3bc   :  { %v3000_v48 = vadd.f32 %v6725_v41, %v8398_v47  ;;  %v3237_v34 = vmax.f32 %v2997_v59, 0.0 }
 0x3be   :  { %v3238_v62 = vmax.f32 %v3000_v48, 0.0 }
 0x3bf   :  { %v2651_v49 = vpop.f32.mrb[136].mxu1 }
 0x3c0   :  { %v3304_v31 = vpack.c.bf16 %v3238_v62, %v3237_v34  ;;  %v6726_v38 = vadd.f32 %v8413_v63, %v2651_v49  ;;  %v2653_v29 = vpop.f32.mrb[137].mxu1 }
 0x3c1   :  { %v2654_v42 = vpop.f32.mrb[138].mxu1 }
 0x3c2   :  { %v6727_v19 = vadd.f32 %v8413_v63, %v2654_v42  ;;  %v3005_v7 = vadd.f32 %v6726_v38, %v8404_v54  ;;  %v2656_v44 = vpop.f32.mrb[139].mxu1  ;;  %6547 = vmatmul.mubr.msk.bf16.gmra.mrb[104].mxu0 %vm3347_vm1, %v3304_v31 }
 0x3c4   :  { %v3008_v40 = vadd.f32 %v6727_v19, %v8408_v60  ;;  %v3239_v39 = vmax.f32 %v3005_v7, 0.0 }
 0x3c6   :  { %v3240_v46 = vmax.f32 %v3008_v40, 0.0 }
 0x3c7   :  { %v2659_v47 = vpop.f32.mrb[140].mxu1 }
 0x3c8   :  { %v6728_v41 = vadd.f32 %v8413_v63, %v2659_v47  ;;  %v2661_v28 = vpop.f32.mrb[141].mxu1  ;;  %v3305_v25 = vpack.c.bf16 %v3240_v46, %v3239_v39 }
 0x3c9   :  { %v2662_v59 = vpop.f32.mrb[142].mxu1 }
 0x3ca   :  { %v3013_v29 = vadd.f32 %v6728_v41, %v8402_v52  ;;  %v6729_v48 = vadd.f32 %v8413_v63, %v2662_v59  ;;  %v2664_v34 = vpop.f32.mrb[143].mxu1  ;;  %6550 = vmatprep.mubr.msk.bf16.mxu0 %vm3347_vm1, %v3305_v25 }
 0x3cc   :  { %v3016_v54 = vadd.f32 %v6729_v48, %v8406_v56  ;;  %v3241_v62 = vmax.f32 %v3013_v29, 0.0 }
 0x3ce   :  { %v3242_v49 = vmax.f32 %v3016_v54, 0.0 }
 0x3cf   :  { %v2667_v60 = vpop.f32.mrb[144].mxu1 }
 0x3d0   :  { %v3306_v31 = vpack.c.bf16 %v3242_v49, %v3241_v62  ;;  %v6730_v38 = vadd.f32 %v8413_v63, %v2667_v60  ;;  %v2669_v42 = vpop.f32.mrb[145].mxu1 }
 0x3d1   :  { %v2670_v19 = vpop.f32.mrb[146].mxu1 }
 0x3d2   :  { %v6731_v7 = vadd.f32 %v8413_v63, %v2670_v19  ;;  %v3021_v44 = vadd.f32 %v6730_v38, %v8418_v12  ;;  %v2672_v52 = vpop.f32.mrb[147].mxu1  ;;  %6551 = vmatmul.mubr.msk.bf16.gmra.mrb[108].mxu0 %vm3347_vm1, %v3306_v31 }
 0x3d4   :  { %v3024_v40 = vadd.f32 %v6731_v7, %v8424_v24  ;;  %v3243_v39 = vmax.f32 %v3021_v44, 0.0 }
 0x3d6   :  { %v3244_v46 = vmax.f32 %v3024_v40, 0.0 }
 0x3d7   :  { %v2675_v56 = vpop.f32.mrb[148].mxu1 }
 0x3d8   :  { %v6732_v47 = vadd.f32 %v8413_v63, %v2675_v56  ;;  %v2677_v41 = vpop.f32.mrb[149].mxu1  ;;  %v3307_v28 = vpack.c.bf16 %v3244_v46, %v3243_v39 }
 0x3d9   :  { %v2678_v25 = vpop.f32.mrb[150].mxu1 }
 0x3da   :  { %v3029_v59 = vadd.f32 %v6732_v47, %v8416_v8  ;;  %v6733_v29 = vadd.f32 %v8413_v63, %v2678_v25  ;;  %v2680_v48 = vpop.f32.mrb[151].mxu1  ;;  %6554 = vmatprep.mubr.msk.bf16.mxu0 %vm3347_vm1, %v3307_v28 }
 0x3dc   :  { %v3032_v12 = vadd.f32 %v6733_v29, %v8422_v20  ;;  %v3245_v34 = vmax.f32 %v3029_v59, 0.0 }
 0x3de   :  { %v3246_v54 = vmax.f32 %v3032_v12, 0.0 }
 0x3df   :  { %v2683_v24 = vpop.f32.mrb[152].mxu1 }
 0x3e0   :  { %v3308_v62 = vpack.c.bf16 %v3246_v54, %v3245_v34  ;;  %v6734_v49 = vadd.f32 %v8413_v63, %v2683_v24  ;;  %v2685_v60 = vpop.f32.mrb[153].mxu1 }
 0x3e1   :  { %v2686_v31 = vpop.f32.mrb[154].mxu1 }
 0x3e2   :  { %v6735_v38 = vadd.f32 %v8413_v63, %v2686_v31  ;;  %v3037_v42 = vadd.f32 %v6734_v49, %v8435_v9  ;;  %v2688_v8 = vpop.f32.mrb[155].mxu1  ;;  %6555 = vmatmul.mubr.msk.bf16.gmra.mrb[112].mxu0 %vm3347_vm1, %v3308_v62 }
 0x3e4   :  { %v3040_v19 = vadd.f32 %v6735_v38, %v8442_v18  ;;  %v3247_v7 = vmax.f32 %v3037_v42, 0.0 }
 0x3e6   :  { %v3248_v44 = vmax.f32 %v3040_v19, 0.0 }
 0x3e7   :  { %v2691_v20 = vpop.f32.mrb[156].mxu1 }
 0x3e8   :  { %v6736_v52 = vadd.f32 %v8413_v63, %v2691_v20  ;;  %v2693_v40 = vpop.f32.mrb[157].mxu1  ;;  %v3309_v39 = vpack.c.bf16 %v3248_v44, %v3247_v7 }
 0x3e9   :  { %v2694_v46 = vpop.f32.mrb[158].mxu1 }
 0x3ea   :  { %v3045_v56 = vadd.f32 %v6736_v52, %v8433_v2  ;;  %v6737_v47 = vadd.f32 %v8413_v63, %v2694_v46  ;;  %v2696_v41 = vpop.f32.mrb[159].mxu1  ;;  %6558 = vmatprep.mubr.msk.bf16.mxu0 %vm3347_vm1, %v3309_v39 }
 0x3ec   :  { %v3048_v9 = vadd.f32 %v6737_v47, %v8440_v17  ;;  %v3249_v28 = vmax.f32 %v3045_v56, 0.0 }
 0x3ee   :  { %v3250_v25 = vmax.f32 %v3048_v9, 0.0 }
 0x3ef   :  { %v2699_v18 = vpop.f32.mrb[160].mxu1 }
 0x3f0   :  { %v3310_v59 = vpack.c.bf16 %v3250_v25, %v3249_v28  ;;  %v6738_v29 = vadd.f32 %v8413_v63, %v2699_v18  ;;  %v2701_v48 = vpop.f32.mrb[161].mxu1 }
 0x3f1   :  { %v2702_v12 = vpop.f32.mrb[162].mxu1 }
 0x3f2   :  { %v6739_v34 = vadd.f32 %v8413_v63, %v2702_v12  ;;  %v3053_v54 = vadd.f32 %v6738_v29, %v8453_v55  ;;  %v2704_v2 = vpop.f32.mrb[163].mxu1  ;;  %6559 = vmatmul.mubr.msk.bf16.gmra.mrb[116].mxu0 %vm3347_vm1, %v3310_v59 }
 0x3f4   :  { %v3056_v24 = vadd.f32 %v6739_v34, %v8460_v16  ;;  %v3251_v62 = vmax.f32 %v3053_v54, 0.0 }
 0x3f6   :  { %v3252_v49 = vmax.f32 %v3056_v24, 0.0 }
 0x3f7   :  { %v2707_v17 = vpop.f32.mrb[164].mxu1 }
 0x3f8   :  { %v6740_v60 = vadd.f32 %v8413_v63, %v2707_v17  ;;  %v2709_v31 = vpop.f32.mrb[165].mxu1  ;;  %v3311_v38 = vpack.c.bf16 %v3252_v49, %v3251_v62 }
 0x3f9   :  { %v2710_v42 = vpop.f32.mrb[166].mxu1 }
 0x3fa   :  { %v3061_v8 = vadd.f32 %v6740_v60, %v8451_v0  ;;  %v6741_v19 = vadd.f32 %v8413_v63, %v2710_v42  ;;  %v2712_v7 = vpop.f32.mrb[167].mxu1  ;;  %6562 = vmatprep.mubr.msk.bf16.mxu0 %vm3347_vm1, %v3311_v38 }
 0x3fc   :  { %v3064_v55 = vadd.f32 %v6741_v19, %v8458_v58  ;;  %v3253_v44 = vmax.f32 %v3061_v8, 0.0 }
 0x3fe   :  { %v3254_v20 = vmax.f32 %v3064_v55, 0.0 }
 0x3ff   :  { %v2715_v16 = vpop.f32.mrb[168].mxu1 }
 0x400   :  { %v3312_v52 = vpack.c.bf16 %v3254_v20, %v3253_v44  ;;  %v6742_v40 = vadd.f32 %v8413_v63, %v2715_v16  ;;  %v2717_v39 = vpop.f32.mrb[169].mxu1 }
 0x401   :  { %v2718_v46 = vpop.f32.mrb[170].mxu1 }
 0x402   :  { %v6743_v56 = vadd.f32 %v8413_v63, %v2718_v46  ;;  %v3069_v47 = vadd.f32 %v6742_v40, %v8471_v3  ;;  %v2720_v0 = vpop.f32.mrb[171].mxu1  ;;  %6563 = vmatmul.mubr.msk.bf16.gmra.mrb[120].mxu0 %vm3347_vm1, %v3312_v52 }
 0x404   :  { %v3072_v41 = vadd.f32 %v6743_v56, %v8478_v10  ;;  %v3255_v9 = vmax.f32 %v3069_v47, 0.0 }
 0x406   :  { %v3256_v28 = vmax.f32 %v3072_v41, 0.0 }
 0x407   :  { %v2723_v58 = vpop.f32.mrb[172].mxu1 }
 0x408   :  { %v6744_v25 = vadd.f32 %v8413_v63, %v2723_v58  ;;  %v2725_v18 = vpop.f32.mrb[173].mxu1  ;;  %v3313_v59 = vpack.c.bf16 %v3256_v28, %v3255_v9 }
 0x409   :  { %v2726_v29 = vpop.f32.mrb[174].mxu1 }
 0x40a   :  { %v3077_v48 = vadd.f32 %v6744_v25, %v8469_v61  ;;  %v6745_v12 = vadd.f32 %v8413_v63, %v2726_v29  ;;  %v2728_v34 = vpop.f32.mrb[175].mxu1  ;;  %6566 = vmatprep.mubr.msk.bf16.mxu0 %vm3347_vm1, %v3313_v59 }
 0x40c   :  { %v3080_v3 = vadd.f32 %v6745_v12, %v8476_v6  ;;  %v3257_v54 = vmax.f32 %v3077_v48, 0.0 }
 0x40e   :  { %v3258_v2 = vmax.f32 %v3080_v3, 0.0 }
 0x40f   :  { %v2731_v10 = vpop.f32.mrb[176].mxu1 }
 0x410   :  { %v3314_v24 = vpack.c.bf16 %v3258_v2, %v3257_v54  ;;  %v6746_v62 = vadd.f32 %v8413_v63, %v2731_v10  ;;  %v2733_v49 = vpop.f32.mrb[177].mxu1 }
 0x411   :  { %v2734_v17 = vpop.f32.mrb[178].mxu1 }
 0x412   :  { %v6747_v60 = vadd.f32 %v8413_v63, %v2734_v17  ;;  %v3085_v31 = vadd.f32 %v6746_v62, %v8489_v11  ;;  %v2736_v61 = vpop.f32.mrb[179].mxu1  ;;  %6567 = vmatmul.mubr.msk.bf16.gmra.mrb[124].mxu0 %vm3347_vm1, %v3314_v24 }
 0x414   :  { %v3088_v38 = vadd.f32 %v6747_v60, %v8496_v4  ;;  %v3259_v42 = vmax.f32 %v3085_v31, 0.0 }
 0x416   :  { %v3260_v8 = vmax.f32 %v3088_v38, 0.0 }
 0x417   :  { %v2739_v6 = vpop.f32.mrb[180].mxu1 }
 0x418   :  { %v6748_v19 = vadd.f32 %v8413_v63, %v2739_v6  ;;  %v2741_v7 = vpop.f32.mrb[181].mxu1  ;;  %v3315_v55 = vpack.c.bf16 %v3260_v8, %v3259_v42 }
 0x419   :  { %v2742_v44 = vpop.f32.mrb[182].mxu1 }
 0x41a   :  { %v3093_v20 = vadd.f32 %v6748_v19, %v8487_v51  ;;  %v6749_v16 = vadd.f32 %v8413_v63, %v2742_v44  ;;  %v2744_v52 = vpop.f32.mrb[183].mxu1  ;;  %6570 = vmatprep.mubr.msk.bf16.mxu0 %vm3347_vm1, %v3315_v55 }
 0x41c   :  { %v3096_v11 = vadd.f32 %v6749_v16, %v8494_v14  ;;  %v3261_v40 = vmax.f32 %v3093_v20, 0.0 }
 0x41e   :  { %v3262_v39 = vmax.f32 %v3096_v11, 0.0 }
 0x41f   :  { %v2747_v4 = vpop.f32.mrb[184].mxu1 }
 0x420   :  { %v3316_v46 = vpack.c.bf16 %v3262_v39, %v3261_v40  ;;  %v6750_v56 = vadd.f32 %v8413_v63, %v2747_v4  ;;  %v2749_v47 = vpop.f32.mrb[185].mxu1  ;;  %v9793_v39 = vmov 0  }
 0x421   :  { %v2750_v0 = vpop.f32.mrb[186].mxu1 }
 0x422   :  { %v3101_v41 = vadd.f32 %v6750_v56, %v8505_v32  ;;  %v6751_v9 = vadd.f32 %v8413_v63, %v2750_v0  ;;  %v2752_v51 = vpop.f32.mrb[187].mxu1  ;;  %6571 = vmatmul.mubr.msk.bf16.gmra.mrb[128].mxu0 %vm3347_vm1, %v3316_v46 }
 0x424   :  { %v3104_v28 = vadd.f32 %v6751_v9, %v8510_v15  ;;  %v3263_v58 = vmax.f32 %v3101_v41, 0.0 }
 0x426   :  { %v3264_v25 = vmax.f32 %v3104_v28, 0.0 }
 0x427   :  { %v2755_v14 = vpop.f32.mrb[188].mxu1 }
 0x428   :  { %v3317_v18 = vpack.c.bf16 %v3264_v25, %v3263_v58  ;;  %v6752_v59 = vadd.f32 %v8413_v63, %v2755_v14  ;;  %v2757_v29 = vpop.f32.mrb[189].mxu1 }
 0x429   :  { %v2758_v48 = vpop.f32.mrb[190].mxu1 }
 0x42a   :  { %v3109_v12 = vadd.f32 %v6752_v59, %v8500_v13  ;;  %v6753_v34 = vadd.f32 %v8413_v63, %v2758_v48  ;;  %v2760_v32 = vpop.f32.mrb[191].mxu1  ;;  %6574 = vmatprep.mubr.msk.bf16.mxu0 %vm3347_vm1, %v3317_v18 }
 0x42c   :  { %v3112_v3 = vadd.f32 %v6753_v34, %v8507_v23  ;;  %v3265_v54 = vmax.f32 %v3109_v12, 0.0 }
 0x42e   :  { %v3266_v2 = vmax.f32 %v3112_v3, 0.0 }
 0x42f   :  { %v2763_v15 = vpop.f32.mrb[192].mxu1 }
 0x430   :  { %v3318_v10 = vpack.c.bf16 %v3266_v2, %v3265_v54  ;;  %v6754_v24 = vadd.f32 %v8413_v63, %v2763_v15  ;;  %v2765_v62 = vpop.f32.mrb[193].mxu1 }
 0x431   :  { %v2766_v49 = vpop.f32.mrb[194].mxu1 }
 0x432   :  { %v3117_v17 = vadd.f32 %v6754_v24, %v8514_v27  ;;  %v6755_v60 = vadd.f32 %v8413_v63, %v2766_v49  ;;  %v2768_v13 = vpop.f32.mrb[195].mxu1  ;;  %6575 = vmatmul.mubr.msk.bf16.gmra.mrb[132].mxu0 %vm3347_vm1, %v3318_v10 }
 0x434   :  { %v3120_v31 = vadd.f32 %v6755_v60, %v8519_v1  ;;  %v3267_v38 = vmax.f32 %v3117_v17, 0.0 }
 0x435   :  { %v6524_v61 = vpop.f32.mrb[80].mxu0 }
 0x436   :  { %v3268_v23 = vmax.f32 %v3120_v31, 0.0  ;;  %v3502_v42 = vpop.f32.mrb[81].mxu0 }
 0x437   :  { %v2771_v8 = vpop.f32.mrb[196].mxu1  ;;  %v6525_v6 = vpop.f32.mrb[82].mxu0 }
 0x438   :  { %v3319_v19 = vpack.c.bf16 %v3268_v23, %v3267_v38  ;;  %v6756_v7 = vadd.f32 %v8413_v63, %v2771_v8  ;;  %v3822_v55 = vpack.c.bf16 %v6525_v6, %v6524_v61  ;;  %v2773_v44 = vpop.f32.mrb[197].mxu1  ;;  %v3505_v20 = vpop.f32.mrb[83].mxu0 }
 0x439   :  { %v3821_v27 = vpack.c.bf16 %v3505_v20, %v3502_v42  ;;  %v2774_v16 = vpop.f32.mrb[198].mxu1  ;;  %v8682_v44 = vld [vmem:[%s9732_s3] ss:$0 sm:$0xff] }
 0x43a   :  { %v3125_v52 = vadd.f32 %v6756_v7, %v8512_v45  ;;  %v6757_v11 = vadd.f32 %v8413_v63, %v2774_v16  ;;  %v2776_v40 = vpop.f32.mrb[199].mxu1  ;;  %6578 = vmatprep.mubr.msk.bf16.mxu0 %vm3347_vm1, %v3319_v19 }
 0x43b   :  { %3869 = vmatpush1.bf16.msra.mxu0 %v3821_v27 }
 0x43c   :  { %v3128_v1 = vadd.f32 %v6757_v11, %v8516_v50  ;;  %3870 = vmatprep.subr.bf16.mxu0 %v9793_v39  ;;  %v3269_v4 = vmax.f32 %v3125_v52, 0.0 }
 0x43e   :  { %v3270_v46 = vmax.f32 %v3128_v1, 0.0 }
 0x43f   :  { %v2779_v56 = vpop.f32.mrb[200].mxu1  ;;  %3871 = vmatpush1.bf16.msra.mxu0 %v3822_v55 }
 0x440   :  { %v3320_v47 = vpack.c.bf16 %v3270_v46, %v3269_v4  ;;  %v6758_v0 = vadd.f32 %v8413_v63, %v2779_v56  ;;  %v2781_v41 = vpop.f32.mrb[201].mxu1  ;;  %3872 = vmatprep.subr.bf16.mxu0 %v9793_v39 }
 0x441   :  { %v2782_v45 = vpop.f32.mrb[202].mxu1 }
 0x442   :  { %v3133_v9 = vadd.f32 %v6758_v0, %v8526_v35  ;;  %v6759_v51 = vadd.f32 %v8413_v63, %v2782_v45  ;;  %v2784_v28 = vpop.f32.mrb[203].mxu1  ;;  %6579 = vmatmul.mubr.msk.bf16.gmra.mrb[136].mxu0 %vm3347_vm1, %v3320_v47 }
 0x444   :  { %v3136_v50 = vadd.f32 %v6759_v51, %v8531_v30  ;;  %v3271_v25 = vmax.f32 %v3133_v9, 0.0 }
 0x445   :  { %v6528_v58 = vpop.f32.mrb[84].mxu0 }
 0x446   :  { %v3272_v14 = vmax.f32 %v3136_v50, 0.0  ;;  %v3518_v18 = vpop.f32.mrb[85].mxu0 }
 0x447   :  { %v2787_v59 = vpop.f32.mrb[204].mxu1  ;;  %v6529_v29 = vpop.f32.mrb[86].mxu0 }
 0x448   :  { %v3321_v48 = vpack.c.bf16 %v3272_v14, %v3271_v25  ;;  %v6760_v12 = vadd.f32 %v8413_v63, %v2787_v59  ;;  %v3824_v34 = vpack.c.bf16 %v6529_v29, %v6528_v58  ;;  %v2789_v32 = vpop.f32.mrb[205].mxu1  ;;  %v3521_v3 = vpop.f32.mrb[87].mxu0 }
 0x449   :  { %v3823_v35 = vpack.c.bf16 %v3521_v3, %v3518_v18  ;;  %v2790_v54 = vpop.f32.mrb[206].mxu1  ;;  %v9794_v3 = vld [vmem:[#allocation8_spill] sm:$0xff] }
 0x44a   :  { %v3141_v2 = vadd.f32 %v6760_v12, %v8521_v26  ;;  %v6761_v15 = vadd.f32 %v8413_v63, %v2790_v54  ;;  %v2792_v10 = vpop.f32.mrb[207].mxu1  ;;  %6582 = vmatprep.mubr.msk.bf16.mxu0 %vm3347_vm1, %v3321_v48 }
 0x44b   :  { %3873 = vmatpush1.bf16.msra.mxu0 %v3823_v35 }
 0x44c   :  { %v3144_v30 = vadd.f32 %v6761_v15, %v8528_v37  ;;  %3874 = vmatprep.subr.bf16.mxu0 %v9793_v39  ;;  %v3273_v24 = vmax.f32 %v3141_v2, 0.0 }
 0x44e   :  { %v3274_v62 = vmax.f32 %v3144_v30, 0.0 }
 0x44f   :  { %v2795_v49 = vpop.f32.mrb[208].mxu1  ;;  %3875 = vmatpush1.bf16.msra.mxu0 %v3824_v34 }
 0x450   :  { %v3322_v17 = vpack.c.bf16 %v3274_v62, %v3273_v24  ;;  %v6762_v60 = vadd.f32 %v8413_v63, %v2795_v49  ;;  %v2797_v13 = vpop.f32.mrb[209].mxu1  ;;  %3876 = vmatprep.subr.bf16.mxu0 %v9793_v39 }
 0x451   :  { %v2798_v26 = vpop.f32.mrb[210].mxu1 }
 0x452   :  { %v3149_v31 = vadd.f32 %v6762_v60, %v8535_v57  ;;  %v6763_v61 = vadd.f32 %v8413_v63, %v2798_v26  ;;  %v2800_v38 = vpop.f32.mrb[211].mxu1  ;;  %6583 = vmatmul.mubr.msk.bf16.gmra.mrb[140].mxu0 %vm3347_vm1, %v3322_v17 }
 0x454   :  { %v3152_v37 = vadd.f32 %v6763_v61, %v8540_v53  ;;  %v3275_v42 = vmax.f32 %v3149_v31, 0.0 }
 0x455   :  { %v6532_v23 = vpop.f32.mrb[88].mxu0 }
 0x456   :  { %v3276_v8 = vmax.f32 %v3152_v37, 0.0  ;;  %v3534_v6 = vpop.f32.mrb[89].mxu0 }
 0x457   :  { %v2803_v19 = vpop.f32.mrb[212].mxu1  ;;  %v6533_v7 = vpop.f32.mrb[90].mxu0 }
 0x458   :  { %v3323_v55 = vpack.c.bf16 %v3276_v8, %v3275_v42  ;;  %v6764_v57 = vadd.f32 %v8682_v44, %v2803_v19  ;;  %v3826_v63 = vpack.c.bf16 %v6533_v7, %v6532_v23  ;;  %v2805_v20 = vpop.f32.mrb[213].mxu1  ;;  %v3537_v27 = vpop.f32.mrb[91].mxu0 }
 0x459   :  { %v3825_v16 = vpack.c.bf16 %v3537_v27, %v3534_v6  ;;  %v2806_v52 = vpop.f32.mrb[214].mxu1  ;;  %v9796_v27 = vld [vmem:[#allocation10_spill] sm:$0xff] }
 0x45a   :  { %v3157_v53 = vadd.f32 %v6764_v57, %v8533_v21  ;;  %v6765_v11 = vadd.f32 %v8682_v44, %v2806_v52  ;;  %v2808_v40 = vpop.f32.mrb[215].mxu1  ;;  %6586 = vmatprep.mubr.msk.bf16.mxu0 %vm3347_vm1, %v3323_v55 }
 0x45b   :  { %3877 = vmatpush1.bf16.msra.mxu0 %v3825_v16 }
 0x45c   :  { %v3160_v1 = vadd.f32 %v6765_v11, %v8537_v43  ;;  %3878 = vmatprep.subr.bf16.mxu0 %v9793_v39  ;;  %v3277_v4 = vmax.f32 %v3157_v53, 0.0 }
 0x45e   :  { %v3278_v46 = vmax.f32 %v3160_v1, 0.0 }
 0x45f   :  { %v2811_v56 = vpop.f32.mrb[216].mxu1  ;;  %3879 = vmatpush1.bf16.msra.mxu0 %v3826_v63 }
 0x460   :  { %v3324_v47 = vpack.c.bf16 %v3278_v46, %v3277_v4  ;;  %v6766_v0 = vadd.f32 %v8682_v44, %v2811_v56  ;;  %v2813_v41 = vpop.f32.mrb[217].mxu1  ;;  %3880 = vmatprep.subr.bf16.mxu0 %v9793_v39 }
 0x461   :  { %v2814_v21 = vpop.f32.mrb[218].mxu1  ;;  %v9798_v41 = vld [vmem:[#allocation13_spill] sm:$0xff] }
 0x462   :  { %v3165_v45 = vadd.f32 %v6766_v0, %v8547_v33  ;;  %v6767_v9 = vadd.f32 %v8682_v44, %v2814_v21  ;;  %v2816_v51 = vpop.f32.mrb[219].mxu1  ;;  %6587 = vmatmul.mubr.msk.bf16.gmra.mrb[144].mxu0 %vm3347_vm1, %v3324_v47 }
 0x463   :  { %v9799_v51 = vld [vmem:[#allocation15_spill] sm:$0xff] }
 0x464   :  { %v3168_v43 = vadd.f32 %v6767_v9, %v8552_v5  ;;  %v3279_v50 = vmax.f32 %v3165_v45, 0.0  ;;  %v9795_v5 = vld [vmem:[#allocation9_spill] sm:$0xff] }
 0x465   :  { %v6536_v28 = vpop.f32.mrb[92].mxu0 }
 0x466   :  { %v3280_v58 = vmax.f32 %v3168_v43, 0.0  ;;  %v3550_v25 = vpop.f32.mrb[93].mxu0 }
 0x467   :  { %v2819_v14 = vpop.f32.mrb[220].mxu1  ;;  %v6537_v18 = vpop.f32.mrb[94].mxu0 }
 0x468   :  { %v3325_v59 = vpack.c.bf16 %v3280_v58, %v3279_v50  ;;  %v6768_v29 = vadd.f32 %v8682_v44, %v2819_v14  ;;  %v3828_v48 = vpack.c.bf16 %v6537_v18, %v6536_v28  ;;  %v2821_v12 = vpop.f32.mrb[221].mxu1  ;;  %v3553_v34 = vpop.f32.mrb[95].mxu0 }
 0x469   :  { %v3827_v33 = vpack.c.bf16 %v3553_v34, %v3550_v25  ;;  %v2822_v32 = vpop.f32.mrb[222].mxu1 }
 0x46a   :  { %v3173_v35 = vadd.f32 %v6768_v29, %v9794_v3  ;;  %v6769_v54 = vadd.f32 %v8682_v44, %v2822_v32  ;;  %v2824_v2 = vpop.f32.mrb[223].mxu1  ;;  %6590 = vmatprep.mubr.msk.bf16.mxu0 %vm3347_vm1, %v3325_v59  ;;  %v9800_v3 = vld [vmem:[#allocation12_spill] sm:$0xff] }
 0x46b   :  { %3881 = vmatpush1.bf16.msra.mxu0 %v3827_v33 }
 0x46c   :  { %v3176_v15 = vadd.f32 %v6769_v54, %v9795_v5  ;;  %3882 = vmatprep.subr.bf16.mxu0 %v9793_v39  ;;  %v3281_v10 = vmax.f32 %v3173_v35, 0.0  ;;  %v9801_v5 = vld [vmem:[#allocation14_spill] sm:$0xff] }
 0x46e   :  { %v3282_v30 = vmax.f32 %v3176_v15, 0.0 }
 0x46f   :  { %v2827_v24 = vpop.f32.mrb[224].mxu1  ;;  %3883 = vmatpush1.bf16.msra.mxu0 %v3828_v48 }
 0x470   :  { %v3326_v62 = vpack.c.bf16 %v3282_v30, %v3281_v10  ;;  %v6770_v49 = vadd.f32 %v8682_v44, %v2827_v24  ;;  %v2829_v17 = vpop.f32.mrb[225].mxu1  ;;  %3884 = vmatprep.subr.bf16.mxu0 %v9793_v39 }
 0x471   :  { %v2830_v60 = vpop.f32.mrb[226].mxu1 }
 0x472   :  { %v3181_v13 = vadd.f32 %v6770_v49, %v8556_v36  ;;  %v6771_v26 = vadd.f32 %v8682_v44, %v2830_v60  ;;  %v2832_v31 = vpop.f32.mrb[227].mxu1  ;;  %6591 = vmatmul.mubr.msk.bf16.gmra.mrb[148].mxu0 %vm3347_vm1, %v3326_v62  ;;  %v7833_v62 = vld [vmem:[#allocation2 + $0x4] ss:$20 sps:$4 sm:$0xff]  }
 0x474   :  { %v3184_v61 = vadd.f32 %v6771_v26, %v8561_v22  ;;  %v3283_v37 = vmax.f32 %v3181_v13, 0.0  ;;  %v9797_v22 = vld [vmem:[#allocation11_spill] sm:$0xff] }
 0x475   :  { %v6540_v38 = vpop.f32.mrb[96].mxu0 }
 0x476   :  { %v3284_v23 = vmax.f32 %v3184_v61, 0.0  ;;  %v3566_v42 = vpop.f32.mrb[97].mxu0 }
 0x477   :  { %v2835_v8 = vpop.f32.mrb[228].mxu1  ;;  %v6541_v6 = vpop.f32.mrb[98].mxu0 }
 0x478   :  { %v3327_v19 = vpack.c.bf16 %v3284_v23, %v3283_v37  ;;  %v6772_v7 = vadd.f32 %v8682_v44, %v2835_v8  ;;  %v3830_v55 = vpack.c.bf16 %v6541_v6, %v6540_v38  ;;  %v2837_v57 = vpop.f32.mrb[229].mxu1  ;;  %v3569_v63 = vpop.f32.mrb[99].mxu0  ;;  %v7834_v8 = vld [vmem:[#allocation2] ss:$20 sps:$4 sm:$0xff]  }
 0x479   :  { %v3829_v36 = vpack.c.bf16 %v3569_v63, %v3566_v42  ;;  %v2838_v20 = vpop.f32.mrb[230].mxu1  ;;  %v7835_v6 = vld [vmem:[#allocation2 + $0x2c] ss:$20 sps:$4 sm:$0xff]  }
 0x47a   :  { %v3189_v16 = vadd.f32 %v6772_v7, %v9796_v27  ;;  %v6773_v52 = vadd.f32 %v8682_v44, %v2838_v20  ;;  %v2840_v53 = vpop.f32.mrb[231].mxu1  ;;  %6594 = vmatprep.mubr.msk.bf16.mxu0 %vm3347_vm1, %v3327_v19  ;;  %v7836_v20 = vld [vmem:[#allocation2 + $0x28] ss:$20 sps:$4 sm:$0xff]  }
 0x47b   :  { %3885 = vmatpush1.bf16.msra.mxu0 %v3829_v36  ;;  %v7837_v27 = vld [vmem:[#allocation2 + $0x54] ss:$20 sps:$4 sm:$0xff]  }
 0x47c   :  { %v3192_v11 = vadd.f32 %v6773_v52, %v9797_v22  ;;  %3886 = vmatprep.subr.bf16.mxu0 %v9793_v39  ;;  %v3285_v40 = vmax.f32 %v3189_v16, 0.0  ;;  %v7838_v16 = vld [vmem:[#allocation2 + $0x50] ss:$20 sps:$4 sm:$0xff]  }
 0x47d   :  { %v7839_v52 = vld [vmem:[#allocation2 + $0x7c] ss:$20 sps:$4 sm:$0xff]  }
 0x47e   :  { %v3286_v1 = vmax.f32 %v3192_v11, 0.0 }
 0x47f   :  { %v2843_v4 = vpop.f32.mrb[232].mxu1  ;;  %3887 = vmatpush1.bf16.msra.mxu0 %v3830_v55 }
 0x480   :  { %v3328_v46 = vpack.c.bf16 %v3286_v1, %v3285_v40  ;;  %v6774_v56 = vadd.f32 %v8682_v44, %v2843_v4  ;;  %v2845_v47 = vpop.f32.mrb[233].mxu1  ;;  %3888 = vmatprep.subr.bf16.mxu0 %v9793_v39 }
 0x481   :  { %v2846_v0 = vpop.f32.mrb[234].mxu1  ;;  %v7842_v47 = vld [vmem:[#allocation2 + $0xa0] ss:$20 sps:$4 sm:$0xff]  }
 0x482   :  { %v3197_v21 = vadd.f32 %v6774_v56, %v9798_v41  ;;  %v6775_v45 = vadd.f32 %v8682_v44, %v2846_v0  ;;  %v2848_v9 = vpop.f32.mrb[235].mxu1  ;;  %6595 = vmatmul.mubr.msk.bf16.gmra.mrb[152].mxu0 %vm3347_vm1, %v3328_v46  ;;  %v7840_v46 = vld [vmem:[#allocation2 + $0x78] ss:$20 sps:$4 sm:$0xff]  }
 0x483   :  { %v7841_v56 = vld [vmem:[#allocation2 + $0xa4] ss:$20 sps:$4 sm:$0xff]   ;;  %v7843_v0 = vld [vmem:[#allocation2 + $0xcc] ss:$20 sps:$4 sm:$0xff]  }
 0x484   :  { %v3200_v43 = vadd.f32 %v6775_v45, %v9799_v51  ;;  %v3287_v50 = vmax.f32 %v3197_v21, 0.0 }
 0x485   :  { %v6544_v28 = vpop.f32.mrb[100].mxu0 }
 0x486   :  { %v3288_v58 = vmax.f32 %v3200_v43, 0.0  ;;  %v3582_v25 = vpop.f32.mrb[101].mxu0 }
 0x487   :  { %v2851_v14 = vpop.f32.mrb[236].mxu1  ;;  %v6545_v18 = vpop.f32.mrb[102].mxu0 }
 0x488   :  { %v3329_v59 = vpack.c.bf16 %v3288_v58, %v3287_v50  ;;  %v6776_v29 = vadd.f32 %v8682_v44, %v2851_v14  ;;  %v3832_v48 = vpack.c.bf16 %v6545_v18, %v6544_v28  ;;  %v2853_v12 = vpop.f32.mrb[237].mxu1  ;;  %v3585_v34 = vpop.f32.mrb[103].mxu0  ;;  %v7844_v28 = vld [vmem:[#allocation2 + $0xc8] ss:$20 sps:$4 sm:$0xff]   ;;  %v7846_v58 = vld [vmem:[#allocation2 + $0xf0] ss:$20 sps:$4 sm:$0xff]  }
 0x489   :  { %v3831_v33 = vpack.c.bf16 %v3585_v34, %v3582_v25  ;;  %v2854_v32 = vpop.f32.mrb[238].mxu1  ;;  %v7845_v50 = vld [vmem:[#allocation2 + $0xf4] ss:$20 sps:$4 sm:$0xff]   ;;  %v7847_v25 = vld [vmem:[#allocation2 + $0x11c] ss:$20 sps:$4 sm:$0xff]  }
 0x48a   :  { %v3205_v35 = vadd.f32 %v6776_v29, %v9800_v3  ;;  %v6777_v54 = vadd.f32 %v8682_v44, %v2854_v32  ;;  %v2856_v2 = vpop.f32.mrb[239].mxu1  ;;  %6598 = vmatprep.mubr.msk.bf16.mxu0 %vm3347_vm1, %v3329_v59  ;;  %v7848_v34 = vld [vmem:[#allocation2 + $0x118] ss:$20 sps:$4 sm:$0xff]   ;;  %v7850_v32 = vld [vmem:[#allocation2 + $0x140] ss:$20 sps:$4 sm:$0xff]  }
 0x48b   :  { %3889 = vmatpush1.bf16.msra.mxu0 %v3831_v33  ;;  %v7849_v33 = vld [vmem:[#allocation2 + $0x144] ss:$20 sps:$4 sm:$0xff]   ;;  %v7851_v3 = vld [vmem:[#allocation2 + $0x16c] ss:$20 sps:$4 sm:$0xff]  }
 0x48c   :  { %v3208_v15 = vadd.f32 %v6777_v54, %v9801_v5  ;;  %3890 = vmatprep.subr.bf16.mxu0 %v9793_v39  ;;  %v3289_v10 = vmax.f32 %v3205_v35, 0.0 }
 0x48e   :  { %v3290_v30 = vmax.f32 %v3208_v15, 0.0 }
 0x48f   :  { %3891 = vmatpush1.bf16.msra.mxu0 %v3832_v48 }
 0x490   :  { %v3330_v24 = vpack.c.bf16 %v3290_v30, %v3289_v10  ;;  %3892 = vmatprep.subr.bf16.mxu0 %v9793_v39  ;;  %v7852_v30 = vld [vmem:[#allocation2 + $0x168] ss:$20 sps:$4 sm:$0xff]  }
 0x492   :  { %6599 = vmatmul.mubr.msk.bf16.gmra.mrb[156].mxu0 %vm3347_vm1, %v3330_v24  ;;  %v7853_v24 = vld [vmem:[#allocation2 + $0x194] ss:$20 sps:$4 sm:$0xff]  }
 0x493   :  { %3900 = vmatprep.mubr.bf16.mxu0 %v7833_v62  ;;  %v7854_v62 = vld [vmem:[#allocation2 + $0x190] ss:$20 sps:$4 sm:$0xff]  }
 0x495   :  { %v6548_v49 = vpop.f32.mrb[104].mxu0 }
 0x496   :  { %v3598_v44 = vpop.f32.mrb[105].mxu0 }
 0x497   :  { %v6549_v17 = vpop.f32.mrb[106].mxu0 }
 0x498   :  { %v3834_v60 = vpack.c.bf16 %v6549_v17, %v6548_v49  ;;  %v3601_v13 = vpop.f32.mrb[107].mxu0  ;;  %v7855_v49 = vld [vmem:[#allocation2 + $0x1bc] ss:$20 sps:$4 sm:$0xff]  }
 0x499   :  { %v3833_v26 = vpack.c.bf16 %v3601_v13, %v3598_v44 }
 0x49b   :  { %3893 = vmatpush1.bf16.msra.mxu0 %v3833_v26 }
 0x49c   :  { %3894 = vmatprep.subr.bf16.mxu0 %v9793_v39 }
 0x49f   :  { %3895 = vmatpush1.bf16.msra.mxu0 %v3834_v60 }
 0x4a0   :  { %3896 = vmatprep.subr.bf16.mxu0 %v9793_v39 }
 0x4a5   :  { %v6552_v31 = vpop.f32.mrb[108].mxu0 }
 0x4a6   :  { %v3614_v61 = vpop.f32.mrb[109].mxu0 }
 0x4a7   :  { %v6553_v38 = vpop.f32.mrb[110].mxu0 }
 0x4a8   :  { %v3836_v37 = vpack.c.bf16 %v6553_v38, %v6552_v31  ;;  %v3617_v23 = vpop.f32.mrb[111].mxu0  ;;  %v7857_v38 = vld [vmem:[#allocation2 + $0x1e4] ss:$20 sps:$4 sm:$0xff]  }
 0x4a9   :  { %v3835_v42 = vpack.c.bf16 %v3617_v23, %v3614_v61  ;;  %v7856_v61 = vld [vmem:[#allocation2 + $0x1b8] ss:$20 sps:$4 sm:$0xff]  }
 0x4aa   :  { %v7859_v23 = vld [vmem:[#allocation2 + $0x20c] ss:$20 sps:$4 sm:$0xff]  }
 0x4ab   :  { %3897 = vmatpush1.bf16.msra.mxu0 %v3835_v42 }
 0x4ac   :  { %3898 = vmatprep.subr.bf16.mxu0 %v9793_v39 }
 0x4af   :  { %3899 = vmatpush1.bf16.msra.mxu0 %v3836_v37  ;;  %v7858_v37 = vld [vmem:[#allocation2 + $0x1e0] ss:$20 sps:$4 sm:$0xff]  }
 0x4b0   :  { %4221 = vmatprep.subr.bf16.mxu0 %v9793_v39 }
 0x4b2   :  { %3901 = vmatmul.mubr.bf16.vlgmr.msra.gmra.mrb[160].mxu0 %v7834_v8 }
 0x4b3   :  { %3908 = vmatprep.mubr.bf16.mxu0 %v7835_v6 }
 0x4b5   :  { %v6556_v19 = vpop.f32.mrb[112].mxu0 }
 0x4b6   :  { %v3630_v7 = vpop.f32.mrb[113].mxu0 }
 0x4b7   :  { %v6557_v55 = vpop.f32.mrb[114].mxu0 }
 0x4b8   :  { %v3838_v57 = vpack.c.bf16 %v6557_v55, %v6556_v19  ;;  %v3633_v63 = vpop.f32.mrb[115].mxu0 }
 0x4b9   :  { %v3837_v36 = vpack.c.bf16 %v3633_v63, %v3630_v7  ;;  %v7861_v63 = vld [vmem:[#allocation2 + $0x234] ss:$20 sps:$4 sm:$0xff]  }
 0x4ba   :  { %3909 = vmatmul.mubr.bf16.gmra.mrb[164].mxu0 %v7836_v20  ;;  %v7863_v20 = vld [vmem:[#allocation2 + $0x25c] ss:$20 sps:$4 sm:$0xff]  }
 0x4bb   :  { %4222 = vmatpush1.bf16.msra.mxu0 %v3837_v36  ;;  %3916 = vmatprep.mubr.bf16.mxu0 %v7837_v27  ;;  %v7862_v36 = vld [vmem:[#allocation2 + $0x230] ss:$20 sps:$4 sm:$0xff]  }
 0x4bc   :  { %4223 = vmatprep.subr.bf16.mxu0 %v9793_v39 }
 0x4bf   :  { %4224 = vmatpush1.bf16.msra.mxu0 %v3838_v57  ;;  %v7860_v57 = vld [vmem:[#allocation2 + $0x208] ss:$20 sps:$4 sm:$0xff]  }
 0x4c0   :  { %4225 = vmatprep.subr.bf16.mxu0 %v9793_v39 }
 0x4c2   :  { %3917 = vmatmul.mubr.bf16.gmra.mrb[168].mxu0 %v7838_v16 }
 0x4c3   :  { %3924 = vmatprep.mubr.bf16.mxu0 %v7839_v52 }
 0x4c5   :  { %v6560_v53 = vpop.f32.mrb[116].mxu0 }
 0x4c6   :  { %v3646_v22 = vpop.f32.mrb[117].mxu0 }
 0x4c7   :  { %v6561_v11 = vpop.f32.mrb[118].mxu0 }
 0x4c8   :  { %v3840_v40 = vpack.c.bf16 %v6561_v11, %v6560_v53  ;;  %v3649_v1 = vpop.f32.mrb[119].mxu0 }
 0x4c9   :  { %v3839_v4 = vpack.c.bf16 %v3649_v1, %v3646_v22  ;;  %v7865_v1 = vld [vmem:[#allocation2 + $0x284] ss:$20 sps:$4 sm:$0xff]  }
 0x4ca   :  { %3925 = vmatmul.mubr.bf16.gmra.mrb[172].mxu0 %v7840_v46  ;;  %v7867_v46 = vld [vmem:[#allocation2 + $0x2ac] ss:$20 sps:$4 sm:$0xff]  }
 0x4cb   :  { %4226 = vmatpush1.bf16.msra.mxu0 %v3839_v4  ;;  %3932 = vmatprep.mubr.bf16.mxu0 %v7841_v56  ;;  %v7866_v4 = vld [vmem:[#allocation2 + $0x280] ss:$20 sps:$4 sm:$0xff]  }
 0x4cc   :  { %4227 = vmatprep.subr.bf16.mxu0 %v9793_v39 }
 0x4cf   :  { %4228 = vmatpush1.bf16.msra.mxu0 %v3840_v40  ;;  %v7864_v40 = vld [vmem:[#allocation2 + $0x258] ss:$20 sps:$4 sm:$0xff]  }
 0x4d0   :  { %4229 = vmatprep.subr.bf16.mxu0 %v9793_v39 }
 0x4d2   :  { %3933 = vmatmul.mubr.bf16.gmra.mrb[176].mxu0 %v7842_v47 }
 0x4d3   :  { %3940 = vmatprep.mubr.bf16.mxu0 %v7843_v0 }
 0x4d5   :  { %v6564_v41 = vpop.f32.mrb[120].mxu0 }
 0x4d6   :  { %v3662_v21 = vpop.f32.mrb[121].mxu0 }
 0x4d7   :  { %v6565_v45 = vpop.f32.mrb[122].mxu0 }
 0x4d8   :  { %v3842_v9 = vpack.c.bf16 %v6565_v45, %v6564_v41  ;;  %v3665_v51 = vpop.f32.mrb[123].mxu0 }
 0x4d9   :  { %v3841_v43 = vpack.c.bf16 %v3665_v51, %v3662_v21  ;;  %v7869_v51 = vld [vmem:[#allocation2 + $0x2d4] ss:$20 sps:$4 sm:$0xff]  }
 0x4da   :  { %3941 = vmatmul.mubr.bf16.gmra.mrb[180].mxu0 %v7844_v28 }
 0x4db   :  { %4230 = vmatpush1.bf16.msra.mxu0 %v3841_v43  ;;  %3948 = vmatprep.mubr.bf16.mxu0 %v7845_v50  ;;  %v7871_v43 = vld [vmem:[#allocation2 + $0x2fc] ss:$20 sps:$4 sm:$0xff]  }
 0x4dc   :  { %4231 = vmatprep.subr.bf16.mxu0 %v9793_v39 }
 0x4df   :  { %4232 = vmatpush1.bf16.msra.mxu0 %v3842_v9  ;;  %v7868_v9 = vld [vmem:[#allocation2 + $0x2a8] ss:$20 sps:$4 sm:$0xff]  }
 0x4e0   :  { %4233 = vmatprep.subr.bf16.mxu0 %v9793_v39 }
 0x4e2   :  { %3949 = vmatmul.mubr.bf16.gmra.mrb[184].mxu0 %v7846_v58 }
 0x4e3   :  { %3956 = vmatprep.mubr.bf16.mxu0 %v7847_v25 }
 0x4e5   :  { %v6568_v14 = vpop.f32.mrb[124].mxu0 }
 0x4e6   :  { %v3678_v18 = vpop.f32.mrb[125].mxu0 }
 0x4e7   :  { %v6569_v59 = vpop.f32.mrb[126].mxu0 }
 0x4e8   :  { %v3844_v29 = vpack.c.bf16 %v6569_v59, %v6568_v14  ;;  %v3681_v48 = vpop.f32.mrb[127].mxu0  ;;  %v7872_v59 = vld [vmem:[#allocation2 + $0x2f8] ss:$20 sps:$4 sm:$0xff]  }
 0x4e9   :  { %v3843_v12 = vpack.c.bf16 %v3681_v48, %v3678_v18  ;;  %v7874_v48 = vld [vmem:[#allocation2 + $0x320] ss:$20 sps:$4 sm:$0xff]  }
 0x4ea   :  { %3957 = vmatmul.mubr.bf16.gmra.mrb[188].mxu0 %v7848_v34 }
 0x4eb   :  { %4234 = vmatpush1.bf16.msra.mxu0 %v3843_v12  ;;  %3964 = vmatprep.mubr.bf16.mxu0 %v7849_v33  ;;  %v7875_v12 = vld [vmem:[#allocation2 + $0x34c] ss:$20 sps:$4 sm:$0xff]  }
 0x4ec   :  { %4235 = vmatprep.subr.bf16.mxu0 %v9793_v39 }
 0x4ef   :  { %4236 = vmatpush1.bf16.msra.mxu0 %v3844_v29  ;;  %v7873_v29 = vld [vmem:[#allocation2 + $0x324] ss:$20 sps:$4 sm:$0xff]  }
 0x4f0   :  { %4237 = vmatprep.subr.bf16.mxu0 %v9793_v39 }
 0x4f2   :  { %3965 = vmatmul.mubr.bf16.gmra.mrb[192].mxu0 %v7850_v32 }
 0x4f3   :  { %3972 = vmatprep.mubr.bf16.mxu0 %v7851_v3 }
 0x4f5   :  { %v6572_v35 = vpop.f32.mrb[128].mxu0 }
 0x4f6   :  { %v3694_v54 = vpop.f32.mrb[129].mxu0 }
 0x4f7   :  { %v6573_v2 = vpop.f32.mrb[130].mxu0 }
 0x4f8   :  { %v3846_v5 = vpack.c.bf16 %v6573_v2, %v6572_v35  ;;  %v3697_v15 = vpop.f32.mrb[131].mxu0  ;;  %v7876_v2 = vld [vmem:[#allocation2 + $0x348] ss:$20 sps:$4 sm:$0xff]  }
 0x4f9   :  { %v3845_v10 = vpack.c.bf16 %v3697_v15, %v3694_v54  ;;  %v7878_v15 = vld [vmem:[#allocation2 + $0x370] ss:$20 sps:$4 sm:$0xff]  }
 0x4fa   :  { %3973 = vmatmul.mubr.bf16.gmra.mrb[196].mxu0 %v7852_v30 }
 0x4fb   :  { %4238 = vmatpush1.bf16.msra.mxu0 %v3845_v10  ;;  %3980 = vmatprep.mubr.bf16.mxu0 %v7853_v24  ;;  %v7879_v10 = vld [vmem:[#allocation2 + $0x39c] ss:$20 sps:$4 sm:$0xff]  }
 0x4fc   :  { %4239 = vmatprep.subr.bf16.mxu0 %v9793_v39 }
 0x4ff   :  { %4240 = vmatpush1.bf16.msra.mxu0 %v3846_v5  ;;  %v7877_v5 = vld [vmem:[#allocation2 + $0x374] ss:$20 sps:$4 sm:$0xff]  }
 0x500   :  { %4241 = vmatprep.subr.bf16.mxu0 %v9793_v39 }
 0x502   :  { %3981 = vmatmul.mubr.bf16.gmra.mrb[200].mxu0 %v7854_v62 }
 0x503   :  { %3988 = vmatprep.mubr.bf16.mxu0 %v7855_v49 }
 0x505   :  { %v6576_v44 = vpop.f32.mrb[132].mxu0 }
 0x506   :  { %v3710_v17 = vpop.f32.mrb[133].mxu0 }
 0x507   :  { %v6577_v60 = vpop.f32.mrb[134].mxu0 }
 0x508   :  { %v3848_v13 = vpack.c.bf16 %v6577_v60, %v6576_v44  ;;  %v3713_v26 = vpop.f32.mrb[135].mxu0  ;;  %v7880_v60 = vld [vmem:[#allocation2 + $0x398] ss:$20 sps:$4 sm:$0xff]  }
 0x509   :  { %v3847_v31 = vpack.c.bf16 %v3713_v26, %v3710_v17  ;;  %v7882_v26 = vld [vmem:[#allocation2 + $0x3c0] ss:$20 sps:$4 sm:$0xff]  }
 0x50a   :  { %3989 = vmatmul.mubr.bf16.gmra.mrb[204].mxu0 %v7856_v61  ;;  %v7884_v61 = vld [vmem:[#allocation2 + $0x38] ss:$20 sps:$4 sm:$0xff]  }
 0x50b   :  { %4242 = vmatpush1.bf16.msra.mxu0 %v3847_v31  ;;  %3996 = vmatprep.mubr.bf16.mxu0 %v7857_v38  ;;  %v7883_v31 = vld [vmem:[#allocation2 + $0x3ec] ss:$20 sps:$4 sm:$0xff]  }
 0x50c   :  { %4243 = vmatprep.subr.bf16.mxu0 %v9793_v39  ;;  %v7885_v38 = vld [vmem:[#allocation2 + $0x60] ss:$20 sps:$4 sm:$0xff]  }
 0x50f   :  { %4244 = vmatpush1.bf16.msra.mxu0 %v3848_v13  ;;  %v7881_v13 = vld [vmem:[#allocation2 + $0x3c4] ss:$20 sps:$4 sm:$0xff]  }
 0x510   :  { %4245 = vmatprep.subr.bf16.mxu0 %v9793_v39 }
 0x512   :  { %3997 = vmatmul.mubr.bf16.gmra.mrb[208].mxu0 %v7858_v37  ;;  %v7886_v37 = vld [vmem:[#allocation2 + $0x3e8] ss:$20 sps:$4 sm:$0xff]  }
 0x513   :  { %4004 = vmatprep.mubr.bf16.mxu0 %v7859_v23  ;;  %v7887_v23 = vld [vmem:[#allocation2 + $0x414] ss:$20 sps:$4 sm:$0xff]  }
 0x515   :  { %v6580_v42 = vpop.f32.mrb[136].mxu0 }
 0x516   :  { %v3726_v8 = vpop.f32.mrb[137].mxu0 }
 0x517   :  { %v6581_v6 = vpop.f32.mrb[138].mxu0 }
 0x518   :  { %v3850_v19 = vpack.c.bf16 %v6581_v6, %v6580_v42  ;;  %v3729_v7 = vpop.f32.mrb[139].mxu0  ;;  %v7888_v42 = vld [vmem:[#allocation2 + $0x88] ss:$20 sps:$4 sm:$0xff]   ;;  %v7890_v6 = vld [vmem:[#allocation2 + $0x410] ss:$20 sps:$4 sm:$0xff]  }
 0x519   :  { %v3849_v55 = vpack.c.bf16 %v3729_v7, %v3726_v8  ;;  %v7889_v8 = vld [vmem:[#allocation2 + $0xb0] ss:$20 sps:$4 sm:$0xff]   ;;  %v7892_v7 = vld [vmem:[#allocation2 + $0xd8] ss:$20 sps:$4 sm:$0xff]  }
 0x51a   :  { %4005 = vmatmul.mubr.bf16.gmra.mrb[212].mxu0 %v7860_v57  ;;  %v7894_v57 = vld [vmem:[#allocation2 + $0x438] ss:$20 sps:$4 sm:$0xff]  }
 0x51b   :  { %4246 = vmatpush1.bf16.msra.mxu0 %v3849_v55  ;;  %4012 = vmatprep.mubr.bf16.mxu0 %v7861_v63  ;;  %v7893_v55 = vld [vmem:[#allocation2 + $0x100] ss:$20 sps:$4 sm:$0xff]   ;;  %v7895_v63 = vld [vmem:[#allocation2 + $0x464] ss:$20 sps:$4 sm:$0xff]  }
 0x51c   :  { %4247 = vmatprep.subr.bf16.mxu0 %v9793_v39 }
 0x51f   :  { %4248 = vmatpush1.bf16.msra.mxu0 %v3850_v19  ;;  %v7891_v19 = vld [vmem:[#allocation2 + $0x43c] ss:$20 sps:$4 sm:$0xff]  }
 0x520   :  { %4249 = vmatprep.subr.bf16.mxu0 %v9793_v39 }
 0x522   :  { %4013 = vmatmul.mubr.bf16.gmra.mrb[216].mxu0 %v7862_v36  ;;  %v7896_v36 = vld [vmem:[#allocation2 + $0x128] ss:$20 sps:$4 sm:$0xff]  }
 0x523   :  { %4020 = vmatprep.mubr.bf16.mxu0 %v7863_v20  ;;  %v7897_v20 = vld [vmem:[#allocation2 + $0x150] ss:$20 sps:$4 sm:$0xff]  }
 0x525   :  { %v6584_v27 = vpop.f32.mrb[140].mxu0 }
 0x526   :  { %v3742_v16 = vpop.f32.mrb[141].mxu0 }
 0x527   :  { %v6585_v52 = vpop.f32.mrb[142].mxu0 }
 0x528   :  { %v3852_v53 = vpack.c.bf16 %v6585_v52, %v6584_v27  ;;  %v3745_v22 = vpop.f32.mrb[143].mxu0  ;;  %v7898_v27 = vld [vmem:[#allocation2 + $0x460] ss:$20 sps:$4 sm:$0xff]   ;;  %v7900_v52 = vld [vmem:[#allocation2 + $0x178] ss:$20 sps:$4 sm:$0xff]  }
 0x529   :  { %v3851_v11 = vpack.c.bf16 %v3745_v22, %v3742_v16  ;;  %v7899_v16 = vld [vmem:[#allocation2 + $0x48c] ss:$20 sps:$4 sm:$0xff]   ;;  %v7902_v22 = vld [vmem:[#allocation2 + $0x488] ss:$20 sps:$4 sm:$0xff]  }
 0x52a   :  { %4021 = vmatmul.mubr.bf16.gmra.mrb[220].mxu0 %v7864_v40  ;;  %v7904_v40 = vld [vmem:[#allocation2 + $0x1c8] ss:$20 sps:$4 sm:$0xff]  }
 0x52b   :  { %4250 = vmatpush1.bf16.msra.mxu0 %v3851_v11  ;;  %4028 = vmatprep.mubr.bf16.mxu0 %v7865_v1  ;;  %v7903_v11 = vld [vmem:[#allocation2 + $0x4b4] ss:$20 sps:$4 sm:$0xff]   ;;  %v7905_v1 = vld [vmem:[#allocation2 + $0x1f0] ss:$20 sps:$4 sm:$0xff]  }
 0x52c   :  { %4251 = vmatprep.subr.bf16.mxu0 %v9793_v39  ;;  %v7870_v39 = vld [vmem:[#allocation2 + $0x2d0] ss:$20 sps:$4 sm:$0xff]  }
 0x52f   :  { %4252 = vmatpush1.bf16.msra.mxu0 %v3852_v53  ;;  %v7901_v53 = vld [vmem:[#allocation2 + $0x1a0] ss:$20 sps:$4 sm:$0xff]  }
 0x532   :  { %4029 = vmatmul.mubr.bf16.gmra.mrb[224].mxu0 %v7866_v4  ;;  %v7906_v4 = vld [vmem:[#allocation2 + $0x4b0] ss:$20 sps:$4 sm:$0xff]  }
 0x533   :  { %4036 = vmatprep.mubr.bf16.mxu0 %v7867_v46  ;;  %v7907_v46 = vld [vmem:[#allocation2 + $0x4dc] ss:$20 sps:$4 sm:$0xff]  }
 0x535   :  { %v6588_v56 = vpop.f32.mrb[144].mxu0 }
 0x536   :  { %v3758_v47 = vpop.f32.mrb[145].mxu0 }
 0x537   :  { %v6589_v0 = vpop.f32.mrb[146].mxu0 }
 0x538   :  { %v3854_v41 = vpack.c.bf16 %v6589_v0, %v6588_v56  ;;  %v3761_v21 = vpop.f32.mrb[147].mxu0  ;;  %v7908_v56 = vld [vmem:[#allocation2 + $0x218] ss:$20 sps:$4 sm:$0xff]  }
 0x539   :  { %v3853_v45 = vpack.c.bf16 %v3761_v21, %v3758_v47  ;;  %v7909_v47 = vld [vmem:[#allocation2 + $0x240] ss:$20 sps:$4 sm:$0xff]   ;;  %v7910_v0 = vld [vmem:[#allocation2 + $0x4d8] ss:$20 sps:$4 sm:$0xff]   ;;  %v7912_v21 = vld [vmem:[#allocation2 + $0x268] ss:$20 sps:$4 sm:$0xff]  }
 0x53a   :  { %4037 = vmatmul.mubr.bf16.gmra.mrb[228].mxu0 %v7868_v9  ;;  %v7914_v9 = vld [vmem:[#allocation2 + $0x500] ss:$20 sps:$4 sm:$0xff]  }
 0x53b   :  { %6602 = vmatprep.subr.bf16.mxu1 %v3853_v45  ;;  %4044 = vmatprep.mubr.bf16.mxu0 %v7869_v51  ;;  %v7915_v51 = vld [vmem:[#allocation2 + $0x52c] ss:$20 sps:$4 sm:$0xff]  }
 0x53c   :  { %6603 = vmatpush3.bf16.msra.mxu1 %v3853_v45  ;;  %v7913_v45 = vld [vmem:[#allocation2 + $0x290] ss:$20 sps:$4 sm:$0xff]  }
 0x53d   :  { %6604 = vmatprep.subr.bf16.mxu1 %v3854_v41 }
 0x540   :  { %6605 = vmatpush3.bf16.msra.mxu1 %v3854_v41  ;;  %v7911_v41 = vld [vmem:[#allocation2 + $0x504] ss:$20 sps:$4 sm:$0xff]  }
 0x542   :  { %4045 = vmatmul.mubr.bf16.gmra.mrb[232].mxu0 %v7870_v39  ;;  %v7916_v39 = vld [vmem:[#allocation2 + $0x2b8] ss:$20 sps:$4 sm:$0xff]  }
 0x543   :  { %4052 = vmatprep.mubr.bf16.mxu0 %v7871_v43  ;;  %v7917_v43 = vld [vmem:[#allocation2 + $0x2e0] ss:$20 sps:$4 sm:$0xff]  }
 0x545   :  { %v6592_v28 = vpop.f32.mrb[148].mxu0 }
 0x546   :  { %v3774_v50 = vpop.f32.mrb[149].mxu0 }
 0x547   :  { %v6593_v58 = vpop.f32.mrb[150].mxu0 }
 0x548   :  { %v3856_v25 = vpack.c.bf16 %v6593_v58, %v6592_v28  ;;  %v3777_v14 = vpop.f32.mrb[151].mxu0  ;;  %v7918_v28 = vld [vmem:[#allocation2 + $0x528] ss:$20 sps:$4 sm:$0xff]  }
 0x549   :  { %v3855_v18 = vpack.c.bf16 %v3777_v14, %v3774_v50  ;;  %v7919_v50 = vld [vmem:[#allocation2 + $0x554] ss:$20 sps:$4 sm:$0xff]   ;;  %v7922_v14 = vld [vmem:[#allocation2 + $0x550] ss:$20 sps:$4 sm:$0xff]  }
 0x54a   :  { %4053 = vmatmul.mubr.bf16.gmra.mrb[236].mxu0 %v7872_v59  ;;  %v7920_v58 = vld [vmem:[#allocation2 + $0x308] ss:$20 sps:$4 sm:$0xff]   ;;  %v7924_v59 = vld [vmem:[#allocation2 + $0x358] ss:$20 sps:$4 sm:$0xff]  }
 0x54b   :  { %6606 = vmatprep.subr.bf16.mxu1 %v3855_v18  ;;  %4060 = vmatprep.mubr.bf16.mxu0 %v7873_v29  ;;  %v7925_v29 = vld [vmem:[#allocation2 + $0x380] ss:$20 sps:$4 sm:$0xff]  }
 0x54c   :  { %6607 = vmatpush3.bf16.msra.mxu1 %v3855_v18  ;;  %v7923_v18 = vld [vmem:[#allocation2 + $0x57c] ss:$20 sps:$4 sm:$0xff]  }
 0x54d   :  { %6608 = vmatprep.subr.bf16.mxu1 %v3856_v25 }
 0x550   :  { %6609 = vmatpush3.bf16.msra.mxu1 %v3856_v25  ;;  %v7921_v25 = vld [vmem:[#allocation2 + $0x330] ss:$20 sps:$4 sm:$0xff]  }
 0x552   :  { %4061 = vmatmul.mubr.bf16.gmra.mrb[240].mxu0 %v7874_v48  ;;  %v7926_v48 = vld [vmem:[#allocation2 + $0x578] ss:$20 sps:$4 sm:$0xff]  }
 0x553   :  { %4068 = vmatprep.mubr.bf16.mxu0 %v7875_v12  ;;  %v7927_v12 = vld [vmem:[#allocation2 + $0x5a4] ss:$20 sps:$4 sm:$0xff]  }
 0x555   :  { %v6596_v34 = vpop.f32.mrb[152].mxu0 }
 0x556   :  { %v3790_v33 = vpop.f32.mrb[153].mxu0 }
 0x557   :  { %v6597_v32 = vpop.f32.mrb[154].mxu0 }
 0x558   :  { %v3858_v3 = vpack.c.bf16 %v6597_v32, %v6596_v34  ;;  %v3793_v35 = vpop.f32.mrb[155].mxu0  ;;  %v7928_v34 = vld [vmem:[#allocation2 + $0x3a8] ss:$20 sps:$4 sm:$0xff]   ;;  %v7930_v32 = vld [vmem:[#allocation2 + $0x5a0] ss:$20 sps:$4 sm:$0xff]  }
 0x559   :  { %v3857_v54 = vpack.c.bf16 %v3793_v35, %v3790_v33  ;;  %v7929_v33 = vld [vmem:[#allocation2 + $0x3d0] ss:$20 sps:$4 sm:$0xff]   ;;  %v7932_v35 = vld [vmem:[#allocation2 + $0x3f8] ss:$20 sps:$4 sm:$0xff]  }
 0x55a   :  { %4069 = vmatmul.mubr.bf16.gmra.mrb[244].mxu0 %v7876_v2  ;;  %v7934_v2 = vld [vmem:[#allocation2 + $0x5c8] ss:$20 sps:$4 sm:$0xff]  }
 0x55b   :  { %6610 = vmatprep.subr.bf16.mxu1 %v3857_v54  ;;  %4076 = vmatprep.mubr.bf16.mxu0 %v7877_v5  ;;  %v7935_v5 = vld [vmem:[#allocation2 + $0x5f4] ss:$20 sps:$4 sm:$0xff]  }
 0x55c   :  { %6611 = vmatpush3.bf16.msra.mxu1 %v3857_v54  ;;  %v7933_v54 = vld [vmem:[#allocation2 + $0x420] ss:$20 sps:$4 sm:$0xff]  }
 0x55d   :  { %6612 = vmatprep.subr.bf16.mxu1 %v3858_v3 }
 0x560   :  { %6613 = vmatpush3.bf16.msra.mxu1 %v3858_v3  ;;  %v7931_v3 = vld [vmem:[#allocation2 + $0x5cc] ss:$20 sps:$4 sm:$0xff]  }
 0x562   :  { %4077 = vmatmul.mubr.bf16.gmra.mrb[248].mxu0 %v7878_v15  ;;  %v7936_v15 = vld [vmem:[#allocation2 + $0x448] ss:$20 sps:$4 sm:$0xff]  }
 0x563   :  { %4084 = vmatprep.mubr.bf16.mxu0 %v7879_v10  ;;  %v7937_v10 = vld [vmem:[#allocation2 + $0x470] ss:$20 sps:$4 sm:$0xff]  }
 0x565   :  { %v6600_v30 = vpop.f32.mrb[156].mxu0 }
 0x566   :  { %v3806_v24 = vpop.f32.mrb[157].mxu0 }
 0x567   :  { %v6601_v62 = vpop.f32.mrb[158].mxu0 }
 0x568   :  { %v3860_v49 = vpack.c.bf16 %v6601_v62, %v6600_v30  ;;  %v3809_v44 = vpop.f32.mrb[159].mxu0  ;;  %v7938_v30 = vld [vmem:[#allocation2 + $0x5f0] ss:$20 sps:$4 sm:$0xff]   ;;  %v7940_v62 = vld [vmem:[#allocation2 + $0x498] ss:$20 sps:$4 sm:$0xff]  }
 0x569   :  { %v3859_v17 = vpack.c.bf16 %v3809_v44, %v3806_v24  ;;  %v7939_v24 = vld [vmem:[#allocation2 + $0x61c] ss:$20 sps:$4 sm:$0xff]   ;;  %v7942_v44 = vld [vmem:[#allocation2 + $0x618] ss:$20 sps:$4 sm:$0xff]  }
 0x56a   :  { %4085 = vmatmul.mubr.bf16.gmra.mrb[252].mxu0 %v7880_v60  ;;  %v7944_v60 = vld [vmem:[#allocation2 + $0x4e8] ss:$20 sps:$4 sm:$0xff]  }
 0x56b   :  { %6614 = vmatprep.subr.bf16.mxu1 %v3859_v17  ;;  %4092 = vmatprep.mubr.bf16.mxu0 %v7881_v13  ;;  %v7945_v13 = vld [vmem:[#allocation2 + $0x510] ss:$20 sps:$4 sm:$0xff]  }
 0x56c   :  { %6615 = vmatpush3.bf16.msra.mxu1 %v3859_v17  ;;  %v7943_v17 = vld [vmem:[#allocation2 + $0xc] ss:$20 sps:$4 sm:$0xff]  }
 0x56d   :  { %6616 = vmatprep.subr.bf16.mxu1 %v3860_v49 }
 0x570   :  { %6617 = vmatpush3.bf16.msra.mxu1 %v3860_v49  ;;  %v7941_v49 = vld [vmem:[#allocation2 + $0x4c0] ss:$20 sps:$4 sm:$0xff]  }
 0x572   :  { %4093 = vmatmul.mubr.bf16.gmra.mrb[0].mxu0 %v7882_v26  ;;  %v7946_v26 = vld [vmem:[#allocation2 + $0x8] ss:$20 sps:$4 sm:$0xff]  }
 0x573   :  { %4100 = vmatprep.mubr.bf16.mxu0 %v7883_v31  ;;  %6619 = vmatmul.mubr.bf16.vlgmr.msra.gmra.mrb[240].mxu1 %v7884_v61  ;;  %v7947_v31 = vld [vmem:[#allocation2 + $0x34] ss:$20 sps:$4 sm:$0xff]   ;;  %v7948_v61 = vld [vmem:[#allocation2 + $0x538] ss:$20 sps:$4 sm:$0xff]  }
 0x574   :  { %6622 = vmatprep.mubr.bf16.mxu1 %v7885_v38  ;;  %v7949_v38 = vld [vmem:[#allocation2 + $0x560] ss:$20 sps:$4 sm:$0xff]  }
 0x57a   :  { %4101 = vmatmul.mubr.bf16.gmra.mrb[4].mxu0 %v7886_v37  ;;  %v7950_v37 = vld [vmem:[#allocation2 + $0x30] ss:$20 sps:$4 sm:$0xff]  }
 0x57b   :  { %4108 = vmatprep.mubr.bf16.mxu0 %v7887_v23  ;;  %6623 = vmatmul.mubr.bf16.gmra.mrb[244].mxu1 %v7888_v42  ;;  %v7951_v23 = vld [vmem:[#allocation2 + $0x5c] ss:$20 sps:$4 sm:$0xff]  }
 0x57c   :  { %6626 = vmatprep.mubr.bf16.mxu1 %v7889_v8  ;;  %v7952_v42 = vld [vmem:[#allocation2 + $0x588] ss:$20 sps:$4 sm:$0xff]   ;;  %v7953_v8 = vld [vmem:[#allocation2 + $0x5b0] ss:$20 sps:$4 sm:$0xff]  }
 0x582   :  { %4109 = vmatmul.mubr.bf16.gmra.mrb[8].mxu0 %v7890_v6  ;;  %v7954_v6 = vld [vmem:[#allocation2 + $0x58] ss:$20 sps:$4 sm:$0xff]  }
 0x583   :  { %4116 = vmatprep.mubr.bf16.mxu0 %v7891_v19  ;;  %6627 = vmatmul.mubr.bf16.gmra.mrb[248].mxu1 %v7892_v7  ;;  %v7955_v19 = vld [vmem:[#allocation2 + $0x84] ss:$20 sps:$4 sm:$0xff]  }
 0x584   :  { %6630 = vmatprep.mubr.bf16.mxu1 %v7893_v55  ;;  %v7956_v7 = vld [vmem:[#allocation2 + $0x5d8] ss:$20 sps:$4 sm:$0xff]   ;;  %v7957_v55 = vld [vmem:[#allocation2 + $0x600] ss:$20 sps:$4 sm:$0xff]  }
 0x58a   :  { %4117 = vmatmul.mubr.bf16.gmra.mrb[12].mxu0 %v7894_v57  ;;  %v7958_v57 = vld [vmem:[#allocation2 + $0x80] ss:$20 sps:$4 sm:$0xff]  }
 0x58b   :  { %4124 = vmatprep.mubr.bf16.mxu0 %v7895_v63  ;;  %6631 = vmatmul.mubr.bf16.gmra.mrb[252].mxu1 %v7896_v36  ;;  %v7959_v63 = vld [vmem:[#allocation2 + $0xac] ss:$20 sps:$4 sm:$0xff]   ;;  %v7960_v36 = vld [vmem:[#allocation2 + $0x628] ss:$20 sps:$4 sm:$0xff]  }
 0x58c   :  { %6634 = vmatprep.mubr.bf16.mxu1 %v7897_v20  ;;  %v7961_v20 = vld [vmem:[#allocation2 + $0xa8] ss:$20 sps:$4 sm:$0xff]  }
 0x592   :  { %4125 = vmatmul.mubr.bf16.gmra.mrb[16].mxu0 %v7898_v27  ;;  %v7962_v27 = vld [vmem:[#allocation2 + $0xd4] ss:$20 sps:$4 sm:$0xff]  }
 0x593   :  { %4132 = vmatprep.mubr.bf16.mxu0 %v7899_v16  ;;  %6635 = vmatmul.mubr.bf16.gmra.mrb[0].mxu1 %v7900_v52  ;;  %v7963_v16 = vld [vmem:[#allocation2 + $0xd0] ss:$20 sps:$4 sm:$0xff]  }
 0x594   :  { %6638 = vmatprep.mubr.bf16.mxu1 %v7901_v53  ;;  %v7964_v52 = vld [vmem:[#allocation2 + $0xfc] ss:$20 sps:$4 sm:$0xff]   ;;  %v7965_v53 = vld [vmem:[#allocation2 + $0xf8] ss:$20 sps:$4 sm:$0xff]  }
 0x59a   :  { %4133 = vmatmul.mubr.bf16.gmra.mrb[20].mxu0 %v7902_v22  ;;  %v7966_v22 = vld [vmem:[#allocation2 + $0x124] ss:$20 sps:$4 sm:$0xff]  }
 0x59b   :  { %4140 = vmatprep.mubr.bf16.mxu0 %v7903_v11  ;;  %6639 = vmatmul.mubr.bf16.gmra.mrb[4].mxu1 %v7904_v40  ;;  %v7967_v11 = vld [vmem:[#allocation2 + $0x120] ss:$20 sps:$4 sm:$0xff]  }
 0x59c   :  { %6642 = vmatprep.mubr.bf16.mxu1 %v7905_v1  ;;  %v7968_v40 = vld [vmem:[#allocation2 + $0x14c] ss:$20 sps:$4 sm:$0xff]   ;;  %v7969_v1 = vld [vmem:[#allocation2 + $0x148] ss:$20 sps:$4 sm:$0xff]  }
 0x5a2   :  { %4141 = vmatmul.mubr.bf16.gmra.mrb[24].mxu0 %v7906_v4  ;;  %v7970_v4 = vld [vmem:[#allocation2 + $0x174] ss:$20 sps:$4 sm:$0xff]  }
 0x5a3   :  { %4148 = vmatprep.mubr.bf16.mxu0 %v7907_v46  ;;  %6643 = vmatmul.mubr.bf16.gmra.mrb[8].mxu1 %v7908_v56  ;;  %v7971_v46 = vld [vmem:[#allocation2 + $0x170] ss:$20 sps:$4 sm:$0xff]  }
 0x5a4   :  { %6646 = vmatprep.mubr.bf16.mxu1 %v7909_v47  ;;  %v7972_v56 = vld [vmem:[#allocation2 + $0x19c] ss:$20 sps:$4 sm:$0xff]   ;;  %v7973_v47 = vld [vmem:[#allocation2 + $0x198] ss:$20 sps:$4 sm:$0xff]  }
 0x5aa   :  { %4149 = vmatmul.mubr.bf16.gmra.mrb[28].mxu0 %v7910_v0  ;;  %v7974_v0 = vld [vmem:[#allocation2 + $0x1c4] ss:$20 sps:$4 sm:$0xff]  }
 0x5ab   :  { %4156 = vmatprep.mubr.bf16.mxu0 %v7911_v41  ;;  %6647 = vmatmul.mubr.bf16.gmra.mrb[12].mxu1 %v7912_v21 }
 0x5ac   :  { %6650 = vmatprep.mubr.bf16.mxu1 %v7913_v45 }
 0x5b2   :  { %4157 = vmatmul.mubr.bf16.gmra.mrb[32].mxu0 %v7914_v9 }
 0x5b3   :  { %4164 = vmatprep.mubr.bf16.mxu0 %v7915_v51  ;;  %6651 = vmatmul.mubr.bf16.gmra.mrb[16].mxu1 %v7916_v39  ;;  %v7975_v51 = vld [vmem:[#allocation2 + $0x1c0] ss:$20 sps:$4 sm:$0xff]  }
 0x5b4   :  { %6654 = vmatprep.mubr.bf16.mxu1 %v7917_v43  ;;  %v7976_v39 = vld [vmem:[#allocation2 + $0x1ec] ss:$20 sps:$4 sm:$0xff]   ;;  %v7977_v43 = vld [vmem:[#allocation2 + $0x1e8] ss:$20 sps:$4 sm:$0xff]  }
 0x5ba   :  { %4165 = vmatmul.mubr.bf16.gmra.mrb[36].mxu0 %v7918_v28  ;;  %v7978_v28 = vld [vmem:[#allocation2 + $0x214] ss:$20 sps:$4 sm:$0xff]  }
 0x5bb   :  { %4172 = vmatprep.mubr.bf16.mxu0 %v7919_v50  ;;  %6655 = vmatmul.mubr.bf16.gmra.mrb[20].mxu1 %v7920_v58 }
 0x5bc   :  { %6658 = vmatprep.mubr.bf16.mxu1 %v7921_v25 }
 0x5c2   :  { %4173 = vmatmul.mubr.bf16.gmra.mrb[40].mxu0 %v7922_v14 }
 0x5c3   :  { %4180 = vmatprep.mubr.bf16.mxu0 %v7923_v18  ;;  %6659 = vmatmul.mubr.bf16.gmra.mrb[24].mxu1 %v7924_v59  ;;  %v7979_v18 = vld [vmem:[#allocation2 + $0x210] ss:$20 sps:$4 sm:$0xff]  }
 0x5c4   :  { %6662 = vmatprep.mubr.bf16.mxu1 %v7925_v29  ;;  %v7980_v59 = vld [vmem:[#allocation2 + $0x23c] ss:$20 sps:$4 sm:$0xff]   ;;  %v7981_v29 = vld [vmem:[#allocation2 + $0x238] ss:$20 sps:$4 sm:$0xff]  }
 0x5ca   :  { %4181 = vmatmul.mubr.bf16.gmra.mrb[44].mxu0 %v7926_v48  ;;  %v7982_v48 = vld [vmem:[#allocation2 + $0x264] ss:$20 sps:$4 sm:$0xff]  }
 0x5cb   :  { %4188 = vmatprep.mubr.bf16.mxu0 %v7927_v12  ;;  %6663 = vmatmul.mubr.bf16.gmra.mrb[28].mxu1 %v7928_v34 }
 0x5cc   :  { %6666 = vmatprep.mubr.bf16.mxu1 %v7929_v33 }
 0x5d2   :  { %4189 = vmatmul.mubr.bf16.gmra.mrb[48].mxu0 %v7930_v32 }
 0x5d3   :  { %4196 = vmatprep.mubr.bf16.mxu0 %v7931_v3  ;;  %6667 = vmatmul.mubr.bf16.gmra.mrb[32].mxu1 %v7932_v35  ;;  %v7983_v3 = vld [vmem:[#allocation2 + $0x260] ss:$20 sps:$4 sm:$0xff]  }
 0x5d4   :  { %6670 = vmatprep.mubr.bf16.mxu1 %v7933_v54  ;;  %v7984_v35 = vld [vmem:[#allocation2 + $0x28c] ss:$20 sps:$4 sm:$0xff]   ;;  %v7985_v54 = vld [vmem:[#allocation2 + $0x288] ss:$20 sps:$4 sm:$0xff]  }
 0x5da   :  { %4197 = vmatmul.mubr.bf16.gmra.mrb[52].mxu0 %v7934_v2  ;;  %v7986_v2 = vld [vmem:[#allocation2 + $0x2b4] ss:$20 sps:$4 sm:$0xff]  }
 0x5db   :  { %4204 = vmatprep.mubr.bf16.mxu0 %v7935_v5  ;;  %6671 = vmatmul.mubr.bf16.gmra.mrb[36].mxu1 %v7936_v15 }
 0x5dc   :  { %6674 = vmatprep.mubr.bf16.mxu1 %v7937_v10 }
 0x5e2   :  { %4205 = vmatmul.mubr.bf16.gmra.mrb[56].mxu0 %v7938_v30 }
 0x5e3   :  { %4212 = vmatprep.mubr.bf16.mxu0 %v7939_v24  ;;  %6675 = vmatmul.mubr.bf16.gmra.mrb[40].mxu1 %v7940_v62  ;;  %v7987_v24 = vld [vmem:[#allocation2 + $0x2b0] ss:$20 sps:$4 sm:$0xff]  }
 0x5e4   :  { %6678 = vmatprep.mubr.bf16.mxu1 %v7941_v49  ;;  %v7988_v62 = vld [vmem:[#allocation2 + $0x2dc] ss:$20 sps:$4 sm:$0xff]   ;;  %v7989_v49 = vld [vmem:[#allocation2 + $0x2d8] ss:$20 sps:$4 sm:$0xff]  }
 0x5ea   :  { %4213 = vmatmul.mubr.bf16.gmra.mrb[60].mxu0 %v7942_v44  ;;  %v7990_v44 = vld [vmem:[#allocation2 + $0x304] ss:$20 sps:$4 sm:$0xff]  }
 0x5eb   :  { %4253 = vmatprep.mubr.bf16.mxu0 %v7943_v17  ;;  %6679 = vmatmul.mubr.bf16.gmra.mrb[44].mxu1 %v7944_v60 }
 0x5ec   :  { %6682 = vmatprep.mubr.bf16.mxu1 %v7945_v13 }
 0x5f2   :  { %4254 = vmatmul.mubr.bf16.vlgmr.msra.gmra.mrb[160].mxu0 %v7946_v26 }
 0x5f3   :  { %4261 = vmatprep.mubr.bf16.mxu0 %v7947_v31  ;;  %6683 = vmatmul.mubr.bf16.gmra.mrb[48].mxu1 %v7948_v61  ;;  %v7991_v31 = vld [vmem:[#allocation2 + $0x300] ss:$20 sps:$4 sm:$0xff]  }
 0x5f4   :  { %6686 = vmatprep.mubr.bf16.mxu1 %v7949_v38  ;;  %v7992_v61 = vld [vmem:[#allocation2 + $0x32c] ss:$20 sps:$4 sm:$0xff]   ;;  %v7993_v38 = vld [vmem:[#allocation2 + $0x328] ss:$20 sps:$4 sm:$0xff]  }
 0x5fa   :  { %4262 = vmatmul.mubr.bf16.gmra.mrb[164].mxu0 %v7950_v37  ;;  %v7994_v37 = vld [vmem:[#allocation2 + $0x354] ss:$20 sps:$4 sm:$0xff]  }
 0x5fb   :  { %4269 = vmatprep.mubr.bf16.mxu0 %v7951_v23  ;;  %6687 = vmatmul.mubr.bf16.gmra.mrb[52].mxu1 %v7952_v42 }
 0x5fc   :  { %6690 = vmatprep.mubr.bf16.mxu1 %v7953_v8 }
 0x602   :  { %4270 = vmatmul.mubr.bf16.gmra.mrb[168].mxu0 %v7954_v6 }
 0x603   :  { %4277 = vmatprep.mubr.bf16.mxu0 %v7955_v19  ;;  %6691 = vmatmul.mubr.bf16.gmra.mrb[56].mxu1 %v7956_v7  ;;  %v7995_v19 = vld [vmem:[#allocation2 + $0x350] ss:$20 sps:$4 sm:$0xff]  }
 0x604   :  { %6694 = vmatprep.mubr.bf16.mxu1 %v7957_v55  ;;  %v7996_v7 = vld [vmem:[#allocation2 + $0x37c] ss:$20 sps:$4 sm:$0xff]   ;;  %v7997_v55 = vld [vmem:[#allocation2 + $0x378] ss:$20 sps:$4 sm:$0xff]  }
 0x60a   :  { %4278 = vmatmul.mubr.bf16.gmra.mrb[172].mxu0 %v7958_v57  ;;  %v7998_v57 = vld [vmem:[#allocation2 + $0x3a4] ss:$20 sps:$4 sm:$0xff]  }
 0x60b   :  { %4285 = vmatprep.mubr.bf16.mxu0 %v7959_v63  ;;  %6695 = vmatmul.mubr.bf16.gmra.mrb[60].mxu1 %v7960_v36 }
 0x612   :  { %4286 = vmatmul.mubr.bf16.gmra.mrb[176].mxu0 %v7961_v20 }
 0x613   :  { %4293 = vmatprep.mubr.bf16.mxu0 %v7962_v27 }
 0x61a   :  { %4294 = vmatmul.mubr.bf16.gmra.mrb[180].mxu0 %v7963_v16  ;;  %v7999_v16 = vld [vmem:[#allocation2 + $0x3a0] ss:$20 sps:$4 sm:$0xff]  }
 0x61b   :  { %4301 = vmatprep.mubr.bf16.mxu0 %v7964_v52  ;;  %v8000_v52 = vld [vmem:[#allocation2 + $0x3cc] ss:$20 sps:$4 sm:$0xff]  }
 0x622   :  { %4302 = vmatmul.mubr.bf16.gmra.mrb[184].mxu0 %v7965_v53  ;;  %v8001_v53 = vld [vmem:[#allocation2 + $0x3c8] ss:$20 sps:$4 sm:$0xff]  }
 0x623   :  { %4309 = vmatprep.mubr.bf16.mxu0 %v7966_v22  ;;  %v8002_v22 = vld [vmem:[#allocation2 + $0x3f4] ss:$20 sps:$4 sm:$0xff]  }
 0x62a   :  { %4310 = vmatmul.mubr.bf16.gmra.mrb[188].mxu0 %v7967_v11 }
 0x62b   :  { %4317 = vmatprep.mubr.bf16.mxu0 %v7968_v40 }
 0x632   :  { %4318 = vmatmul.mubr.bf16.gmra.mrb[192].mxu0 %v7969_v1 }
 0x633   :  { %4325 = vmatprep.mubr.bf16.mxu0 %v7970_v4 }
 0x63a   :  { %4326 = vmatmul.mubr.bf16.gmra.mrb[196].mxu0 %v7971_v46  ;;  %v8003_v46 = vld [vmem:[#allocation2 + $0x3f0] ss:$20 sps:$4 sm:$0xff]  }
 0x63b   :  { %4333 = vmatprep.mubr.bf16.mxu0 %v7972_v56  ;;  %v8004_v56 = vld [vmem:[#allocation2 + $0x41c] ss:$20 sps:$4 sm:$0xff]  }
 0x642   :  { %4334 = vmatmul.mubr.bf16.gmra.mrb[200].mxu0 %v7973_v47  ;;  %v8005_v47 = vld [vmem:[#allocation2 + $0x418] ss:$20 sps:$4 sm:$0xff]  }
 0x643   :  { %4341 = vmatprep.mubr.bf16.mxu0 %v7974_v0  ;;  %v8814_v0 = vld [vmem:[%s9734_s5] ss:$0 sm:$0xff] }
 0x646   :  { %v8747_v41 = vpop.f32.mrb[240].mxu1 }
 0x647   :  { %v8749_v21 = vpop.f32.mrb[241].mxu1 }
 0x648   :  { %v8751_v45 = vpop.f32.mrb[242].mxu1 }
 0x649   :  { %v8753_v9 = vpop.f32.mrb[243].mxu1 }
 0x64a   :  { %4342 = vmatmul.mubr.bf16.gmra.mrb[204].mxu0 %v7975_v51  ;;  %v8006_v51 = vld [vmem:[#allocation2 + $0x444] ss:$20 sps:$4 sm:$0xff]  }
 0x64b   :  { %4349 = vmatprep.mubr.bf16.mxu0 %v7976_v39 }
 0x64e   :  { %v8755_v50 = vpop.f32.mrb[244].mxu1 }
 0x64f   :  { %v8757_v58 = vpop.f32.mrb[245].mxu1 }
 0x650   :  { %v8759_v25 = vpop.f32.mrb[246].mxu1 }
 0x651   :  { %v8761_v14 = vpop.f32.mrb[247].mxu1 }
 0x652   :  { %4350 = vmatmul.mubr.bf16.gmra.mrb[208].mxu0 %v7977_v43 }
 0x653   :  { %4357 = vmatprep.mubr.bf16.mxu0 %v7978_v28 }
 0x656   :  { %v8763_v12 = vpop.f32.mrb[248].mxu1 }
 0x657   :  { %v8765_v34 = vpop.f32.mrb[249].mxu1 }
 0x658   :  { %v8767_v33 = vpop.f32.mrb[250].mxu1 }
 0x659   :  { %v8769_v32 = vpop.f32.mrb[251].mxu1 }
 0x65a   :  { %4358 = vmatmul.mubr.bf16.gmra.mrb[212].mxu0 %v7979_v18 }
 0x65b   :  { %4365 = vmatprep.mubr.bf16.mxu0 %v7980_v59 }
 0x65e   :  { %v8771_v5 = vpop.f32.mrb[252].mxu1 }
 0x65f   :  { %v8773_v15 = vpop.f32.mrb[253].mxu1 }
 0x660   :  { %v8775_v10 = vpop.f32.mrb[254].mxu1 }
 0x661   :  { %v8777_v30 = vpop.f32.mrb[255].mxu1 }
 0x662   :  { %4366 = vmatmul.mubr.bf16.gmra.mrb[216].mxu0 %v7981_v29 }
 0x663   :  { %4373 = vmatprep.mubr.bf16.mxu0 %v7982_v48 }
 0x666   :  { %v8779_v17 = vpop.f32.mrb[0].mxu1 }
 0x667   :  { %v8781_v60 = vpop.f32.mrb[1].mxu1 }
 0x668   :  { %v8783_v13 = vpop.f32.mrb[2].mxu1 }
 0x669   :  { %v8785_v26 = vpop.f32.mrb[3].mxu1 }
 0x66a   :  { %4374 = vmatmul.mubr.bf16.gmra.mrb[220].mxu0 %v7983_v3 }
 0x66b   :  { %4381 = vmatprep.mubr.bf16.mxu0 %v7984_v35 }
 0x66e   :  { %v8787_v23 = vpop.f32.mrb[4].mxu1 }
 0x66f   :  { %v8789_v42 = vpop.f32.mrb[5].mxu1 }
 0x670   :  { %v8791_v8 = vpop.f32.mrb[6].mxu1 }
 0x671   :  { %v8793_v6 = vpop.f32.mrb[7].mxu1 }
 0x672   :  { %4382 = vmatmul.mubr.bf16.gmra.mrb[224].mxu0 %v7985_v54 }
 0x673   :  { %4389 = vmatprep.mubr.bf16.mxu0 %v7986_v2 }
 0x676   :  { %v8795_v63 = vpop.f32.mrb[8].mxu1 }
 0x677   :  { %v8797_v36 = vpop.f32.mrb[9].mxu1 }
 0x678   :  { %v8799_v20 = vpop.f32.mrb[10].mxu1 }
 0x679   :  { %v8801_v27 = vpop.f32.mrb[11].mxu1 }
 0x67a   :  { %4390 = vmatmul.mubr.bf16.gmra.mrb[228].mxu0 %v7987_v24 }
 0x67b   :  { %4397 = vmatprep.mubr.bf16.mxu0 %v7988_v62  ;;  %v8007_v62 = vld [vmem:[#allocation2 + $0x440] ss:$20 sps:$4 sm:$0xff]  }
 0x67e   :  { %v8803_v11 = vpop.f32.mrb[12].mxu1 }
 0x67f   :  { %v8805_v40 = vpop.f32.mrb[13].mxu1 }
 0x680   :  { %v8807_v1 = vpop.f32.mrb[14].mxu1 }
 0x681   :  { %v8809_v4 = vpop.f32.mrb[15].mxu1 }
 0x682   :  { %4398 = vmatmul.mubr.bf16.gmra.mrb[232].mxu0 %v7989_v49  ;;  %v8008_v49 = vld [vmem:[#allocation2 + $0x46c] ss:$20 sps:$4 sm:$0xff]  }
 0x683   :  { %4405 = vmatprep.mubr.bf16.mxu0 %v7990_v44 }
 0x686   :  { %v8817_v18 = vpop.f32.mrb[16].mxu1 }
 0x687   :  { %v8819_v29 = vpop.f32.mrb[17].mxu1 }
 0x688   :  { %v8825_v54 = vpop.f32.mrb[18].mxu1 }
 0x689   :  { %v8827_v2 = vpop.f32.mrb[19].mxu1 }
 0x68a   :  { %4406 = vmatmul.mubr.bf16.gmra.mrb[236].mxu0 %v7991_v31 }
 0x68b   :  { %4413 = vmatprep.mubr.bf16.mxu0 %v7992_v61 }
 0x692   :  { %4414 = vmatmul.mubr.bf16.gmra.mrb[240].mxu0 %v7993_v38 }
 0x693   :  { %4421 = vmatprep.mubr.bf16.mxu0 %v7994_v37 }
 0x69a   :  { %4422 = vmatmul.mubr.bf16.gmra.mrb[244].mxu0 %v7995_v19 }
 0x69b   :  { %4429 = vmatprep.mubr.bf16.mxu0 %v7996_v7 }
 0x6a2   :  { %4430 = vmatmul.mubr.bf16.gmra.mrb[248].mxu0 %v7997_v55  ;;  %v8010_v55 = vld [vmem:[#allocation2 + $0x494] ss:$20 sps:$4 sm:$0xff]  }
 0x6a3   :  { %4437 = vmatprep.mubr.bf16.mxu0 %v7998_v57 }
 0x6aa   :  { %4438 = vmatmul.mubr.bf16.gmra.mrb[252].mxu0 %v7999_v16 }
 0x6ab   :  { %4445 = vmatprep.mubr.bf16.mxu0 %v8000_v52 }
 0x6b2   :  { %4446 = vmatmul.mubr.bf16.gmra.mrb[0].mxu0 %v8001_v53  ;;  %v8845_v53 = vpop.f32.mrb[20].mxu1 }
 0x6b3   :  { %4453 = vmatprep.mubr.bf16.mxu0 %v8002_v22 }
 0x6ba   :  { %4454 = vmatmul.mubr.bf16.gmra.mrb[4].mxu0 %v8003_v46 }
 0x6bb   :  { %4461 = vmatprep.mubr.bf16.mxu0 %v8004_v56 }
 0x6c2   :  { %4462 = vmatmul.mubr.bf16.gmra.mrb[8].mxu0 %v8005_v47 }
 0x6c3   :  { %4469 = vmatprep.mubr.bf16.mxu0 %v8006_v51 }
 0x6c5   :  { %v4255_v39 = vpop.f32.mrb[160].mxu0 }
 0x6c6   :  { %v6778_v43 = vadd.f32 %v8814_v0, %v4255_v39  ;;  %v4257_v28 = vpop.f32.mrb[161].mxu0 }
 0x6c7   :  { %v4258_v59 = vpop.f32.mrb[162].mxu0  ;;  %v8012_v28 = vld [vmem:[#allocation2 + $0x4bc] ss:$20 sps:$4 sm:$0xff]  }
 0x6c8   :  { %v6779_v48 = vadd.f32 %v8814_v0, %v4258_v59  ;;  %v8823_v3 = vadd.f32 %v6778_v43, %v8749_v21  ;;  %v4260_v35 = vpop.f32.mrb[163].mxu0  ;;  %v8011_v43 = vld [vmem:[#allocation2 + $0x490] ss:$20 sps:$4 sm:$0xff]  }
 0x6ca   :  { %v8830_v24 = vadd.f32 %v6779_v48, %v8753_v9  ;;  %4470 = vmatmul.mubr.bf16.gmra.mrb[12].mxu0 %v8007_v62  ;;  %4927 = vmax.xlane.f32.xlu0 %v8823_v3  ;;  %v8009_v9 = vld [vmem:[#allocation2 + $0x468] ss:$20 sps:$4 sm:$0xff]  }
 0x6cb   :  { %4477 = vmatprep.mubr.bf16.mxu0 %v8008_v49 }
 0x6cd   :  { %v4263_v44 = vpop.f32.mrb[164].mxu0 }
 0x6ce   :  { %v6780_v31 = vadd.f32 %v8814_v0, %v4263_v44  ;;  %v4265_v61 = vpop.f32.mrb[165].mxu0  ;;  %4929 = vmax.xlane.f32.xlu0 %v8830_v24 }
 0x6cf   :  { %v4266_v21 = vpop.f32.mrb[166].mxu0  ;;  %v8014_v61 = vld [vmem:[#allocation2 + $0x4e4] ss:$20 sps:$4 sm:$0xff]  }
 0x6d0   :  { %v6781_v38 = vadd.f32 %v8814_v0, %v4266_v21  ;;  %v4268_v37 = vpop.f32.mrb[167].mxu0  ;;  %v8837_v19 = vadd.f32 %v6780_v31, %v8747_v41  ;;  %v8847_v41 = vpop.f32.mrb[21].mxu1 }
 0x6d1   :  { %v8853_v47 = vpop.f32.mrb[22].mxu1 }
 0x6d2   :  { %4478 = vmatmul.mubr.bf16.gmra.mrb[16].mxu0 %v8009_v9  ;;  %4931 = vmax.xlane.f32.xlu1 %v8837_v19  ;;  %v8841_v7 = vadd.f32 %v6781_v38, %v8751_v45  ;;  %v8855_v51 = vpop.f32.mrb[23].mxu1 }
 0x6d3   :  { %4485 = vmatprep.mubr.bf16.mxu0 %v8010_v55  ;;  %v8873_v9 = vpop.f32.mrb[24].mxu1 }
 0x6d5   :  { %v4271_v57 = vpop.f32.mrb[168].mxu0 }
 0x6d6   :  { %v6782_v16 = vadd.f32 %v8814_v0, %v4271_v57  ;;  %v4273_v52 = vpop.f32.mrb[169].mxu0  ;;  %4933 = vmax.xlane.f32.xlu1 %v8841_v7 }
 0x6d7   :  { %v4274_v22 = vpop.f32.mrb[170].mxu0 }
 0x6d8   :  { %v6783_v46 = vadd.f32 %v8814_v0, %v4274_v22  ;;  %v8851_v56 = vadd.f32 %v6782_v16, %v8757_v58  ;;  %v4276_v45 = vpop.f32.mrb[171].mxu0 }
 0x6d9   :  { %v8015_v45 = vld [vmem:[#allocation2 + $0x4e0] ss:$20 sps:$4 sm:$0xff]  }
 0x6da   :  { %v8858_v39 = vadd.f32 %v6783_v46, %v8761_v14  ;;  %4486 = vmatmul.mubr.bf16.gmra.mrb[20].mxu0 %v8011_v43  ;;  %4935 = vmax.xlane.f32.xlu0 %v8851_v56  ;;  %v8013_v14 = vld [vmem:[#allocation2 + $0x4b8] ss:$20 sps:$4 sm:$0xff]  }
 0x6db   :  { %4493 = vmatprep.mubr.bf16.mxu0 %v8012_v28  ;;  %v8016_v43 = vld [vmem:[#allocation2 + $0x50c] ss:$20 sps:$4 sm:$0xff]  }
 0x6dc   :  { %4937 = vmax.xlane.f32.xlu1 %v8858_v39 }
 0x6dd   :  { %v4279_v59 = vpop.f32.mrb[172].mxu0 }
 0x6de   :  { %v6784_v58 = vadd.f32 %v8814_v0, %v4279_v59  ;;  %v4281_v48 = vpop.f32.mrb[173].mxu0 }
 0x6df   :  { %v4282_v35 = vpop.f32.mrb[174].mxu0 }
 0x6e0   :  { %v6785_v62 = vadd.f32 %v8814_v0, %v4282_v35  ;;  %v4284_v49 = vpop.f32.mrb[175].mxu0  ;;  %v8865_v44 = vadd.f32 %v6784_v58, %v8755_v50  ;;  %v8875_v50 = vpop.f32.mrb[25].mxu1 }
 0x6e1   :  { %v8881_v52 = vpop.f32.mrb[26].mxu1 }
 0x6e2   :  { %4494 = vmatmul.mubr.bf16.gmra.mrb[24].mxu0 %v8013_v14  ;;  %4939 = vmax.xlane.f32.xlu0 %v8865_v44  ;;  %v8869_v31 = vadd.f32 %v6785_v62, %v8759_v25  ;;  %v8883_v22 = vpop.f32.mrb[27].mxu1  ;;  %v8018_v14 = vld [vmem:[#allocation2 + $0x534] ss:$20 sps:$4 sm:$0xff]  }
 0x6e3   :  { %4501 = vmatprep.mubr.bf16.mxu0 %v8014_v61 }
 0x6e4   :  { %4941 = vmax.xlane.f32.xlu1 %v8869_v31 }
 0x6e5   :  { %v4287_v21 = vpop.f32.mrb[176].mxu0 }
 0x6e6   :  { %v6786_v38 = vadd.f32 %v8814_v0, %v4287_v21  ;;  %v4289_v37 = vpop.f32.mrb[177].mxu0 }
 0x6e7   :  { %v4290_v55 = vpop.f32.mrb[178].mxu0  ;;  %v8901_v37 = vpop.f32.mrb[28].mxu1 }
 0x6e8   :  { %v6787_v57 = vadd.f32 %v8814_v0, %v4290_v55  ;;  %v8879_v16 = vadd.f32 %v6786_v38, %v8765_v34  ;;  %v4292_v25 = vpop.f32.mrb[179].mxu0 }
 0x6ea   :  { %v8886_v46 = vadd.f32 %v6787_v57, %v8769_v32  ;;  %4502 = vmatmul.mubr.bf16.gmra.mrb[28].mxu0 %v8015_v45  ;;  %4943 = vmax.xlane.f32.xlu0 %v8879_v16  ;;  %v8017_v32 = vld [vmem:[#allocation2 + $0x508] ss:$20 sps:$4 sm:$0xff]  }
 0x6eb   :  { %4509 = vmatprep.mubr.bf16.mxu0 %v8016_v43 }
 0x6ec   :  { %4945 = vmax.xlane.f32.xlu1 %v8886_v46 }
 0x6ed   :  { %v4295_v28 = vpop.f32.mrb[180].mxu0 }
 0x6ee   :  { %v6788_v34 = vadd.f32 %v8814_v0, %v4295_v28  ;;  %v4297_v59 = vpop.f32.mrb[181].mxu0 }
 0x6ef   :  { %v4298_v58 = vpop.f32.mrb[182].mxu0  ;;  %v8020_v59 = vld [vmem:[#allocation2 + $0x55c] ss:$20 sps:$4 sm:$0xff]  }
 0x6f0   :  { %v6789_v48 = vadd.f32 %v8814_v0, %v4298_v58  ;;  %v4300_v35 = vpop.f32.mrb[183].mxu0  ;;  %v8893_v62 = vadd.f32 %v6788_v34, %v8763_v12  ;;  %v8903_v12 = vpop.f32.mrb[29].mxu1  ;;  %v8019_v34 = vld [vmem:[#allocation2 + $0x530] ss:$20 sps:$4 sm:$0xff]  }
 0x6f1   :  { %v8909_v45 = vpop.f32.mrb[30].mxu1 }
 0x6f2   :  { %4510 = vmatmul.mubr.bf16.gmra.mrb[32].mxu0 %v8017_v32  ;;  %4947 = vmax.xlane.f32.xlu0 %v8893_v62  ;;  %v8897_v49 = vadd.f32 %v6789_v48, %v8767_v33  ;;  %v8911_v43 = vpop.f32.mrb[31].mxu1 }
 0x6f3   :  { %4517 = vmatprep.mubr.bf16.mxu0 %v8018_v14 }
 0x6f4   :  { %4949 = vmax.xlane.f32.xlu1 %v8897_v49 }
 0x6f5   :  { %v4303_v61 = vpop.f32.mrb[184].mxu0 }
 0x6f6   :  { %v6790_v21 = vadd.f32 %v8814_v0, %v4303_v61  ;;  %v4305_v38 = vpop.f32.mrb[185].mxu0 }
 0x6f7   :  { %v4306_v55 = vpop.f32.mrb[186].mxu0  ;;  %v8022_v38 = vld [vmem:[#allocation2 + $0x584] ss:$20 sps:$4 sm:$0xff]  }
 0x6f8   :  { %v6791_v57 = vadd.f32 %v8814_v0, %v4306_v55  ;;  %v8907_v25 = vadd.f32 %v6790_v21, %v8773_v15  ;;  %v4308_v33 = vpop.f32.mrb[187].mxu0 }
 0x6fa   :  { %v8914_v28 = vadd.f32 %v6791_v57, %v8777_v30  ;;  %4518 = vmatmul.mubr.bf16.gmra.mrb[36].mxu0 %v8019_v34  ;;  %4951 = vmax.xlane.f32.xlu0 %v8907_v25  ;;  %v8021_v30 = vld [vmem:[#allocation2 + $0x558] ss:$20 sps:$4 sm:$0xff]   ;;  %v8929_v34 = vpop.f32.mrb[32].mxu1 }
 0x6fb   :  { %4525 = vmatprep.mubr.bf16.mxu0 %v8020_v59 }
 0x6fc   :  { %4953 = vmax.xlane.f32.xlu1 %v8914_v28 }
 0x6fd   :  { %v4311_v58 = vpop.f32.mrb[188].mxu0 }
 0x6fe   :  { %v6792_v15 = vadd.f32 %v8814_v0, %v4311_v58  ;;  %v4313_v48 = vpop.f32.mrb[189].mxu0 }
 0x6ff   :  { %v4314_v35 = vpop.f32.mrb[190].mxu0 }
 0x700   :  { %v6793_v32 = vadd.f32 %v8814_v0, %v4314_v35  ;;  %v4316_v14 = vpop.f32.mrb[191].mxu0  ;;  %v8921_v61 = vadd.f32 %v6792_v15, %v8771_v5  ;;  %v8931_v5 = vpop.f32.mrb[33].mxu1 }
 0x701   :  { %v8937_v48 = vpop.f32.mrb[34].mxu1  ;;  %v8023_v14 = vld [vmem:[#allocation2 + $0x580] ss:$20 sps:$4 sm:$0xff]  }
 0x702   :  { %4526 = vmatmul.mubr.bf16.gmra.mrb[40].mxu0 %v8021_v30  ;;  %4955 = vmax.xlane.f32.xlu0 %v8921_v61  ;;  %v8925_v21 = vadd.f32 %v6793_v32, %v8775_v10  ;;  %v8939_v35 = vpop.f32.mrb[35].mxu1  ;;  %v8024_v30 = vld [vmem:[#allocation2 + $0x5ac] ss:$20 sps:$4 sm:$0xff]  }
 0x703   :  { %4533 = vmatprep.mubr.bf16.mxu0 %v8022_v38 }
 0x704   :  { %4957 = vmax.xlane.f32.xlu1 %v8925_v21 }
 0x705   :  { %v4319_v55 = vpop.f32.mrb[192].mxu0 }
 0x706   :  { %v6794_v57 = vadd.f32 %v8814_v0, %v4319_v55  ;;  %v4321_v33 = vpop.f32.mrb[193].mxu0 }
 0x707   :  { %v4322_v59 = vpop.f32.mrb[194].mxu0 }
 0x708   :  { %v6795_v58 = vadd.f32 %v8814_v0, %v4322_v59  ;;  %v8935_v15 = vadd.f32 %v6794_v57, %v8781_v60  ;;  %v4324_v10 = vpop.f32.mrb[195].mxu0 }
 0x70a   :  { %v8942_v32 = vadd.f32 %v6795_v58, %v8785_v26  ;;  %4534 = vmatmul.mubr.bf16.gmra.mrb[44].mxu0 %v8023_v14  ;;  %4959 = vmax.xlane.f32.xlu0 %v8935_v15  ;;  %v8025_v26 = vld [vmem:[#allocation2 + $0x5a8] ss:$20 sps:$4 sm:$0xff]  }
 0x70b   :  { %4541 = vmatprep.mubr.bf16.mxu0 %v8024_v30  ;;  %v8026_v14 = vld [vmem:[#allocation2 + $0x5d4] ss:$20 sps:$4 sm:$0xff]  }
 0x70c   :  { %4961 = vmax.xlane.f32.xlu1 %v8942_v32 }
 0x70d   :  { %v4327_v38 = vpop.f32.mrb[196].mxu0 }
 0x70e   :  { %v6796_v60 = vadd.f32 %v8814_v0, %v4327_v38  ;;  %v4329_v55 = vpop.f32.mrb[197].mxu0 }
 0x70f   :  { %v4330_v57 = vpop.f32.mrb[198].mxu0 }
 0x710   :  { %v6797_v33 = vadd.f32 %v8814_v0, %v4330_v57  ;;  %v4332_v59 = vpop.f32.mrb[199].mxu0  ;;  %v8949_v10 = vadd.f32 %v6796_v60, %v8779_v17  ;;  %v8957_v57 = vpop.f32.mrb[36].mxu1 }
 0x711   :  { %9804 = vst [vmem:[#allocation10_spill] sm:$0xff] %v8957_v57  ;;  %v8959_v17 = vpop.f32.mrb[37].mxu1 }
 0x712   :  { %9802 = vst [vmem:[#allocation8_spill] sm:$0xff] %v8949_v10  ;;  %4542 = vmatmul.mubr.bf16.gmra.mrb[48].mxu0 %v8025_v26  ;;  %4963 = vmax.xlane.f32.xlu0 %v8949_v10  ;;  %v8953_v58 = vadd.f32 %v6797_v33, %v8783_v13  ;;  %v8965_v33 = vpop.f32.mrb[38].mxu1 }
 0x713   :  { %4549 = vmatprep.mubr.bf16.mxu0 %v8026_v14  ;;  %9805 = vst [vmem:[#allocation11_spill] sm:$0xff] %v8965_v33  ;;  %v8967_v14 = vpop.f32.mrb[39].mxu1 }
 0x714   :  { %9803 = vst [vmem:[#allocation9_spill] sm:$0xff] %v8953_v58  ;;  %4965 = vmax.xlane.f32.xlu1 %v8953_v58 }
 0x715   :  { %v4335_v30 = vpop.f32.mrb[200].mxu0 }
 0x716   :  { %v6798_v38 = vadd.f32 %v8814_v0, %v4335_v30  ;;  %v4337_v55 = vpop.f32.mrb[201].mxu0  ;;  %v8027_v30 = vld [vmem:[#allocation2 + $0x5d0] ss:$20 sps:$4 sm:$0xff]  }
 0x717   :  { %v4338_v59 = vpop.f32.mrb[202].mxu0  ;;  %v8028_v55 = vld [vmem:[#allocation2 + $0x5fc] ss:$20 sps:$4 sm:$0xff]  }
 0x718   :  { %v6799_v60 = vadd.f32 %v8814_v0, %v4338_v59  ;;  %v8963_v26 = vadd.f32 %v6798_v38, %v8789_v42  ;;  %v4340_v13 = vpop.f32.mrb[203].mxu0 }
 0x71a   :  { %v8970_v58 = vadd.f32 %v6799_v60, %v8793_v6  ;;  %4550 = vmatmul.mubr.bf16.gmra.mrb[52].mxu0 %v8027_v30  ;;  %4967 = vmax.xlane.f32.xlu0 %v8963_v26  ;;  %v8029_v6 = vld [vmem:[#allocation2 + $0x5f8] ss:$20 sps:$4 sm:$0xff]  }
 0x71b   :  { %4557 = vmatprep.mubr.bf16.mxu0 %v8028_v55  ;;  %v8030_v30 = vld [vmem:[#allocation2 + $0x624] ss:$20 sps:$4 sm:$0xff]  }
 0x71c   :  { %4969 = vmax.xlane.f32.xlu1 %v8970_v58 }
 0x71d   :  { %v4343_v59 = vpop.f32.mrb[204].mxu0 }
 0x71e   :  { %v6800_v42 = vadd.f32 %v8814_v0, %v4343_v59  ;;  %v4345_v38 = vpop.f32.mrb[205].mxu0 }
 0x71f   :  { %v4346_v13 = vpop.f32.mrb[206].mxu0 }
 0x720   :  { %v6801_v33 = vadd.f32 %v8814_v0, %v4346_v13  ;;  %v4348_v57 = vpop.f32.mrb[207].mxu0  ;;  %v8977_v10 = vadd.f32 %v6800_v42, %v8787_v23  ;;  %v8985_v13 = vpop.f32.mrb[40].mxu1 }
 0x721   :  { %9807 = vst [vmem:[#allocation15_spill] sm:$0xff] %v8985_v13  ;;  %v8987_v23 = vpop.f32.mrb[41].mxu1 }
 0x722   :  { %4558 = vmatmul.mubr.bf16.gmra.mrb[56].mxu0 %v8029_v6  ;;  %4971 = vmax.xlane.f32.xlu0 %v8977_v10  ;;  %v8981_v60 = vadd.f32 %v6801_v33, %v8791_v8  ;;  %v8993_v33 = vpop.f32.mrb[42].mxu1 }
 0x723   :  { %4565 = vmatprep.mubr.bf16.mxu0 %v8030_v30  ;;  %9809 = vst [vmem:[#allocation14_spill] sm:$0xff] %v8993_v33  ;;  %v8995_v30 = vpop.f32.mrb[43].mxu1 }
 0x724   :  { %9806 = vst [vmem:[#allocation13_spill] sm:$0xff] %v8981_v60  ;;  %4973 = vmax.xlane.f32.xlu1 %v8981_v60 }
 0x725   :  { %v4351_v55 = vpop.f32.mrb[208].mxu0 }
 0x726   :  { %v6802_v59 = vadd.f32 %v8814_v0, %v4351_v55  ;;  %v4353_v38 = vpop.f32.mrb[209].mxu0  ;;  %v8031_v55 = vld [vmem:[#allocation2 + $0x620] ss:$20 sps:$4 sm:$0xff]  }
 0x727   :  { %v4354_v57 = vpop.f32.mrb[210].mxu0 }
 0x728   :  { %v6803_v42 = vadd.f32 %v8814_v0, %v4354_v57  ;;  %v8991_v6 = vadd.f32 %v6802_v59, %v8797_v36  ;;  %v4356_v8 = vpop.f32.mrb[211].mxu0 }
 0x72a   :  { %9808 = vst [vmem:[#allocation12_spill] sm:$0xff] %v8991_v6  ;;  %v8998_v60 = vadd.f32 %v6803_v42, %v8801_v27  ;;  %4566 = vmatmul.mubr.bf16.gmra.mrb[60].mxu0 %v8031_v55  ;;  %4975 = vmax.xlane.f32.xlu0 %v8991_v6 }
 0x72c   :  { %9810 = vst [vmem:[#allocation16_spill] sm:$0xff] %v8998_v60  ;;  %4977 = vmax.xlane.f32.xlu1 %v8998_v60 }
 0x72d   :  { %v4359_v38 = vpop.f32.mrb[212].mxu0 }
 0x72e   :  { %v6804_v57 = vadd.f32 %v8814_v0, %v4359_v38  ;;  %v4361_v13 = vpop.f32.mrb[213].mxu0  ;;  %v9013_v38 = vpop.f32.mrb[44].mxu1 }
 0x72f   :  { %v4362_v36 = vpop.f32.mrb[214].mxu0  ;;  %v9015_v6 = vpop.f32.mrb[45].mxu1 }
 0x730   :  { %v6805_v59 = vadd.f32 %v8814_v0, %v4362_v36  ;;  %v4364_v8 = vpop.f32.mrb[215].mxu0  ;;  %v9005_v33 = vadd.f32 %v6804_v57, %v8795_v63 }
 0x731   :  { %v9021_v8 = vpop.f32.mrb[46].mxu1 }
 0x732   :  { %4979 = vmax.xlane.f32.xlu0 %v9005_v33  ;;  %v9009_v27 = vadd.f32 %v6805_v59, %v8799_v20  ;;  %9813 = vst [vmem:[#allocation19_spill] sm:$0xff] %v9021_v8  ;;  %v9023_v20 = vpop.f32.mrb[47].mxu1 }
 0x734   :  { %9811 = vst [vmem:[#allocation17_spill] sm:$0xff] %v9009_v27  ;;  %4981 = vmax.xlane.f32.xlu1 %v9009_v27 }
 0x735   :  { %v4367_v42 = vpop.f32.mrb[216].mxu0 }
 0x736   :  { %v6806_v55 = vadd.f32 %v8814_v0, %v4367_v42  ;;  %v4369_v60 = vpop.f32.mrb[217].mxu0 }
 0x737   :  { %v4370_v13 = vpop.f32.mrb[218].mxu0 }
 0x738   :  { %v6807_v36 = vadd.f32 %v8814_v0, %v4370_v13  ;;  %v9019_v63 = vadd.f32 %v6806_v55, %v8805_v40  ;;  %v4372_v57 = vpop.f32.mrb[219].mxu0 }
 0x73a   :  { %9812 = vst [vmem:[#allocation18_spill] sm:$0xff] %v9019_v63  ;;  %v9026_v59 = vadd.f32 %v6807_v36, %v8809_v4  ;;  %4983 = vmax.xlane.f32.xlu0 %v9019_v63 }
 0x73c   :  { %9814 = vst [vmem:[#allocation20_spill] sm:$0xff] %v9026_v59  ;;  %4985 = vmax.xlane.f32.xlu1 %v9026_v59 }
 0x73d   :  { %v4375_v60 = vpop.f32.mrb[220].mxu0 }
 0x73e   :  { %v6808_v42 = vadd.f32 %v8814_v0, %v4375_v60  ;;  %v4377_v27 = vpop.f32.mrb[221].mxu0  ;;  %v9041_v60 = vpop.f32.mrb[48].mxu1 }
 0x73f   :  { %v4378_v13 = vpop.f32.mrb[222].mxu0  ;;  %v9043_v8 = vpop.f32.mrb[49].mxu1 }
 0x740   :  { %v6809_v40 = vadd.f32 %v8814_v0, %v4378_v13  ;;  %v4380_v55 = vpop.f32.mrb[223].mxu0  ;;  %v9033_v57 = vadd.f32 %v6808_v42, %v8803_v11 }
 0x741   :  { %v9049_v55 = vpop.f32.mrb[50].mxu1 }
 0x742   :  { %4987 = vmax.xlane.f32.xlu0 %v9033_v57  ;;  %v9037_v4 = vadd.f32 %v6809_v40, %v8807_v1  ;;  %9817 = vst [vmem:[#allocation23_spill] sm:$0xff] %v9049_v55  ;;  %v9051_v1 = vpop.f32.mrb[51].mxu1 }
 0x744   :  { %9815 = vst [vmem:[#allocation21_spill] sm:$0xff] %v9037_v4  ;;  %4989 = vmax.xlane.f32.xlu1 %v9037_v4 }
 0x745   :  { %v4383_v36 = vpop.f32.mrb[224].mxu0 }
 0x746   :  { %v6810_v59 = vadd.f32 %v8814_v0, %v4383_v36  ;;  %v4385_v63 = vpop.f32.mrb[225].mxu0 }
 0x747   :  { %v4386_v27 = vpop.f32.mrb[226].mxu0 }
 0x748   :  { %v6811_v13 = vadd.f32 %v8814_v0, %v4386_v27  ;;  %v9047_v11 = vadd.f32 %v6810_v59, %v8819_v29  ;;  %v4388_v42 = vpop.f32.mrb[227].mxu0 }
 0x74a   :  { %9816 = vst [vmem:[#allocation22_spill] sm:$0xff] %v9047_v11  ;;  %v9054_v40 = vadd.f32 %v6811_v13, %v8827_v2  ;;  %4991 = vmax.xlane.f32.xlu0 %v9047_v11 }
 0x74c   :  { %9818 = vst [vmem:[#allocation24_spill] sm:$0xff] %v9054_v40  ;;  %4993 = vmax.xlane.f32.xlu1 %v9054_v40 }
 0x74d   :  { %v4391_v63 = vpop.f32.mrb[228].mxu0 }
 0x74e   :  { %v6812_v36 = vadd.f32 %v8814_v0, %v4391_v63  ;;  %v4393_v4 = vpop.f32.mrb[229].mxu0  ;;  %v9069_v63 = vpop.f32.mrb[52].mxu1 }
 0x74f   :  { %v4394_v27 = vpop.f32.mrb[230].mxu0 }
 0x750   :  { %v6813_v29 = vadd.f32 %v8814_v0, %v4394_v27  ;;  %v4396_v59 = vpop.f32.mrb[231].mxu0  ;;  %v9061_v42 = vadd.f32 %v6812_v36, %v8817_v18 }
 0x752   :  { %4995 = vmax.xlane.f32.xlu0 %v9061_v42  ;;  %v9065_v2 = vadd.f32 %v6813_v29, %v8825_v54  ;;  %v9078_v29 = vpop.f32.mrb[53].mxu1 }
 0x753   :  { %v9080_v59 = vpop.f32.mrb[54].mxu1 }
 0x754   :  { %9819 = vst [vmem:[#allocation25_spill] sm:$0xff] %v9065_v2  ;;  %4997 = vmax.xlane.f32.xlu1 %v9065_v2  ;;  %v9087_v2 = vpop.f32.mrb[55].mxu1 }
 0x755   :  { %v4399_v13 = vpop.f32.mrb[232].mxu0 }
 0x756   :  { %v6814_v40 = vadd.f32 %v8814_v0, %v4399_v13  ;;  %v4401_v11 = vpop.f32.mrb[233].mxu0 }
 0x757   :  { %v4402_v4 = vpop.f32.mrb[234].mxu0  ;;  %v4928_v55 = vpop.xlane.xlu0 %4927 }
 0x758   :  { %v6815_v27 = vadd.f32 %v8814_v0, %v4402_v4  ;;  %v9073_v18 = vadd.f32 %v6814_v40, %v8847_v41  ;;  %v9076_v36 = vsub.f32 %v8823_v3, %v4928_v55  ;;  %v4404_v54 = vpop.f32.mrb[235].mxu0 }
 0x75a   :  { %9820 = vst [vmem:[#allocation26_spill] sm:$0xff] %v9073_v18  ;;  %9821 = vst [vmem:[#allocation27_spill] sm:$0xff] %v9076_v36  ;;  %v5167_v13 = vmul.f32 1.442695, %v9076_v36  ;;  %v9084_v11 = vadd.f32 %v6815_v27, %v8855_v51  ;;  %4999 = vmax.xlane.f32.xlu0 %v9073_v18 }
 0x75b   :  { %v4930_v4 = vpop.xlane.xlu0 %4929 }
 0x75c   :  { %7511 = vpow2.f32 %v5167_v13  ;;  %v9090_v41 = vsub.f32 %v8830_v24, %v4930_v4  ;;  %5001 = vmax.xlane.f32.xlu1 %v9084_v11 }
 0x75d   :  { %v4407_v3 = vpop.f32.mrb[236].mxu0 }
 0x75e   :  { %9822 = vst [vmem:[#allocation28_spill] sm:$0xff] %v9090_v41  ;;  %v5169_v55 = vmul.f32 1.442695, %v9090_v41  ;;  %v6816_v40 = vadd.f32 %v8814_v0, %v4407_v3  ;;  %v4409_v54 = vpop.f32.mrb[237].mxu0 }
 0x75f   :  { %v4410_v36 = vpop.f32.mrb[238].mxu0  ;;  %v4932_v51 = vpop.xlane.xlu1 %4931 }
 0x760   :  { %7513 = vpow2.f32 %v5169_v55  ;;  %v6817_v27 = vadd.f32 %v8814_v0, %v4410_v36  ;;  %v9097_v18 = vsub.f32 %v8837_v19, %v4932_v51  ;;  %v4412_v13 = vpop.f32.mrb[239].mxu0  ;;  %v9100_v24 = vadd.f32 %v6816_v40, %v8845_v53  ;;  %v9113_v51 = vpop.f32.mrb[56].mxu1 }
 0x762   :  { %9823 = vst [vmem:[#allocation29_spill] sm:$0xff] %v9097_v18  ;;  %v5171_v4 = vmul.f32 1.442695, %v9097_v18  ;;  %5003 = vmax.xlane.f32.xlu0 %v9100_v24  ;;  %v9105_v41 = vadd.f32 %v6817_v27, %v8853_v47  ;;  %v9122_v18 = vpop.f32.mrb[57].mxu1 }
 0x763   :  { %v4934_v3 = vpop.xlane.xlu1 %4933 }
 0x764   :  { %9824 = vst [vmem:[#allocation30_spill] sm:$0xff] %v9105_v41  ;;  %7515 = vpow2.f32 %v5171_v4  ;;  %v9108_v55 = vsub.f32 %v8841_v7, %v4934_v3  ;;  %5005 = vmax.xlane.f32.xlu1 %v9105_v41 }
 0x765   :  { %v4415_v19 = vpop.f32.mrb[240].mxu0 }
 0x766   :  { %9825 = vst [vmem:[#allocation31_spill] sm:$0xff] %v9108_v55  ;;  %v7512_v36 = vpop.eup %7511  ;;  %v5173_v54 = vmul.f32 1.442695, %v9108_v55  ;;  %v6818_v53 = vadd.f32 %v8814_v0, %v4415_v19  ;;  %v4417_v40 = vpop.f32.mrb[241].mxu0 }
 0x767   :  { %v4418_v13 = vpop.f32.mrb[242].mxu0  ;;  %5327 = vadd.xlane.f32.xlu0 %v7512_v36  ;;  %v4936_v47 = vpop.xlane.xlu0 %4935 }
 0x768   :  { %7517 = vpow2.f32 %v5173_v54  ;;  %v6819_v27 = vadd.f32 %v8814_v0, %v4418_v13  ;;  %v9117_v7 = vadd.f32 %v6818_v53, %v8875_v50  ;;  %v9120_v4 = vsub.f32 %v8851_v56, %v4936_v47  ;;  %v4420_v3 = vpop.f32.mrb[243].mxu0  ;;  %v9124_v19 = vpop.f32.mrb[58].mxu1 }
 0x769   :  { %v4938_v55 = vpop.xlane.xlu1 %4937  ;;  %v9133_v50 = vpop.f32.mrb[59].mxu1 }
 0x76a   :  { %9826 = vst [vmem:[#allocation32_spill] sm:$0xff] %v9120_v4  ;;  %v7514_v40 = vpop.eup %7513  ;;  %v5175_v41 = vmul.f32 1.442695, %v9120_v4  ;;  %v9128_v36 = vadd.f32 %v6819_v27, %v8883_v22  ;;  %v9131_v54 = vsub.f32 %v8858_v39, %v4938_v55 }
 0x76b   :  { %5007 = vmax.xlane.f32.xlu0 %v9117_v7  ;;  %5329 = vadd.xlane.f32.xlu1 %v7514_v40 }
 0x76c   :  { %9827 = vst [vmem:[#allocation33_spill] sm:$0xff] %v9131_v54  ;;  %7519 = vpow2.f32 %v5175_v41  ;;  %v5177_v56 = vmul.f32 1.442695, %v9131_v54 }
 0x76d   :  { %v4423_v53 = vpop.f32.mrb[244].mxu0 }
 0x76e   :  { %v7516_v13 = vpop.eup %7515  ;;  %v6820_v47 = vadd.f32 %v8814_v0, %v4423_v53  ;;  %v4425_v3 = vpop.f32.mrb[245].mxu0  ;;  %7521 = vpow2.f32 %v5177_v56 }
 0x76f   :  { %v4426_v4 = vpop.f32.mrb[246].mxu0  ;;  %5331 = vadd.xlane.f32.xlu0 %v7516_v13  ;;  %5009 = vmax.xlane.f32.xlu1 %v9128_v36  ;;  %v4940_v22 = vpop.xlane.xlu0 %4939 }
 0x770   :  { %v6821_v39 = vadd.f32 %v8814_v0, %v4426_v4  ;;  %v9141_v55 = vsub.f32 %v8865_v44, %v4940_v22  ;;  %v4428_v27 = vpop.f32.mrb[247].mxu0  ;;  %v9144_v41 = vadd.f32 %v6820_v47, %v8873_v9  ;;  %v9156_v22 = vpop.f32.mrb[60].mxu1 }
 0x771   :  { %v4942_v40 = vpop.xlane.xlu1 %4941 }
 0x772   :  { %9828 = vst [vmem:[#allocation34_spill] sm:$0xff] %v9141_v55  ;;  %v7518_v54 = vpop.eup %7517  ;;  %v5179_v53 = vmul.f32 1.442695, %v9141_v55  ;;  %v9148_v3 = vsub.f32 %v8869_v31, %v4942_v40  ;;  %v9151_v13 = vadd.f32 %v6821_v39, %v8881_v52 }
 0x773   :  { %5011 = vmax.xlane.f32.xlu0 %v9144_v41  ;;  %5333 = vadd.xlane.f32.xlu1 %v7518_v54 }
 0x774   :  { %9829 = vst [vmem:[#allocation35_spill] sm:$0xff] %v9148_v3  ;;  %7523 = vpow2.f32 %v5179_v53  ;;  %v5181_v44 = vmul.f32 1.442695, %v9148_v3  ;;  %v9166_v53 = vpop.f32.mrb[61].mxu1 }
 0x775   :  { %v4431_v4 = vpop.f32.mrb[248].mxu0 }
 0x776   :  { %v7520_v56 = vpop.eup %7519  ;;  %v6822_v9 = vadd.f32 %v8814_v0, %v4431_v4  ;;  %v4433_v47 = vpop.f32.mrb[249].mxu0  ;;  %7525 = vpow2.f32 %v5181_v44 }
 0x777   :  { %v4434_v27 = vpop.f32.mrb[250].mxu0  ;;  %5013 = vmax.xlane.f32.xlu1 %v9151_v13  ;;  %5335 = vadd.xlane.f32.xlu0 %v7520_v56  ;;  %v4944_v31 = vpop.xlane.xlu0 %4943 }
 0x778   :  { %v6823_v52 = vadd.f32 %v8814_v0, %v4434_v27  ;;  %v9161_v54 = vadd.f32 %v6822_v9, %v8903_v12  ;;  %v9164_v39 = vsub.f32 %v8879_v16, %v4944_v31  ;;  %v4436_v40 = vpop.f32.mrb[251].mxu0  ;;  %v9168_v47 = vpop.f32.mrb[62].mxu1 }
 0x779   :  { %v4946_v4 = vpop.xlane.xlu1 %4945  ;;  %v7522_v3 = vpop.eup %7521 }
 0x77a   :  { %9830 = vst [vmem:[#allocation36_spill] sm:$0xff] %v9164_v39  ;;  %v5183_v55 = vmul.f32 1.442695, %v9164_v39  ;;  %v9172_v56 = vadd.f32 %v6823_v52, %v8911_v43  ;;  %v9175_v44 = vsub.f32 %v8886_v46, %v4946_v4  ;;  %v9177_v12 = vpop.f32.mrb[63].mxu1 }
 0x77b   :  { %5337 = vadd.xlane.f32.xlu1 %v7522_v3  ;;  %5015 = vmax.xlane.f32.xlu0 %v9161_v54 }
 0x77c   :  { %9831 = vst [vmem:[#allocation37_spill] sm:$0xff] %v9175_v44  ;;  %7527 = vpow2.f32 %v5183_v55  ;;  %v5185_v16 = vmul.f32 1.442695, %v9175_v44 }
 0x77d   :  { %v4439_v9 = vpop.f32.mrb[252].mxu0 }
 0x77e   :  { %v7524_v27 = vpop.eup %7523  ;;  %v6824_v31 = vadd.f32 %v8814_v0, %v4439_v9  ;;  %v4441_v40 = vpop.f32.mrb[253].mxu0  ;;  %7529 = vpow2.f32 %v5185_v16 }
 0x77f   :  { %v4442_v39 = vpop.f32.mrb[254].mxu0  ;;  %5017 = vmax.xlane.f32.xlu1 %v9172_v56  ;;  %5339 = vadd.xlane.f32.xlu0 %v7524_v27  ;;  %v4948_v43 = vpop.xlane.xlu0 %4947 }
 0x780   :  { %v6825_v46 = vadd.f32 %v8814_v0, %v4442_v39  ;;  %v9185_v3 = vsub.f32 %v8893_v62, %v4948_v43  ;;  %v4444_v52 = vpop.f32.mrb[255].mxu0  ;;  %v9188_v55 = vadd.f32 %v6824_v31, %v8901_v37  ;;  %v7526_v44 = vpop.eup %7525 }
 0x781   :  { %v4950_v4 = vpop.xlane.xlu1 %4949 }
 0x782   :  { %v5187_v9 = vmul.f32 1.442695, %v9185_v3  ;;  %v9192_v40 = vsub.f32 %v8897_v49, %v4950_v4  ;;  %v9195_v27 = vadd.f32 %v6825_v46, %v8909_v45 }
 0x783   :  { %5341 = vadd.xlane.f32.xlu1 %v7526_v44  ;;  %5019 = vmax.xlane.f32.xlu0 %v9188_v55 }
 0x784   :  { %7531 = vpow2.f32 %v5187_v9  ;;  %v5189_v62 = vmul.f32 1.442695, %v9192_v40 }
 0x785   :  { %v4447_v39 = vpop.f32.mrb[0].mxu0 }
 0x786   :  { %v7528_v16 = vpop.eup %7527  ;;  %v6826_v37 = vadd.f32 %v8814_v0, %v4447_v39  ;;  %v4449_v31 = vpop.f32.mrb[1].mxu0  ;;  %7533 = vpow2.f32 %v5189_v62 }
 0x787   :  { %v4450_v43 = vpop.f32.mrb[2].mxu0  ;;  %5021 = vmax.xlane.f32.xlu1 %v9195_v27  ;;  %5343 = vadd.xlane.f32.xlu0 %v7528_v16  ;;  %v4952_v49 = vpop.xlane.xlu0 %4951 }
 0x788   :  { %v6827_v45 = vadd.f32 %v8814_v0, %v4450_v43  ;;  %v9203_v44 = vadd.f32 %v6826_v37, %v8931_v5  ;;  %v9206_v46 = vsub.f32 %v8907_v25, %v4952_v49  ;;  %v4452_v52 = vpop.f32.mrb[3].mxu0  ;;  %v7530_v9 = vpop.eup %7529 }
 0x789   :  { %v4954_v4 = vpop.xlane.xlu1 %4953 }
 0x78a   :  { %v5191_v39 = vmul.f32 1.442695, %v9206_v46  ;;  %v9210_v31 = vadd.f32 %v6827_v45, %v8939_v35  ;;  %v9213_v16 = vsub.f32 %v8914_v28, %v4954_v4 }
 0x78b   :  { %5345 = vadd.xlane.f32.xlu1 %v7530_v9  ;;  %5023 = vmax.xlane.f32.xlu0 %v9203_v44 }
 0x78c   :  { %7535 = vpow2.f32 %v5191_v39  ;;  %v5193_v5 = vmul.f32 1.442695, %v9213_v16 }
 0x78d   :  { %v4455_v62 = vpop.f32.mrb[4].mxu0 }
 0x78e   :  { %v7532_v25 = vpop.eup %7531  ;;  %v6828_v37 = vadd.f32 %v8814_v0, %v4455_v62  ;;  %v4457_v43 = vpop.f32.mrb[5].mxu0  ;;  %7537 = vpow2.f32 %v5193_v5 }
 0x78f   :  { %v4458_v49 = vpop.f32.mrb[6].mxu0  ;;  %5025 = vmax.xlane.f32.xlu1 %v9210_v31  ;;  %5347 = vadd.xlane.f32.xlu0 %v7532_v25  ;;  %v4956_v35 = vpop.xlane.xlu0 %4955 }
 0x790   :  { %v6829_v28 = vadd.f32 %v8814_v0, %v4458_v49  ;;  %v9221_v45 = vsub.f32 %v8921_v61, %v4956_v35  ;;  %v4460_v52 = vpop.f32.mrb[7].mxu0  ;;  %v9224_v4 = vadd.f32 %v6828_v37, %v8929_v34  ;;  %v7534_v39 = vpop.eup %7533 }
 0x791   :  { %v4958_v9 = vpop.xlane.xlu1 %4957 }
 0x792   :  { %9832 = vst [vmem:[#allocation38_spill] sm:$0xff] %v9221_v45  ;;  %v5195_v62 = vmul.f32 1.442695, %v9221_v45  ;;  %v9228_v43 = vsub.f32 %v8925_v21, %v4958_v9  ;;  %v9231_v25 = vadd.f32 %v6829_v28, %v8937_v48  ;;  %v9840_v45 = vld [vmem:[#allocation11_spill] sm:$0xff] }
 0x793   :  { %5349 = vadd.xlane.f32.xlu1 %v7534_v39  ;;  %5027 = vmax.xlane.f32.xlu0 %v9224_v4 }
 0x794   :  { %9833 = vst [vmem:[#allocation39_spill] sm:$0xff] %v9228_v43  ;;  %7539 = vpow2.f32 %v5195_v62  ;;  %v5197_v61 = vmul.f32 1.442695, %v9228_v43 }
 0x795   :  { %v4463_v5 = vpop.f32.mrb[8].mxu0 }
 0x796   :  { %v7536_v49 = vpop.eup %7535  ;;  %v6830_v34 = vadd.f32 %v8814_v0, %v4463_v5  ;;  %v4465_v37 = vpop.f32.mrb[9].mxu0  ;;  %7541 = vpow2.f32 %v5197_v61 }
 0x797   :  { %v4466_v35 = vpop.f32.mrb[10].mxu0  ;;  %5029 = vmax.xlane.f32.xlu1 %v9231_v25  ;;  %5351 = vadd.xlane.f32.xlu0 %v7536_v49  ;;  %v4960_v21 = vpop.xlane.xlu0 %4959 }
 0x798   :  { %v6831_v48 = vadd.f32 %v8814_v0, %v4466_v35  ;;  %v9239_v28 = vadd.f32 %v6830_v34, %v8959_v17  ;;  %v9242_v52 = vsub.f32 %v8935_v15, %v4960_v21  ;;  %v4468_v9 = vpop.f32.mrb[11].mxu0  ;;  %v7538_v62 = vpop.eup %7537 }
 0x799   :  { %v4962_v39 = vpop.xlane.xlu1 %4961 }
 0x79a   :  { %9834 = vst [vmem:[#allocation40_spill] sm:$0xff] %v9242_v52  ;;  %v5199_v5 = vmul.f32 1.442695, %v9242_v52  ;;  %v9246_v37 = vadd.f32 %v6831_v48, %v8967_v14  ;;  %v9249_v49 = vsub.f32 %v8942_v32, %v4962_v39  ;;  %v9836_v48 = vld [vmem:[#allocation8_spill] sm:$0xff] }
 0x79b   :  { %5353 = vadd.xlane.f32.xlu1 %v7538_v62  ;;  %5031 = vmax.xlane.f32.xlu0 %v9239_v28  ;;  %v9837_v62 = vld [vmem:[#allocation10_spill] sm:$0xff] }
 0x79c   :  { %9835 = vst [vmem:[#allocation41_spill] sm:$0xff] %v9249_v49  ;;  %7543 = vpow2.f32 %v5199_v5  ;;  %v5201_v17 = vmul.f32 1.442695, %v9249_v49 }
 0x79d   :  { %v4471_v61 = vpop.f32.mrb[12].mxu0 }
 0x79e   :  { %v7540_v15 = vpop.eup %7539  ;;  %v6832_v34 = vadd.f32 %v8814_v0, %v4471_v61  ;;  %v4473_v35 = vpop.f32.mrb[13].mxu0  ;;  %7545 = vpow2.f32 %v5201_v17 }
 0x79f   :  { %v4474_v21 = vpop.f32.mrb[14].mxu0  ;;  %5033 = vmax.xlane.f32.xlu1 %v9246_v37  ;;  %5355 = vadd.xlane.f32.xlu0 %v7540_v15  ;;  %v4964_v14 = vpop.xlane.xlu0 %4963  ;;  %v9838_v35 = vld [vmem:[#allocation9_spill] sm:$0xff] }
 0x7a0   :  { %v6833_v32 = vadd.f32 %v8814_v0, %v4474_v21  ;;  %v9257_v9 = vsub.f32 %v9836_v48, %v4964_v14  ;;  %v4476_v39 = vpop.f32.mrb[15].mxu0  ;;  %v9260_v5 = vadd.f32 %v6832_v34, %v9837_v62  ;;  %v7542_v52 = vpop.eup %7541 }
 0x7a1   :  { %v4966_v49 = vpop.xlane.xlu1 %4965 }
 0x7a2   :  { %v5203_v61 = vmul.f32 1.442695, %v9257_v9  ;;  %v9264_v43 = vsub.f32 %v9838_v35, %v4966_v49  ;;  %v9267_v15 = vadd.f32 %v6833_v32, %v9840_v45 }
 0x7a3   :  { %5357 = vadd.xlane.f32.xlu1 %v7542_v52  ;;  %5035 = vmax.xlane.f32.xlu0 %v9260_v5 }
 0x7a4   :  { %9839 = vst [vmem:[#allocation8_spill] sm:$0xff] %v9264_v43  ;;  %7547 = vpow2.f32 %v5203_v61  ;;  %v5205_v17 = vmul.f32 1.442695, %v9264_v43  ;;  %v9847_v43 = vld [vmem:[#allocation14_spill] sm:$0xff] }
 0x7a5   :  { %v4479_v21 = vpop.f32.mrb[16].mxu0 }
 0x7a6   :  { %v7544_v14 = vpop.eup %7543  ;;  %v6834_v34 = vadd.f32 %v8814_v0, %v4479_v21  ;;  %v4481_v48 = vpop.f32.mrb[17].mxu0  ;;  %7549 = vpow2.f32 %v5205_v17 }
 0x7a7   :  { %v4482_v39 = vpop.f32.mrb[18].mxu0  ;;  %5037 = vmax.xlane.f32.xlu1 %v9267_v15  ;;  %5359 = vadd.xlane.f32.xlu0 %v7544_v14  ;;  %v4968_v49 = vpop.xlane.xlu0 %4967 }
 0x7a8   :  { %v6835_v45 = vadd.f32 %v8814_v0, %v4482_v39  ;;  %v9275_v52 = vadd.f32 %v6834_v34, %v8987_v23  ;;  %v9278_v32 = vsub.f32 %v8963_v26, %v4968_v49  ;;  %v4484_v62 = vpop.f32.mrb[19].mxu0  ;;  %v7546_v35 = vpop.eup %7545 }
 0x7a9   :  { %v4970_v61 = vpop.xlane.xlu1 %4969 }
 0x7aa   :  { %9841 = vst [vmem:[#allocation10_spill] sm:$0xff] %v9278_v32  ;;  %v5207_v21 = vmul.f32 1.442695, %v9278_v32  ;;  %v9282_v48 = vadd.f32 %v6835_v45, %v8995_v30  ;;  %v9285_v14 = vsub.f32 %v8970_v58, %v4970_v61  ;;  %v9844_v61 = vld [vmem:[#allocation15_spill] sm:$0xff] }
 0x7ab   :  { %5361 = vadd.xlane.f32.xlu1 %v7546_v35  ;;  %5039 = vmax.xlane.f32.xlu0 %v9275_v52 }
 0x7ac   :  { %9842 = vst [vmem:[#allocation9_spill] sm:$0xff] %v9285_v14  ;;  %7551 = vpow2.f32 %v5207_v21  ;;  %v5209_v23 = vmul.f32 1.442695, %v9285_v14 }
 0x7ad   :  { %v4487_v17 = vpop.f32.mrb[20].mxu0 }
 0x7ae   :  { %v7548_v26 = vpop.eup %7547  ;;  %v6836_v34 = vadd.f32 %v8814_v0, %v4487_v17  ;;  %v4489_v39 = vpop.f32.mrb[21].mxu0  ;;  %7553 = vpow2.f32 %v5209_v23 }
 0x7af   :  { %v4490_v49 = vpop.f32.mrb[22].mxu0  ;;  %5041 = vmax.xlane.f32.xlu1 %v9282_v48  ;;  %5363 = vadd.xlane.f32.xlu0 %v7548_v26  ;;  %v4972_v30 = vpop.xlane.xlu0 %4971  ;;  %v9845_v39 = vld [vmem:[#allocation13_spill] sm:$0xff] }
 0x7b0   :  { %v6837_v58 = vadd.f32 %v8814_v0, %v4490_v49  ;;  %v9293_v45 = vsub.f32 %v8977_v10, %v4972_v30  ;;  %v4492_v62 = vpop.f32.mrb[23].mxu0  ;;  %v9296_v35 = vadd.f32 %v6836_v34, %v9844_v61  ;;  %v7550_v14 = vpop.eup %7549 }
 0x7b1   :  { %v4974_v21 = vpop.xlane.xlu1 %4973 }
 0x7b2   :  { %9843 = vst [vmem:[#allocation11_spill] sm:$0xff] %v9293_v45  ;;  %v5211_v17 = vmul.f32 1.442695, %v9293_v45  ;;  %v9300_v32 = vsub.f32 %v9845_v39, %v4974_v21  ;;  %v9303_v26 = vadd.f32 %v6837_v58, %v9847_v43  ;;  %v9312_v43 = vld [vmem:[%s9734_s5] ss:$0 sm:$0xff]  ;;  %v9855_v45 = vld [vmem:[#allocation19_spill] sm:$0xff] }
 0x7b3   :  { %5365 = vadd.xlane.f32.xlu1 %v7550_v14  ;;  %5043 = vmax.xlane.f32.xlu0 %v9296_v35  ;;  %v9848_v21 = vld [vmem:[#allocation12_spill] sm:$0xff]  ;;  %s8085_s5 = smov [#allocation5]  }
 0x7b4   :  { %9846 = vst [vmem:[#allocation15_spill] sm:$0xff] %v9300_v32  ;;  %7555 = vpow2.f32 %v5211_v17  ;;  %v5213_v10 = vmul.f32 1.442695, %v9300_v32  ;;  %s5812_s28 = sshll.u32 %s8085_s5, 4  ;;  %s5813_s28 = int_to_ptr.vmem [resolvable:$true] %s5812_s28 }
 0x7b5   :  { %v4495_v23 = vpop.f32.mrb[24].mxu0  ;;  %s8055_s29 = scalar_lea.vmem %s5813_s28, 10240  ;;  %p8060_p9 = scmp.lt.s32.totalorder %s5813_s28, %s5813_s28 }
 0x7b6   :  { %v7552_v49 = vpop.eup %7551  ;;  %v6838_v34 = vadd.f32 %v8814_v0, %v4495_v23  ;;  %v4497_v30 = vpop.f32.mrb[25].mxu0  ;;  %7557 = vpow2.f32 %v5213_v10  ;;  %p8056_p8 = scmp.ne.s32.totalorder %s5813_s28, %s8055_s29  ;;  %p8061_p10 = scmp.lt.s32.totalorder %s8055_s29, %s8055_s29 }
 0x7b7   :  { %v4498_v62 = vpop.f32.mrb[26].mxu0  ;;  %5045 = vmax.xlane.f32.xlu1 %v9303_v26  ;;  %5367 = vadd.xlane.f32.xlu0 %v7552_v49  ;;  %v4976_v61 = vpop.xlane.xlu0 %4975  ;;  %v9850_v30 = vld [vmem:[#allocation16_spill] sm:$0xff] }
 0x7b8   :  { %v6839_v14 = vadd.f32 %v9312_v43, %v4498_v62  ;;  %v9316_v58 = vadd.f32 %v6838_v34, %v9015_v6  ;;  %v9319_v17 = vsub.f32 %v9848_v21, %v4976_v61  ;;  %v4500_v0 = vpop.f32.mrb[27].mxu0  ;;  %v7554_v23 = vpop.eup %7553  ;;  %p8062_p11 = por %p8061_p10, %p8060_p9 }
 0x7b9   :  { %v4978_v39 = vpop.xlane.xlu1 %4977 }
 0x7ba   :  { %9849 = vst [vmem:[#allocation13_spill] sm:$0xff] %v9319_v17  ;;  %v5215_v49 = vmul.f32 1.442695, %v9319_v17  ;;  %v9323_v10 = vadd.f32 %v6839_v14, %v9023_v20  ;;  %v9326_v32 = vsub.f32 %v9850_v30, %v4978_v39  ;;  %p8063_p12 = pnand %p8062_p11, %p8056_p8 }
 0x7bb   :  { %5369 = vadd.xlane.f32.xlu1 %v7554_v23  ;;  %5047 = vmax.xlane.f32.xlu0 %v9316_v58 }
 0x7bc   :  { %9851 = vst [vmem:[#allocation14_spill] sm:$0xff] %v9326_v32  ;;  %7559 = vpow2.f32 %v5215_v49  ;;  %v5217_v6 = vmul.f32 1.442695, %v9326_v32 }
 0x7bd   :  { %v4503_v34 = vpop.f32.mrb[28].mxu0 }
 0x7be   :  { %v7556_v62 = vpop.eup %7555  ;;  %v6840_v61 = vadd.f32 %v9312_v43, %v4503_v34  ;;  %v4505_v21 = vpop.f32.mrb[29].mxu0  ;;  %7561 = vpow2.f32 %v5217_v6 }
 0x7bf   :  { %v4506_v0 = vpop.f32.mrb[30].mxu0  ;;  %5049 = vmax.xlane.f32.xlu1 %v9323_v10  ;;  %5371 = vadd.xlane.f32.xlu0 %v7556_v62  ;;  %v4980_v20 = vpop.xlane.xlu0 %4979  ;;  %v9853_v21 = vld [vmem:[#allocation17_spill] sm:$0xff] }
 0x7c0   :  { %v6841_v14 = vadd.f32 %v9312_v43, %v4506_v0  ;;  %v9334_v39 = vsub.f32 %v9005_v33, %v4980_v20  ;;  %v4508_v23 = vpop.f32.mrb[31].mxu0  ;;  %v9337_v49 = vadd.f32 %v6840_v61, %v9013_v38  ;;  %v7558_v32 = vpop.eup %7557 }
 0x7c1   :  { %v4982_v30 = vpop.xlane.xlu1 %4981 }
 0x7c2   :  { %9852 = vst [vmem:[#allocation12_spill] sm:$0xff] %v9334_v39  ;;  %v5219_v34 = vmul.f32 1.442695, %v9334_v39  ;;  %v9341_v17 = vsub.f32 %v9853_v21, %v4982_v30  ;;  %v9344_v62 = vadd.f32 %v6841_v14, %v9855_v45  ;;  %v9856_v14 = vld [vmem:[#allocation18_spill] sm:$0xff]  ;;  %v9858_v39 = vld [vmem:[#allocation20_spill] sm:$0xff] }
 0x7c3   :  { %5373 = vadd.xlane.f32.xlu1 %v7558_v32  ;;  %5051 = vmax.xlane.f32.xlu0 %v9337_v49 }
 0x7c4   :  { %9854 = vst [vmem:[#allocation16_spill] sm:$0xff] %v9341_v17  ;;  %7563 = vpow2.f32 %v5219_v34  ;;  %v5221_v33 = vmul.f32 1.442695, %v9341_v17 }
 0x7c5   :  { %v4511_v6 = vpop.f32.mrb[32].mxu0 }
 0x7c6   :  { %v7560_v0 = vpop.eup %7559  ;;  %v6842_v38 = vadd.f32 %v9312_v43, %v4511_v6  ;;  %v4513_v61 = vpop.f32.mrb[33].mxu0  ;;  %7565 = vpow2.f32 %v5221_v33 }
 0x7c7   :  { %v4514_v20 = vpop.f32.mrb[34].mxu0  ;;  %5053 = vmax.xlane.f32.xlu1 %v9344_v62  ;;  %5375 = vadd.xlane.f32.xlu0 %v7560_v0  ;;  %v4984_v23 = vpop.xlane.xlu0 %4983 }
 0x7c8   :  { %v6843_v45 = vadd.f32 %v9312_v43, %v4514_v20  ;;  %v9352_v32 = vadd.f32 %v6842_v38, %v9043_v8  ;;  %v9355_v30 = vsub.f32 %v9856_v14, %v4984_v23  ;;  %v4516_v34 = vpop.f32.mrb[35].mxu0  ;;  %v7562_v17 = vpop.eup %7561 }
 0x7c9   :  { %v4986_v21 = vpop.xlane.xlu1 %4985 }
 0x7ca   :  { %9857 = vst [vmem:[#allocation17_spill] sm:$0xff] %v9355_v30  ;;  %v5223_v6 = vmul.f32 1.442695, %v9355_v30  ;;  %v9359_v61 = vadd.f32 %v6843_v45, %v9051_v1  ;;  %v9362_v0 = vsub.f32 %v9858_v39, %v4986_v21  ;;  %v9863_v30 = vld [vmem:[#allocation23_spill] sm:$0xff] }
 0x7cb   :  { %5377 = vadd.xlane.f32.xlu1 %v7562_v17  ;;  %5055 = vmax.xlane.f32.xlu0 %v9352_v32 }
 0x7cc   :  { %9859 = vst [vmem:[#allocation19_spill] sm:$0xff] %v9362_v0  ;;  %7567 = vpow2.f32 %v5223_v6  ;;  %v5225_v8 = vmul.f32 1.442695, %v9362_v0 }
 0x7cd   :  { %v4519_v33 = vpop.f32.mrb[36].mxu0 }
 0x7ce   :  { %v7564_v38 = vpop.eup %7563  ;;  %v6844_v20 = vadd.f32 %v9312_v43, %v4519_v33  ;;  %v4521_v23 = vpop.f32.mrb[37].mxu0  ;;  %7569 = vpow2.f32 %v5225_v8 }
 0x7cf   :  { %v4522_v14 = vpop.f32.mrb[38].mxu0  ;;  %5057 = vmax.xlane.f32.xlu1 %v9359_v61  ;;  %5379 = vadd.xlane.f32.xlu0 %v7564_v38  ;;  %v4988_v1 = vpop.xlane.xlu0 %4987  ;;  %v9861_v23 = vld [vmem:[#allocation21_spill] sm:$0xff] }
 0x7d0   :  { %v6845_v39 = vadd.f32 %v9312_v43, %v4522_v14  ;;  %v9370_v17 = vsub.f32 %v9033_v57, %v4988_v1  ;;  %v4524_v45 = vpop.f32.mrb[39].mxu0  ;;  %v9373_v34 = vadd.f32 %v6844_v20, %v9041_v60  ;;  %v7566_v6 = vpop.eup %7565 }
 0x7d1   :  { %v4990_v21 = vpop.xlane.xlu1 %4989 }
 0x7d2   :  { %9860 = vst [vmem:[#allocation18_spill] sm:$0xff] %v9370_v17  ;;  %v5227_v33 = vmul.f32 1.442695, %v9370_v17  ;;  %v9377_v0 = vsub.f32 %v9861_v23, %v4990_v21  ;;  %v9380_v38 = vadd.f32 %v6845_v39, %v9863_v30  ;;  %v9864_v21 = vld [vmem:[#allocation22_spill] sm:$0xff]  ;;  %v9865_v17 = vld [vmem:[#allocation24_spill] sm:$0xff] }
 0x7d3   :  { %5381 = vadd.xlane.f32.xlu1 %v7566_v6  ;;  %5059 = vmax.xlane.f32.xlu0 %v9373_v34 }
 0x7d4   :  { %9862 = vst [vmem:[#allocation20_spill] sm:$0xff] %v9377_v0  ;;  %7571 = vpow2.f32 %v5227_v33  ;;  %v5229_v57 = vmul.f32 1.442695, %v9377_v0 }
 0x7d5   :  { %v4527_v8 = vpop.f32.mrb[40].mxu0 }
 0x7d6   :  { %v7568_v14 = vpop.eup %7567  ;;  %v6846_v60 = vadd.f32 %v9312_v43, %v4527_v8  ;;  %v4529_v20 = vpop.f32.mrb[41].mxu0  ;;  %7573 = vpow2.f32 %v5229_v57 }
 0x7d7   :  { %v4530_v1 = vpop.f32.mrb[42].mxu0  ;;  %5061 = vmax.xlane.f32.xlu1 %v9380_v38  ;;  %5383 = vadd.xlane.f32.xlu0 %v7568_v14  ;;  %v4992_v45 = vpop.xlane.xlu0 %4991 }
 0x7d8   :  { %v6847_v30 = vadd.f32 %v9312_v43, %v4530_v1  ;;  %v9388_v39 = vadd.f32 %v6846_v60, %v9078_v29  ;;  %v9391_v6 = vsub.f32 %v9864_v21, %v4992_v45  ;;  %v4532_v33 = vpop.f32.mrb[43].mxu0  ;;  %v7570_v0 = vpop.eup %7569 }
 0x7d9   :  { %v4994_v23 = vpop.xlane.xlu1 %4993 }
 0x7da   :  { %v5231_v8 = vmul.f32 1.442695, %v9391_v6  ;;  %v9395_v20 = vadd.f32 %v6847_v30, %v9087_v2  ;;  %v9398_v14 = vsub.f32 %v9865_v17, %v4994_v23 }
 0x7db   :  { %5385 = vadd.xlane.f32.xlu1 %v7570_v0  ;;  %5063 = vmax.xlane.f32.xlu0 %v9388_v39 }
 0x7dc   :  { %9866 = vst [vmem:[#allocation21_spill] sm:$0xff] %v9398_v14  ;;  %7575 = vpow2.f32 %v5231_v8  ;;  %v5233_v29 = vmul.f32 1.442695, %v9398_v14  ;;  %v9868_v14 = vld [vmem:[#allocation25_spill] sm:$0xff] }
 0x7dd   :  { %v4535_v57 = vpop.f32.mrb[44].mxu0 }
 0x7de   :  { %v7572_v60 = vpop.eup %7571  ;;  %v6848_v1 = vadd.f32 %v9312_v43, %v4535_v57  ;;  %v4537_v45 = vpop.f32.mrb[45].mxu0  ;;  %7577 = vpow2.f32 %v5233_v29 }
 0x7df   :  { %v4538_v21 = vpop.f32.mrb[46].mxu0  ;;  %5065 = vmax.xlane.f32.xlu1 %v9395_v20  ;;  %5387 = vadd.xlane.f32.xlu0 %v7572_v60  ;;  %v4996_v2 = vpop.xlane.xlu0 %4995 }
 0x7e0   :  { %v9405_v17 = vadd.f32 %v6848_v1, %v9069_v63  ;;  %v6849_v0 = vadd.f32 %v9312_v43, %v4538_v21  ;;  %v9409_v30 = vsub.f32 %v9061_v42, %v4996_v2  ;;  %v4540_v33 = vpop.f32.mrb[47].mxu0  ;;  %v7574_v8 = vpop.eup %7573 }
 0x7e1   :  { %v4998_v23 = vpop.xlane.xlu1 %4997 }
 0x7e2   :  { %9867 = vst [vmem:[#allocation23_spill] sm:$0xff] %v9409_v30  ;;  %v9412_v57 = vadd.f32 %v6849_v0, %v9080_v59  ;;  %v5235_v45 = vmul.f32 1.442695, %v9409_v30  ;;  %v9416_v60 = vsub.f32 %v9868_v14, %v4998_v23 }
 0x7e3   :  { %5389 = vadd.xlane.f32.xlu1 %v7574_v8  ;;  %5067 = vmax.xlane.f32.xlu0 %v9405_v17 }
 0x7e4   :  { %9869 = vst [vmem:[#allocation22_spill] sm:$0xff] %v9416_v60  ;;  %7579 = vpow2.f32 %v5235_v45  ;;  %v5237_v63 = vmul.f32 1.442695, %v9416_v60  ;;  %v9870_v60 = vld [vmem:[#allocation26_spill] sm:$0xff] }
 0x7e5   :  { %v4543_v29 = vpop.f32.mrb[48].mxu0 }
 0x7e6   :  { %v7576_v42 = vpop.eup %7575  ;;  %v6850_v1 = vadd.f32 %v9312_v43, %v4543_v29  ;;  %v4545_v21 = vpop.f32.mrb[49].mxu0  ;;  %7581 = vpow2.f32 %v5237_v63 }
 0x7e7   :  { %v4546_v2 = vpop.f32.mrb[50].mxu0  ;;  %5069 = vmax.xlane.f32.xlu1 %v9412_v57  ;;  %5391 = vadd.xlane.f32.xlu0 %v7576_v42  ;;  %v5000_v8 = vpop.xlane.xlu0 %4999 }
 0x7e8   :  { %v6851_v59 = vadd.f32 %v9312_v43, %v4546_v2  ;;  %v9424_v14 = vadd.f32 %v6850_v1, %v9122_v18  ;;  %v4548_v0 = vpop.f32.mrb[51].mxu0  ;;  %v7578_v33 = vpop.eup %7577  ;;  %v9440_v30 = vsub.f32 %v9870_v60, %v5000_v8 }
 0x7e9   :  { %v5002_v1 = vpop.xlane.xlu1 %5001 }
 0x7ea   :  { %v9427_v23 = vadd.f32 %v6851_v59, %v9133_v50 }
 0x7eb   :  { %5393 = vadd.xlane.f32.xlu1 %v7578_v33  ;;  %5071 = vmax.xlane.f32.xlu0 %v9424_v14 }
 0x7ed   :  { %v4551_v45 = vpop.f32.mrb[52].mxu0 }
 0x7ee   :  { %v7580_v29 = vpop.eup %7579  ;;  %v6852_v21 = vadd.f32 %v9312_v43, %v4551_v45  ;;  %v4553_v42 = vpop.f32.mrb[53].mxu0 }
 0x7ef   :  { %v4554_v63 = vpop.f32.mrb[54].mxu0  ;;  %5073 = vmax.xlane.f32.xlu1 %v9427_v23  ;;  %5395 = vadd.xlane.f32.xlu0 %v7580_v29  ;;  %v5004_v18 = vpop.xlane.xlu0 %5003  ;;  %v9444_v42 = vsub.f32 %v9084_v11, %v5002_v1 }
 0x7f0   :  { %v9433_v2 = vadd.f32 %v6852_v21, %v9113_v51  ;;  %v6853_v50 = vadd.f32 %v9312_v43, %v4554_v63  ;;  %v4556_v59 = vpop.f32.mrb[55].mxu0  ;;  %v7582_v0 = vpop.eup %7581  ;;  %v9447_v21 = vsub.f32 %v9100_v24, %v5004_v18 }
 0x7f1   :  { %v5006_v45 = vpop.xlane.xlu1 %5005  ;;  %9871 = vst [vmem:[#allocation24_spill] sm:$0xff] %v9444_v42 }
 0x7f2   :  { %v9437_v33 = vadd.f32 %v6853_v50, %v9124_v19  ;;  %9872 = vst [vmem:[#allocation25_spill] sm:$0xff] %v9447_v21  ;;  %v5239_v50 = vmul.f32 1.442695, %v9440_v30 }
 0x7f3   :  { %5397 = vadd.xlane.f32.xlu1 %v7582_v0  ;;  %5075 = vmax.xlane.f32.xlu0 %v9433_v2  ;;  %v5241_v0 = vmul.f32 1.442695, %v9444_v42  ;;  %v9875_v42 = vld [vmem:[#allocation27_spill] sm:$0xff] }
 0x7f4   :  { %v5328_v29 = vpop.xlane.xlu0 %5327 }
 0x7f5   :  { %7583 = vlog2.f32 %v5328_v29  ;;  %v4559_v51 = vpop.f32.mrb[56].mxu0  ;;  %v9873_v29 = vld [vmem:[#allocation30_spill] sm:$0xff] }
 0x7f6   :  { %v6854_v63 = vadd.f32 %v9312_v43, %v4559_v51  ;;  %v4561_v19 = vpop.f32.mrb[57].mxu0  ;;  %v9458_v24 = vsub.f32 %v9873_v29, %v5006_v45  ;;  %v5243_v51 = vmul.f32 1.442695, %v9447_v21 }
 0x7f7   :  { %v4562_v60 = vpop.f32.mrb[58].mxu0  ;;  %5077 = vmax.xlane.f32.xlu1 %v9437_v33 }
 0x7f8   :  { %v6855_v8 = vadd.f32 %v9312_v43, %v4562_v60  ;;  %v9454_v59 = vadd.f32 %v6854_v63, %v9166_v53  ;;  %v4564_v11 = vpop.f32.mrb[59].mxu0  ;;  %v5330_v1 = vpop.xlane.xlu1 %5329  ;;  %9874 = vst [vmem:[#allocation26_spill] sm:$0xff] %v9458_v24  ;;  %v5245_v45 = vmul.f32 1.442695, %v9458_v24 }
 0x7f9   :  { %7585 = vlog2.f32 %v5330_v1  ;;  %v5008_v18 = vpop.xlane.xlu0 %5007 }
 0x7fa   :  { %v9462_v19 = vadd.f32 %v6855_v8, %v9177_v12  ;;  %5079 = vmax.xlane.f32.xlu0 %v9454_v59  ;;  %7587 = vpow2.f32 %v5239_v50  ;;  %v9466_v53 = vsub.f32 %v9117_v7, %v5008_v18 }
 0x7fb   :  { %7589 = vpow2.f32 %v5241_v0 }
 0x7fc   :  { %5081 = vmax.xlane.f32.xlu1 %v9462_v19  ;;  %v5010_v63 = vpop.xlane.xlu1 %5009  ;;  %7591 = vpow2.f32 %v5243_v51  ;;  %v5247_v50 = vmul.f32 1.442695, %v9466_v53 }
 0x7fd   :  { %v9471_v60 = vsub.f32 %v9128_v36, %v5010_v63  ;;  %v5332_v11 = vpop.xlane.xlu0 %5331  ;;  %v4567_v1 = vpop.f32.mrb[60].mxu0 }
 0x7fe   :  { %v6856_v12 = vadd.f32 %v9312_v43, %v4567_v1  ;;  %v4569_v8 = vpop.f32.mrb[61].mxu0  ;;  %7593 = vlog2.f32 %v5332_v11 }
 0x7ff   :  { %v7584_v29 = vpop.eup %7583  ;;  %v4570_v7 = vpop.f32.mrb[62].mxu0  ;;  %7595 = vpow2.f32 %v5245_v45  ;;  %v5249_v63 = vmul.f32 1.442695, %v9471_v60 }
 0x800   :  { %v5488_v18 = vmul.f32 0.6931472, %v7584_v29  ;;  %v9476_v21 = vadd.f32 %v6856_v12, %v9156_v22  ;;  %v6857_v0 = vadd.f32 %v9312_v43, %v4570_v7  ;;  %v4572_v24 = vpop.f32.mrb[63].mxu0  ;;  %v5334_v36 = vpop.xlane.xlu1 %5333  ;;  %v9876_v29 = vld [vmem:[#allocation28_spill] sm:$0xff] }
 0x801   :  { %v5012_v51 = vpop.xlane.xlu0 %5011  ;;  %7597 = vlog2.f32 %v5334_v36 }
 0x802   :  { %v5647_v1 = vsub.f32 %v9875_v42, %v5488_v18  ;;  %v9482_v8 = vadd.f32 %v6857_v0, %v9168_v47  ;;  %v9485_v11 = vsub.f32 %v9144_v41, %v5012_v51  ;;  %5083 = vmax.xlane.f32.xlu0 %v9476_v21  ;;  %7599 = vpow2.f32 %v5247_v50 }
 0x803   :  { %v7586_v22 = vpop.eup %7585  ;;  %7601 = vpow2.f32 %v5249_v63 }
 0x804   :  { %5727 = vst [vmem:[#allocation5] sm:$0xff] %v5647_v1  ;;  %v5490_v43 = vmul.f32 0.6931472, %v7586_v22  ;;  %v5251_v24 = vmul.f32 1.442695, %v9485_v11  ;;  %5085 = vmax.xlane.f32.xlu1 %v9482_v8  ;;  %v5014_v45 = vpop.xlane.xlu1 %5013  ;;  %v7588_v12 = vpop.eup %7587 }
 0x805   :  { %v9491_v47 = vsub.f32 %v9151_v13, %v5014_v45  ;;  %v5336_v42 = vpop.xlane.xlu0 %5335  ;;  %v7590_v7 = vpop.eup %7589 }
 0x806   :  { %v5648_v41 = vsub.f32 %v9876_v29, %v5490_v43  ;;  %7603 = vpow2.f32 %v5251_v24  ;;  %5399 = vadd.xlane.f32.xlu0 %v7588_v12  ;;  %v7592_v18 = vpop.eup %7591  ;;  %v9877_v43 = vld [vmem:[#allocation29_spill] sm:$0xff] }
 0x807   :  { %v5253_v50 = vmul.f32 1.442695, %v9491_v47  ;;  %7605 = vlog2.f32 %v5336_v42 }
 0x808   :  { %5728 = vst [vmem:[#allocation5 + $0x8] sm:$0xff] %v5648_v41  ;;  %5401 = vadd.xlane.f32.xlu1 %v7590_v7  ;;  %v5338_v0 = vpop.xlane.xlu1 %5337  ;;  %v7594_v36 = vpop.eup %7593 }
 0x809   :  { %7607 = vpow2.f32 %v5253_v50  ;;  %v5016_v51 = vpop.xlane.xlu0 %5015  ;;  %v5492_v63 = vmul.f32 0.6931472, %v7594_v36  ;;  %v7596_v1 = vpop.eup %7595  ;;  %v9878_v50 = vld [vmem:[#allocation31_spill] sm:$0xff] }
 0x80a   :  { %7609 = vlog2.f32 %v5338_v0  ;;  %v9496_v13 = vsub.f32 %v9161_v54, %v5016_v51  ;;  %5403 = vadd.xlane.f32.xlu0 %v7592_v18 }
 0x80b   :  { %v7598_v22 = vpop.eup %7597  ;;  %v5649_v24 = vsub.f32 %v9877_v43, %v5492_v63 }
 0x80c   :  { %v5255_v45 = vmul.f32 1.442695, %v9496_v13  ;;  %5405 = vadd.xlane.f32.xlu1 %v7596_v1  ;;  %v5018_v12 = vpop.xlane.xlu1 %5017  ;;  %v7600_v42 = vpop.eup %7599  ;;  %v5494_v29 = vmul.f32 0.6931472, %v7598_v22 }
 0x80d   :  { %v9501_v41 = vsub.f32 %v9172_v56, %v5018_v12  ;;  %v5340_v7 = vpop.xlane.xlu0 %5339  ;;  %5729 = vst [vmem:[#allocation5 + $0x10] sm:$0xff] %v5649_v24  ;;  %v7602_v54 = vpop.eup %7601 }
 0x80e   :  { %7611 = vpow2.f32 %v5255_v45  ;;  %5407 = vadd.xlane.f32.xlu0 %v7600_v42  ;;  %v5650_v18 = vsub.f32 %v9878_v50, %v5494_v29  ;;  %v9879_v45 = vld [vmem:[#allocation32_spill] sm:$0xff] }
 0x80f   :  { %v5257_v0 = vmul.f32 1.442695, %v9501_v41  ;;  %7613 = vlog2.f32 %v5340_v7 }
 0x810   :  { %v7604_v36 = vpop.eup %7603  ;;  %5409 = vadd.xlane.f32.xlu1 %v7602_v54  ;;  %v5342_v51 = vpop.xlane.xlu1 %5341  ;;  %5730 = vst [vmem:[#allocation5 + $0x18] sm:$0xff] %v5650_v18  ;;  %v9880_v18 = vld [vmem:[#allocation33_spill] sm:$0xff] }
 0x811   :  { %v7606_v63 = vpop.eup %7605  ;;  %7615 = vpow2.f32 %v5257_v0  ;;  %v5020_v1 = vpop.xlane.xlu0 %5019 }
 0x812   :  { %v5496_v22 = vmul.f32 0.6931472, %v7606_v63  ;;  %7617 = vlog2.f32 %v5342_v51  ;;  %v9506_v56 = vsub.f32 %v9188_v55, %v5020_v1  ;;  %5411 = vadd.xlane.f32.xlu0 %v7604_v36 }
 0x813   :  { %v7608_v43 = vpop.eup %7607 }
 0x814   :  { %v7610_v24 = vpop.eup %7609  ;;  %v5651_v12 = vsub.f32 %v9879_v45, %v5496_v22  ;;  %v5259_v42 = vmul.f32 1.442695, %v9506_v56  ;;  %5413 = vadd.xlane.f32.xlu1 %v7608_v43  ;;  %v5022_v29 = vpop.xlane.xlu1 %5021  ;;  %v9881_v45 = vld [vmem:[#allocation34_spill] sm:$0xff] }
 0x815   :  { %v5498_v7 = vmul.f32 0.6931472, %v7610_v24  ;;  %v9511_v54 = vsub.f32 %v9195_v27, %v5022_v29  ;;  %v5344_v50 = vpop.xlane.xlu0 %5343 }
 0x816   :  { %5731 = vst [vmem:[#allocation5 + $0x20] sm:$0xff] %v5651_v12  ;;  %7619 = vpow2.f32 %v5259_v42 }
 0x817   :  { %v5652_v0 = vsub.f32 %v9880_v18, %v5498_v7  ;;  %v5261_v55 = vmul.f32 1.442695, %v9511_v54  ;;  %7621 = vlog2.f32 %v5344_v50 }
 0x818   :  { %v7612_v36 = vpop.eup %7611  ;;  %v5346_v51 = vpop.xlane.xlu1 %5345 }
 0x819   :  { %v7614_v63 = vpop.eup %7613  ;;  %5732 = vst [vmem:[#allocation5 + $0x28] sm:$0xff] %v5652_v0  ;;  %7623 = vpow2.f32 %v5261_v55  ;;  %5415 = vadd.xlane.f32.xlu0 %v7612_v36  ;;  %v5024_v1 = vpop.xlane.xlu0 %5023  ;;  %v9882_v0 = vld [vmem:[#allocation35_spill] sm:$0xff] }
 0x81a   :  { %v5500_v22 = vmul.f32 0.6931472, %v7614_v63  ;;  %7625 = vlog2.f32 %v5346_v51  ;;  %v9516_v27 = vsub.f32 %v9203_v44, %v5024_v1 }
 0x81b   :  { %v7616_v43 = vpop.eup %7615 }
 0x81c   :  { %v7618_v24 = vpop.eup %7617  ;;  %v5653_v12 = vsub.f32 %v9881_v45, %v5500_v22  ;;  %v5263_v42 = vmul.f32 1.442695, %v9516_v27  ;;  %5417 = vadd.xlane.f32.xlu1 %v7616_v43  ;;  %v5026_v29 = vpop.xlane.xlu1 %5025  ;;  %v9883_v45 = vld [vmem:[#allocation36_spill] sm:$0xff] }
 0x81d   :  { %v5502_v7 = vmul.f32 0.6931472, %v7618_v24  ;;  %v9521_v50 = vsub.f32 %v9210_v31, %v5026_v29  ;;  %v5348_v18 = vpop.xlane.xlu0 %5347 }
 0x81e   :  { %5733 = vst [vmem:[#allocation5 + $0x30] sm:$0xff] %v5653_v12  ;;  %7627 = vpow2.f32 %v5263_v42 }
 0x81f   :  { %v5654_v55 = vsub.f32 %v9882_v0, %v5502_v7  ;;  %v5265_v44 = vmul.f32 1.442695, %v9521_v50  ;;  %7629 = vlog2.f32 %v5348_v18 }
 0x820   :  { %v7620_v36 = vpop.eup %7619  ;;  %v5350_v51 = vpop.xlane.xlu1 %5349 }
 0x821   :  { %v7622_v63 = vpop.eup %7621  ;;  %5734 = vst [vmem:[#allocation5 + $0x38] sm:$0xff] %v5654_v55  ;;  %7631 = vpow2.f32 %v5265_v44  ;;  %5419 = vadd.xlane.f32.xlu0 %v7620_v36  ;;  %v5028_v1 = vpop.xlane.xlu0 %5027  ;;  %v9884_v55 = vld [vmem:[#allocation37_spill] sm:$0xff] }
 0x822   :  { %v5504_v22 = vmul.f32 0.6931472, %v7622_v63  ;;  %7633 = vlog2.f32 %v5350_v51  ;;  %v9526_v31 = vsub.f32 %v9224_v4, %v5028_v1 }
 0x823   :  { %v7624_v43 = vpop.eup %7623 }
 0x824   :  { %v7626_v24 = vpop.eup %7625  ;;  %v5655_v12 = vsub.f32 %v9883_v45, %v5504_v22  ;;  %v5267_v42 = vmul.f32 1.442695, %v9526_v31  ;;  %5421 = vadd.xlane.f32.xlu1 %v7624_v43  ;;  %v5030_v29 = vpop.xlane.xlu1 %5029 }
 0x825   :  { %v5506_v7 = vmul.f32 0.6931472, %v7626_v24  ;;  %v9531_v18 = vsub.f32 %v9231_v25, %v5030_v29  ;;  %v5352_v0 = vpop.xlane.xlu0 %5351 }
 0x826   :  { %5735 = vst [vmem:[#allocation5 + $0x40] sm:$0xff] %v5655_v12  ;;  %7635 = vpow2.f32 %v5267_v42 }
 0x827   :  { %v5656_v44 = vsub.f32 %v9884_v55, %v5506_v7  ;;  %v5269_v4 = vmul.f32 1.442695, %v9531_v18  ;;  %7637 = vlog2.f32 %v5352_v0 }
 0x828   :  { %v7628_v36 = vpop.eup %7627  ;;  %v5354_v51 = vpop.xlane.xlu1 %5353 }
 0x829   :  { %v7630_v63 = vpop.eup %7629  ;;  %5736 = vst [vmem:[#allocation5 + $0x48] sm:$0xff] %v5656_v44  ;;  %7639 = vpow2.f32 %v5269_v4  ;;  %5423 = vadd.xlane.f32.xlu0 %v7628_v36  ;;  %v5032_v1 = vpop.xlane.xlu0 %5031 }
 0x82a   :  { %v5508_v22 = vmul.f32 0.6931472, %v7630_v63  ;;  %7641 = vlog2.f32 %v5354_v51  ;;  %v9536_v25 = vsub.f32 %v9239_v28, %v5032_v1 }
 0x82b   :  { %v7632_v43 = vpop.eup %7631 }
 0x82c   :  { %v7634_v24 = vpop.eup %7633  ;;  %v5657_v45 = vsub.f32 %v9185_v3, %v5508_v22  ;;  %v5271_v12 = vmul.f32 1.442695, %v9536_v25  ;;  %5425 = vadd.xlane.f32.xlu1 %v7632_v43  ;;  %v5034_v42 = vpop.xlane.xlu1 %5033 }
 0x82d   :  { %v5510_v29 = vmul.f32 0.6931472, %v7634_v24  ;;  %v9541_v7 = vsub.f32 %v9246_v37, %v5034_v42  ;;  %v5356_v0 = vpop.xlane.xlu0 %5355 }
 0x82e   :  { %5737 = vst [vmem:[#allocation5 + $0x50] sm:$0xff] %v5657_v45  ;;  %7643 = vpow2.f32 %v5271_v12 }
 0x82f   :  { %v5658_v55 = vsub.f32 %v9192_v40, %v5510_v29  ;;  %v5273_v28 = vmul.f32 1.442695, %v9541_v7  ;;  %7645 = vlog2.f32 %v5356_v0 }
 0x830   :  { %v7636_v44 = vpop.eup %7635  ;;  %v5358_v4 = vpop.xlane.xlu1 %5357 }
 0x831   :  { %v7638_v36 = vpop.eup %7637  ;;  %5738 = vst [vmem:[#allocation5 + $0x58] sm:$0xff] %v5658_v55  ;;  %7647 = vpow2.f32 %v5273_v28  ;;  %5427 = vadd.xlane.f32.xlu0 %v7636_v44  ;;  %v5036_v3 = vpop.xlane.xlu0 %5035 }
 0x832   :  { %v5512_v51 = vmul.f32 0.6931472, %v7638_v36  ;;  %7649 = vlog2.f32 %v5358_v4  ;;  %v9546_v37 = vsub.f32 %v9260_v5, %v5036_v3  ;;  %v9885_v36 = vld [vmem:[#allocation38_spill] sm:$0xff] }
 0x833   :  { %v7640_v63 = vpop.eup %7639 }
 0x834   :  { %v7642_v1 = vpop.eup %7641  ;;  %v5659_v22 = vsub.f32 %v9206_v46, %v5512_v51  ;;  %v5275_v40 = vmul.f32 1.442695, %v9546_v37  ;;  %5429 = vadd.xlane.f32.xlu1 %v7640_v63  ;;  %v5038_v43 = vpop.xlane.xlu1 %5037 }
 0x835   :  { %v5514_v24 = vmul.f32 0.6931472, %v7642_v1  ;;  %v9551_v45 = vsub.f32 %v9267_v15, %v5038_v43  ;;  %v5360_v12 = vpop.xlane.xlu0 %5359 }
 0x836   :  { %5739 = vst [vmem:[#allocation5 + $0x60] sm:$0xff] %v5659_v22  ;;  %7651 = vpow2.f32 %v5275_v40  ;;  %v9886_v40 = vld [vmem:[#allocation39_spill] sm:$0xff] }
 0x837   :  { %v5660_v42 = vsub.f32 %v9213_v16, %v5514_v24  ;;  %v5277_v5 = vmul.f32 1.442695, %v9551_v45  ;;  %7653 = vlog2.f32 %v5360_v12 }
 0x838   :  { %v7644_v29 = vpop.eup %7643  ;;  %v5362_v0 = vpop.xlane.xlu1 %5361 }
 0x839   :  { %v7646_v55 = vpop.eup %7645  ;;  %5740 = vst [vmem:[#allocation5 + $0x68] sm:$0xff] %v5660_v42  ;;  %7655 = vpow2.f32 %v5277_v5  ;;  %5431 = vadd.xlane.f32.xlu0 %v7644_v29  ;;  %v5040_v46 = vpop.xlane.xlu0 %5039 }
 0x83a   :  { %v5516_v28 = vmul.f32 0.6931472, %v7646_v55  ;;  %7657 = vlog2.f32 %v5362_v0  ;;  %v9556_v15 = vsub.f32 %v9275_v52, %v5040_v46  ;;  %v9887_v46 = vld [vmem:[#allocation40_spill] sm:$0xff] }
 0x83b   :  { %v7648_v44 = vpop.eup %7647 }
 0x83c   :  { %v7650_v4 = vpop.eup %7649  ;;  %v5661_v3 = vsub.f32 %v9885_v36, %v5516_v28  ;;  %v5279_v16 = vmul.f32 1.442695, %v9556_v15  ;;  %5433 = vadd.xlane.f32.xlu1 %v7648_v44  ;;  %v5042_v51 = vpop.xlane.xlu1 %5041 }
 0x83d   :  { %v5518_v63 = vmul.f32 0.6931472, %v7650_v4  ;;  %v9561_v1 = vsub.f32 %v9282_v48, %v5042_v51  ;;  %v5364_v22 = vpop.xlane.xlu0 %5363  ;;  %v9888_v51 = vld [vmem:[#allocation41_spill] sm:$0xff] }
 0x83e   :  { %5741 = vst [vmem:[#allocation5 + $0x70] sm:$0xff] %v5661_v3  ;;  %7659 = vpow2.f32 %v5279_v16 }
 0x83f   :  { %v5662_v43 = vsub.f32 %v9886_v40, %v5518_v63  ;;  %v5281_v52 = vmul.f32 1.442695, %v9561_v1  ;;  %7661 = vlog2.f32 %v5364_v22 }
 0x840   :  { %v7652_v24 = vpop.eup %7651  ;;  %v5366_v12 = vpop.xlane.xlu1 %5365 }
 0x841   :  { %v7654_v42 = vpop.eup %7653  ;;  %5742 = vst [vmem:[#allocation5 + $0x78] sm:$0xff] %v5662_v43  ;;  %7663 = vpow2.f32 %v5281_v52  ;;  %5435 = vadd.xlane.f32.xlu0 %v7652_v24  ;;  %v5044_v5 = vpop.xlane.xlu0 %5043 }
 0x842   :  { %v5520_v29 = vmul.f32 0.6931472, %v7654_v42  ;;  %7665 = vlog2.f32 %v5366_v12  ;;  %v9566_v48 = vsub.f32 %v9296_v35, %v5044_v5 }
 0x843   :  { %v7656_v0 = vpop.eup %7655 }
 0x844   :  { %v7658_v55 = vpop.eup %7657  ;;  %v5663_v28 = vsub.f32 %v9887_v46, %v5520_v29  ;;  %v5283_v44 = vmul.f32 1.442695, %v9566_v48  ;;  %5437 = vadd.xlane.f32.xlu1 %v7656_v0  ;;  %v5046_v4 = vpop.xlane.xlu1 %5045 }
 0x845   :  { %v5522_v36 = vmul.f32 0.6931472, %v7658_v55  ;;  %v9571_v3 = vsub.f32 %v9303_v26, %v5046_v4  ;;  %v5368_v16 = vpop.xlane.xlu0 %5367 }
 0x846   :  { %5743 = vst [vmem:[#allocation5 + $0x80] sm:$0xff] %v5663_v28  ;;  %7667 = vpow2.f32 %v5283_v44  ;;  %v9889_v44 = vld [vmem:[#allocation8_spill] sm:$0xff] }
 0x847   :  { %v5664_v63 = vsub.f32 %v9888_v51, %v5522_v36  ;;  %v5285_v35 = vmul.f32 1.442695, %v9571_v3  ;;  %7669 = vlog2.f32 %v5368_v16 }
 0x848   :  { %v7660_v22 = vpop.eup %7659  ;;  %v5370_v40 = vpop.xlane.xlu1 %5369 }
 0x849   :  { %v7662_v43 = vpop.eup %7661  ;;  %5744 = vst [vmem:[#allocation5 + $0x88] sm:$0xff] %v5664_v63  ;;  %7671 = vpow2.f32 %v5285_v35  ;;  %5439 = vadd.xlane.f32.xlu0 %v7660_v22  ;;  %v5048_v52 = vpop.xlane.xlu0 %5047 }
 0x84a   :  { %v5524_v24 = vmul.f32 0.6931472, %v7662_v43  ;;  %7673 = vlog2.f32 %v5370_v40  ;;  %v9576_v26 = vsub.f32 %v9316_v58, %v5048_v52  ;;  %v9890_v40 = vld [vmem:[#allocation10_spill] sm:$0xff] }
 0x84b   :  { %v7664_v12 = vpop.eup %7663 }
 0x84c   :  { %v7666_v42 = vpop.eup %7665  ;;  %v5665_v5 = vsub.f32 %v9257_v9, %v5524_v24  ;;  %v5287_v29 = vmul.f32 1.442695, %v9576_v26  ;;  %5441 = vadd.xlane.f32.xlu1 %v7664_v12  ;;  %v5050_v0 = vpop.xlane.xlu1 %5049 }
 0x84d   :  { %v5526_v55 = vmul.f32 0.6931472, %v7666_v42  ;;  %v9581_v46 = vsub.f32 %v9323_v10, %v5050_v0  ;;  %v5372_v28 = vpop.xlane.xlu0 %5371 }
 0x84e   :  { %5745 = vst [vmem:[#allocation5 + $0x90] sm:$0xff] %v5665_v5  ;;  %7675 = vpow2.f32 %v5287_v29  ;;  %v9891_v29 = vld [vmem:[#allocation9_spill] sm:$0xff] }
 0x84f   :  { %v5666_v4 = vsub.f32 %v9889_v44, %v5526_v55  ;;  %v5289_v58 = vmul.f32 1.442695, %v9581_v46  ;;  %7677 = vlog2.f32 %v5372_v28 }
 0x850   :  { %v7668_v36 = vpop.eup %7667  ;;  %v5374_v16 = vpop.xlane.xlu1 %5373 }
 0x851   :  { %v7670_v51 = vpop.eup %7669  ;;  %5746 = vst [vmem:[#allocation5 + $0x98] sm:$0xff] %v5666_v4  ;;  %7679 = vpow2.f32 %v5289_v58  ;;  %5443 = vadd.xlane.f32.xlu0 %v7668_v36  ;;  %v5052_v9 = vpop.xlane.xlu0 %5051 }
 0x852   :  { %v5528_v63 = vmul.f32 0.6931472, %v7670_v51  ;;  %7681 = vlog2.f32 %v5374_v16  ;;  %v9586_v10 = vsub.f32 %v9337_v49, %v5052_v9  ;;  %v9892_v51 = vld [vmem:[#allocation11_spill] sm:$0xff] }
 0x853   :  { %v7672_v35 = vpop.eup %7671 }
 0x854   :  { %v7674_v22 = vpop.eup %7673  ;;  %v5667_v43 = vsub.f32 %v9890_v40, %v5528_v63  ;;  %v5291_v52 = vmul.f32 1.442695, %v9586_v10  ;;  %5445 = vadd.xlane.f32.xlu1 %v7672_v35  ;;  %v5054_v24 = vpop.xlane.xlu1 %5053 }
 0x855   :  { %v5530_v12 = vmul.f32 0.6931472, %v7674_v22  ;;  %v9591_v42 = vsub.f32 %v9344_v62, %v5054_v24  ;;  %v5376_v5 = vpop.xlane.xlu0 %5375 }
 0x856   :  { %5747 = vst [vmem:[#allocation5 + $0xa0] sm:$0xff] %v5667_v43  ;;  %7683 = vpow2.f32 %v5291_v52  ;;  %v9893_v52 = vld [vmem:[#allocation15_spill] sm:$0xff] }
 0x857   :  { %v5668_v0 = vsub.f32 %v9891_v29, %v5530_v12  ;;  %v5293_v49 = vmul.f32 1.442695, %v9591_v42  ;;  %7685 = vlog2.f32 %v5376_v5 }
 0x858   :  { %v7676_v55 = vpop.eup %7675  ;;  %v5378_v28 = vpop.xlane.xlu1 %5377 }
 0x859   :  { %v7678_v44 = vpop.eup %7677  ;;  %5748 = vst [vmem:[#allocation5 + $0xa8] sm:$0xff] %v5668_v0  ;;  %7687 = vpow2.f32 %v5293_v49  ;;  %5447 = vadd.xlane.f32.xlu0 %v7676_v55  ;;  %v5056_v4 = vpop.xlane.xlu0 %5055 }
 0x85a   :  { %v5532_v58 = vmul.f32 0.6931472, %v7678_v44  ;;  %7689 = vlog2.f32 %v5378_v28  ;;  %v9596_v62 = vsub.f32 %v9352_v32, %v5056_v4  ;;  %v9894_v44 = vld [vmem:[#allocation13_spill] sm:$0xff] }
 0x85b   :  { %v7680_v36 = vpop.eup %7679 }
 0x85c   :  { %v7682_v16 = vpop.eup %7681  ;;  %v5669_v9 = vsub.f32 %v9892_v51, %v5532_v58  ;;  %v5295_v63 = vmul.f32 1.442695, %v9596_v62  ;;  %5449 = vadd.xlane.f32.xlu1 %v7680_v36  ;;  %v5058_v35 = vpop.xlane.xlu1 %5057 }
 0x85d   :  { %v5534_v22 = vmul.f32 0.6931472, %v7682_v16  ;;  %v9601_v40 = vsub.f32 %v9359_v61, %v5058_v35  ;;  %v5380_v43 = vpop.xlane.xlu0 %5379 }
 0x85e   :  { %5749 = vst [vmem:[#allocation5 + $0xb0] sm:$0xff] %v5669_v9  ;;  %7691 = vpow2.f32 %v5295_v63  ;;  %v9895_v63 = vld [vmem:[#allocation14_spill] sm:$0xff] }
 0x85f   :  { %v5670_v24 = vsub.f32 %v9893_v52, %v5534_v22  ;;  %v5297_v32 = vmul.f32 1.442695, %v9601_v40  ;;  %7693 = vlog2.f32 %v5380_v43 }
 0x860   :  { %v7684_v12 = vpop.eup %7683  ;;  %v5382_v5 = vpop.xlane.xlu1 %5381 }
 0x861   :  { %v7686_v29 = vpop.eup %7685  ;;  %5750 = vst [vmem:[#allocation5 + $0xb8] sm:$0xff] %v5670_v24  ;;  %7695 = vpow2.f32 %v5297_v32  ;;  %5451 = vadd.xlane.f32.xlu0 %v7684_v12  ;;  %v5060_v0 = vpop.xlane.xlu0 %5059 }
 0x862   :  { %v5536_v49 = vmul.f32 0.6931472, %v7686_v29  ;;  %7697 = vlog2.f32 %v5382_v5  ;;  %v9606_v61 = vsub.f32 %v9373_v34, %v5060_v0  ;;  %v9896_v29 = vld [vmem:[#allocation12_spill] sm:$0xff] }
 0x863   :  { %v7688_v55 = vpop.eup %7687 }
 0x864   :  { %v7690_v28 = vpop.eup %7689  ;;  %v5671_v4 = vsub.f32 %v9894_v44, %v5536_v49  ;;  %v5299_v58 = vmul.f32 1.442695, %v9606_v61  ;;  %5453 = vadd.xlane.f32.xlu1 %v7688_v55  ;;  %v5062_v36 = vpop.xlane.xlu1 %5061 }
 0x865   :  { %v5538_v16 = vmul.f32 0.6931472, %v7690_v28  ;;  %v9611_v51 = vsub.f32 %v9380_v38, %v5062_v36  ;;  %v5384_v9 = vpop.xlane.xlu0 %5383 }
 0x866   :  { %5751 = vst [vmem:[#allocation5 + $0xc0] sm:$0xff] %v5671_v4  ;;  %7699 = vpow2.f32 %v5299_v58  ;;  %v9897_v58 = vld [vmem:[#allocation16_spill] sm:$0xff] }
 0x867   :  { %v5672_v35 = vsub.f32 %v9895_v63, %v5538_v16  ;;  %v5301_v34 = vmul.f32 1.442695, %v9611_v51  ;;  %7701 = vlog2.f32 %v5384_v9 }
 0x868   :  { %v7692_v22 = vpop.eup %7691  ;;  %v5386_v43 = vpop.xlane.xlu1 %5385 }
 0x869   :  { %v7694_v52 = vpop.eup %7693  ;;  %5752 = vst [vmem:[#allocation5 + $0xc8] sm:$0xff] %v5672_v35  ;;  %7703 = vpow2.f32 %v5301_v34  ;;  %5455 = vadd.xlane.f32.xlu0 %v7692_v22  ;;  %v5064_v24 = vpop.xlane.xlu0 %5063 }
 0x86a   :  { %v5540_v32 = vmul.f32 0.6931472, %v7694_v52  ;;  %7705 = vlog2.f32 %v5386_v43  ;;  %v9616_v38 = vsub.f32 %v9388_v39, %v5064_v24  ;;  %v9898_v52 = vld [vmem:[#allocation17_spill] sm:$0xff] }
 0x86b   :  { %v7696_v12 = vpop.eup %7695 }
 0x86c   :  { %v7698_v5 = vpop.eup %7697  ;;  %v5673_v0 = vsub.f32 %v9896_v29, %v5540_v32  ;;  %v5303_v49 = vmul.f32 1.442695, %v9616_v38  ;;  %5457 = vadd.xlane.f32.xlu1 %v7696_v12  ;;  %v5066_v55 = vpop.xlane.xlu1 %5065 }
 0x86d   :  { %v5542_v28 = vmul.f32 0.6931472, %v7698_v5  ;;  %v9621_v44 = vsub.f32 %v9395_v20, %v5066_v55  ;;  %v5388_v4 = vpop.xlane.xlu0 %5387 }
 0x86e   :  { %5753 = vst [vmem:[#allocation5 + $0xd0] sm:$0xff] %v5673_v0  ;;  %7707 = vpow2.f32 %v5303_v49  ;;  %v9899_v49 = vld [vmem:[#allocation19_spill] sm:$0xff] }
 0x86f   :  { %v5674_v36 = vsub.f32 %v9897_v58, %v5542_v28  ;;  %v5305_v39 = vmul.f32 1.442695, %v9621_v44  ;;  %7709 = vlog2.f32 %v5388_v4 }
 0x870   :  { %v7700_v16 = vpop.eup %7699  ;;  %v5390_v9 = vpop.xlane.xlu1 %5389 }
 0x871   :  { %v7702_v63 = vpop.eup %7701  ;;  %5754 = vst [vmem:[#allocation5 + $0xd8] sm:$0xff] %v5674_v36  ;;  %7711 = vpow2.f32 %v5305_v39  ;;  %5459 = vadd.xlane.f32.xlu0 %v7700_v16  ;;  %v5068_v35 = vpop.xlane.xlu0 %5067 }
 0x872   :  { %v5544_v34 = vmul.f32 0.6931472, %v7702_v63  ;;  %7713 = vlog2.f32 %v5390_v9  ;;  %v9626_v20 = vsub.f32 %v9405_v17, %v5068_v35  ;;  %v9900_v63 = vld [vmem:[#allocation18_spill] sm:$0xff] }
 0x873   :  { %v7704_v22 = vpop.eup %7703 }
 0x874   :  { %v7706_v43 = vpop.eup %7705  ;;  %v5675_v24 = vsub.f32 %v9898_v52, %v5544_v34  ;;  %v5307_v32 = vmul.f32 1.442695, %v9626_v20  ;;  %5461 = vadd.xlane.f32.xlu1 %v7704_v22  ;;  %v5070_v12 = vpop.xlane.xlu1 %5069 }
 0x875   :  { %v5546_v5 = vmul.f32 0.6931472, %v7706_v43  ;;  %v9631_v29 = vsub.f32 %v9412_v57, %v5070_v12  ;;  %v5392_v0 = vpop.xlane.xlu0 %5391 }
 0x876   :  { %5755 = vst [vmem:[#allocation5 + $0xe0] sm:$0xff] %v5675_v24  ;;  %7715 = vpow2.f32 %v5307_v32  ;;  %v9901_v32 = vld [vmem:[#allocation20_spill] sm:$0xff] }
 0x877   :  { %v5676_v55 = vsub.f32 %v9899_v49, %v5546_v5  ;;  %v5309_v17 = vmul.f32 1.442695, %v9631_v29  ;;  %7717 = vlog2.f32 %v5392_v0 }
 0x878   :  { %v7708_v28 = vpop.eup %7707  ;;  %v5394_v4 = vpop.xlane.xlu1 %5393 }
 0x879   :  { %v7710_v58 = vpop.eup %7709  ;;  %5756 = vst [vmem:[#allocation5 + $0xe8] sm:$0xff] %v5676_v55  ;;  %7719 = vpow2.f32 %v5309_v17  ;;  %5463 = vadd.xlane.f32.xlu0 %v7708_v28  ;;  %v5072_v36 = vpop.xlane.xlu0 %5071 }
 0x87a   :  { %v5548_v39 = vmul.f32 0.6931472, %v7710_v58  ;;  %7721 = vlog2.f32 %v5394_v4  ;;  %v9636_v57 = vsub.f32 %v9424_v14, %v5072_v36 }
 0x87b   :  { %v7712_v16 = vpop.eup %7711 }
 0x87c   :  { %v7714_v9 = vpop.eup %7713  ;;  %v5677_v35 = vsub.f32 %v9900_v63, %v5548_v39  ;;  %v5311_v34 = vmul.f32 1.442695, %v9636_v57  ;;  %5465 = vadd.xlane.f32.xlu1 %v7712_v16  ;;  %v5074_v22 = vpop.xlane.xlu1 %5073  ;;  %v9902_v63 = vld [vmem:[#allocation21_spill] sm:$0xff] }
 0x87d   :  { %v5550_v43 = vmul.f32 0.6931472, %v7714_v9  ;;  %v9641_v52 = vsub.f32 %v9427_v23, %v5074_v22  ;;  %v5396_v24 = vpop.xlane.xlu0 %5395 }
 0x87e   :  { %5757 = vst [vmem:[#allocation5 + $0xf0] sm:$0xff] %v5677_v35  ;;  %7723 = vpow2.f32 %v5311_v34 }
 0x87f   :  { %v5678_v12 = vsub.f32 %v9901_v32, %v5550_v43  ;;  %v5313_v14 = vmul.f32 1.442695, %v9641_v52  ;;  %7725 = vlog2.f32 %v5396_v24 }
 0x880   :  { %v7716_v5 = vpop.eup %7715  ;;  %v5398_v0 = vpop.xlane.xlu1 %5397 }
 0x881   :  { %v7718_v49 = vpop.eup %7717  ;;  %5758 = vst [vmem:[#allocation5 + $0xf8] sm:$0xff] %v5678_v12  ;;  %7727 = vpow2.f32 %v5313_v14  ;;  %5467 = vadd.xlane.f32.xlu0 %v7716_v5  ;;  %v5076_v55 = vpop.xlane.xlu0 %5075 }
 0x882   :  { %v5552_v17 = vmul.f32 0.6931472, %v7718_v49  ;;  %7729 = vlog2.f32 %v5398_v0  ;;  %v9646_v23 = vsub.f32 %v9433_v2, %v5076_v55  ;;  %v9903_v0 = vld [vmem:[#allocation23_spill] sm:$0xff] }
 0x883   :  { %v7720_v28 = vpop.eup %7719 }
 0x884   :  { %v7722_v4 = vpop.eup %7721  ;;  %v5679_v58 = vsub.f32 %v9391_v6, %v5552_v17  ;;  %v5315_v36 = vmul.f32 1.442695, %v9646_v23  ;;  %5469 = vadd.xlane.f32.xlu1 %v7720_v28  ;;  %v5078_v39 = vpop.xlane.xlu1 %5077  ;;  %v9904_v17 = vld [vmem:[#allocation22_spill] sm:$0xff] }
 0x885   :  { %v5554_v16 = vmul.f32 0.6931472, %v7722_v4  ;;  %v9651_v9 = vsub.f32 %v9437_v33, %v5078_v39 }
 0x886   :  { %5759 = vst [vmem:[#allocation5 + $0x100] sm:$0xff] %v5679_v58  ;;  %7731 = vpow2.f32 %v5315_v36 }
 0x887   :  { %v5680_v35 = vsub.f32 %v9902_v63, %v5554_v16  ;;  %v5317_v34 = vmul.f32 1.442695, %v9651_v9  ;;  %v5080_v2 = vpop.xlane.xlu0 %5079 }
 0x888   :  { %v7724_v22 = vpop.eup %7723  ;;  %v9656_v43 = vsub.f32 %v9454_v59, %v5080_v2 }
 0x889   :  { %v7726_v6 = vpop.eup %7725  ;;  %5760 = vst [vmem:[#allocation5 + $0x108] sm:$0xff] %v5680_v35  ;;  %7733 = vpow2.f32 %v5317_v34  ;;  %5471 = vadd.xlane.f32.xlu0 %v7724_v22  ;;  %v5082_v24 = vpop.xlane.xlu1 %5081 }
 0x88a   :  { %v5556_v32 = vmul.f32 0.6931472, %v7726_v6  ;;  %v5319_v33 = vmul.f32 1.442695, %v9656_v43  ;;  %v9660_v12 = vsub.f32 %v9462_v19, %v5082_v24 }
 0x88b   :  { %v7728_v14 = vpop.eup %7727 }
 0x88c   :  { %v7730_v5 = vpop.eup %7729  ;;  %v5681_v49 = vsub.f32 %v9903_v0, %v5556_v32  ;;  %7735 = vpow2.f32 %v5319_v33  ;;  %v5321_v55 = vmul.f32 1.442695, %v9660_v12  ;;  %5473 = vadd.xlane.f32.xlu1 %v7728_v14 }
 0x88d   :  { %v5558_v59 = vmul.f32 0.6931472, %v7730_v5 }
 0x88e   :  { %5761 = vst [vmem:[#allocation5 + $0x110] sm:$0xff] %v5681_v49  ;;  %7737 = vpow2.f32 %v5321_v55 }
 0x88f   :  { %v5682_v28 = vsub.f32 %v9904_v17, %v5558_v59  ;;  %v5084_v4 = vpop.xlane.xlu0 %5083 }
 0x890   :  { %v7732_v58 = vpop.eup %7731  ;;  %v9666_v36 = vsub.f32 %v9476_v21, %v5084_v4 }
 0x891   :  { %5762 = vst [vmem:[#allocation5 + $0x118] sm:$0xff] %v5682_v28  ;;  %5475 = vadd.xlane.f32.xlu0 %v7732_v58  ;;  %v5086_v19 = vpop.xlane.xlu1 %5085 }
 0x892   :  { %v5323_v39 = vmul.f32 1.442695, %v9666_v36  ;;  %v9670_v16 = vsub.f32 %v9482_v8, %v5086_v19 }
 0x893   :  { %v7734_v63 = vpop.eup %7733  ;;  %v5400_v35 = vpop.xlane.xlu0 %5399 }
 0x894   :  { %7739 = vpow2.f32 %v5323_v39  ;;  %v5325_v34 = vmul.f32 1.442695, %v9670_v16  ;;  %5477 = vadd.xlane.f32.xlu1 %v7734_v63  ;;  %v9905_v39 = vld [vmem:[#allocation24_spill] sm:$0xff] }
 0x895   :  { %7741 = vlog2.f32 %v5400_v35  ;;  %v5402_v2 = vpop.xlane.xlu1 %5401  ;;  %v9906_v35 = vld [vmem:[#allocation25_spill] sm:$0xff] }
 0x896   :  { %v7736_v22 = vpop.eup %7735  ;;  %7743 = vpow2.f32 %v5325_v34 }
 0x897   :  { %7745 = vlog2.f32 %v5402_v2  ;;  %5479 = vadd.xlane.f32.xlu0 %v7736_v22  ;;  %v5404_v21 = vpop.xlane.xlu0 %5403 }
 0x898   :  { %v7738_v6 = vpop.eup %7737  ;;  %7747 = vlog2.f32 %v5404_v21 }
 0x899   :  { %5481 = vadd.xlane.f32.xlu1 %v7738_v6  ;;  %v5406_v24 = vpop.xlane.xlu1 %5405  ;;  %v9907_v6 = vld [vmem:[#allocation26_spill] sm:$0xff] }
 0x89a   :  { %7749 = vlog2.f32 %v5406_v24 }
 0x89b   :  { %v5408_v8 = vpop.xlane.xlu0 %5407 }
 0x89c   :  { %7751 = vlog2.f32 %v5408_v8 }
 0x89d   :  { %v5410_v32 = vpop.xlane.xlu1 %5409 }
 0x89e   :  { %v7740_v33 = vpop.eup %7739  ;;  %7753 = vlog2.f32 %v5410_v32 }
 0x89f   :  { %v7742_v14 = vpop.eup %7741  ;;  %5483 = vadd.xlane.f32.xlu0 %v7740_v33  ;;  %v5412_v5 = vpop.xlane.xlu0 %5411 }
 0x8a0   :  { %v7744_v0 = vpop.eup %7743  ;;  %v5560_v49 = vmul.f32 0.6931472, %v7742_v14  ;;  %7755 = vlog2.f32 %v5412_v5 }
 0x8a1   :  { %v7746_v55 = vpop.eup %7745  ;;  %5485 = vadd.xlane.f32.xlu1 %v7744_v0  ;;  %v5414_v59 = vpop.xlane.xlu1 %5413 }
 0x8a2   :  { %v7748_v17 = vpop.eup %7747  ;;  %v5683_v28 = vsub.f32 %v9440_v30, %v5560_v49  ;;  %v5562_v4 = vmul.f32 0.6931472, %v7746_v55  ;;  %7757 = vlog2.f32 %v5414_v59 }
 0x8a3   :  { %v5564_v58 = vmul.f32 0.6931472, %v7748_v17 }
 0x8a4   :  { %v7750_v19 = vpop.eup %7749  ;;  %5763 = vst [vmem:[#allocation5 + $0x120] sm:$0xff] %v5683_v28  ;;  %v5684_v63 = vsub.f32 %v9905_v39, %v5562_v4 }
 0x8a5   :  { %v5685_v34 = vsub.f32 %v9906_v35, %v5564_v58  ;;  %v5566_v2 = vmul.f32 0.6931472, %v7750_v19 }
 0x8a6   :  { %v7752_v22 = vpop.eup %7751  ;;  %5764 = vst [vmem:[#allocation5 + $0x128] sm:$0xff] %v5684_v63  ;;  %v5416_v21 = vpop.xlane.xlu0 %5415 }
 0x8a7   :  { %5765 = vst [vmem:[#allocation5 + $0x130] sm:$0xff] %v5685_v34  ;;  %v5686_v24 = vsub.f32 %v9907_v6, %v5566_v2  ;;  %v5568_v8 = vmul.f32 0.6931472, %v7752_v22  ;;  %7759 = vlog2.f32 %v5416_v21 }
 0x8a8   :  { %v7754_v32 = vpop.eup %7753 }
 0x8a9   :  { %5766 = vst [vmem:[#allocation5 + $0x138] sm:$0xff] %v5686_v24  ;;  %v5687_v30 = vsub.f32 %v9466_v53, %v5568_v8  ;;  %v5570_v33 = vmul.f32 0.6931472, %v7754_v32  ;;  %v5418_v14 = vpop.xlane.xlu1 %5417 }
 0x8aa   :  { %v7756_v5 = vpop.eup %7755  ;;  %7761 = vlog2.f32 %v5418_v14 }
 0x8ab   :  { %5767 = vst [vmem:[#allocation5 + $0x140] sm:$0xff] %v5687_v30  ;;  %v5688_v0 = vsub.f32 %v9471_v60, %v5570_v33  ;;  %v5572_v49 = vmul.f32 0.6931472, %v7756_v5 }
 0x8ac   :  { %v7758_v55 = vpop.eup %7757 }
 0x8ad   :  { %5768 = vst [vmem:[#allocation5 + $0x148] sm:$0xff] %v5688_v0  ;;  %v5689_v59 = vsub.f32 %v9485_v11, %v5572_v49  ;;  %v5574_v17 = vmul.f32 0.6931472, %v7758_v55 }
 0x8ae   :  { %v5420_v28 = vpop.xlane.xlu0 %5419 }
 0x8af   :  { %5769 = vst [vmem:[#allocation5 + $0x150] sm:$0xff] %v5689_v59  ;;  %v5690_v4 = vsub.f32 %v9491_v47, %v5574_v17  ;;  %7763 = vlog2.f32 %v5420_v28 }
 0x8b1   :  { %v7760_v58 = vpop.eup %7759  ;;  %5770 = vst [vmem:[#allocation5 + $0x158] sm:$0xff] %v5690_v4  ;;  %v5422_v53 = vpop.xlane.xlu1 %5421 }
 0x8b2   :  { %v5576_v19 = vmul.f32 0.6931472, %v7760_v58  ;;  %7765 = vlog2.f32 %v5422_v53 }
 0x8b4   :  { %v7762_v39 = vpop.eup %7761  ;;  %v5691_v63 = vsub.f32 %v9496_v13, %v5576_v19 }
 0x8b5   :  { %v5578_v60 = vmul.f32 0.6931472, %v7762_v39 }
 0x8b6   :  { %5771 = vst [vmem:[#allocation5 + $0x160] sm:$0xff] %v5691_v63  ;;  %v5424_v35 = vpop.xlane.xlu0 %5423 }
 0x8b7   :  { %v5692_v34 = vsub.f32 %v9501_v41, %v5578_v60  ;;  %7767 = vlog2.f32 %v5424_v35 }
 0x8b9   :  { %v7764_v11 = vpop.eup %7763  ;;  %5772 = vst [vmem:[#allocation5 + $0x168] sm:$0xff] %v5692_v34  ;;  %v5426_v2 = vpop.xlane.xlu1 %5425 }
 0x8ba   :  { %v5580_v22 = vmul.f32 0.6931472, %v7764_v11  ;;  %7769 = vlog2.f32 %v5426_v2 }
 0x8bc   :  { %v7766_v47 = vpop.eup %7765  ;;  %v5693_v21 = vsub.f32 %v9506_v56, %v5580_v22 }
 0x8bd   :  { %v5582_v6 = vmul.f32 0.6931472, %v7766_v47 }
 0x8be   :  { %5773 = vst [vmem:[#allocation5 + $0x170] sm:$0xff] %v5693_v21  ;;  %v5428_v24 = vpop.xlane.xlu0 %5427 }
 0x8bf   :  { %v5694_v8 = vsub.f32 %v9511_v54, %v5582_v6  ;;  %7771 = vlog2.f32 %v5428_v24 }
 0x8c1   :  { %v7768_v13 = vpop.eup %7767  ;;  %5774 = vst [vmem:[#allocation5 + $0x178] sm:$0xff] %v5694_v8  ;;  %v5430_v32 = vpop.xlane.xlu1 %5429 }
 0x8c2   :  { %v5584_v30 = vmul.f32 0.6931472, %v7768_v13  ;;  %7773 = vlog2.f32 %v5430_v32 }
 0x8c4   :  { %v7770_v41 = vpop.eup %7769  ;;  %v5695_v33 = vsub.f32 %v9516_v27, %v5584_v30 }
 0x8c5   :  { %v5586_v14 = vmul.f32 0.6931472, %v7770_v41 }
 0x8c6   :  { %5775 = vst [vmem:[#allocation5 + $0x180] sm:$0xff] %v5695_v33  ;;  %v5432_v5 = vpop.xlane.xlu0 %5431 }
 0x8c7   :  { %v5696_v0 = vsub.f32 %v9521_v50, %v5586_v14  ;;  %7775 = vlog2.f32 %v5432_v5 }
 0x8c9   :  { %v7772_v56 = vpop.eup %7771  ;;  %5776 = vst [vmem:[#allocation5 + $0x188] sm:$0xff] %v5696_v0  ;;  %v5434_v49 = vpop.xlane.xlu1 %5433 }
 0x8ca   :  { %v5588_v55 = vmul.f32 0.6931472, %v7772_v56  ;;  %7777 = vlog2.f32 %v5434_v49 }
 0x8cc   :  { %v7774_v54 = vpop.eup %7773  ;;  %v5697_v59 = vsub.f32 %v9526_v31, %v5588_v55 }
 0x8cd   :  { %v5590_v17 = vmul.f32 0.6931472, %v7774_v54 }
 0x8ce   :  { %5777 = vst [vmem:[#allocation5 + $0x190] sm:$0xff] %v5697_v59  ;;  %v5436_v28 = vpop.xlane.xlu0 %5435 }
 0x8cf   :  { %v5698_v4 = vsub.f32 %v9531_v18, %v5590_v17  ;;  %7779 = vlog2.f32 %v5436_v28 }
 0x8d1   :  { %v7776_v27 = vpop.eup %7775  ;;  %5778 = vst [vmem:[#allocation5 + $0x198] sm:$0xff] %v5698_v4  ;;  %v5438_v58 = vpop.xlane.xlu1 %5437 }
 0x8d2   :  { %v5592_v53 = vmul.f32 0.6931472, %v7776_v27  ;;  %7781 = vlog2.f32 %v5438_v58 }
 0x8d4   :  { %v7778_v50 = vpop.eup %7777  ;;  %v5699_v19 = vsub.f32 %v9536_v25, %v5592_v53 }
 0x8d5   :  { %v5594_v39 = vmul.f32 0.6931472, %v7778_v50 }
 0x8d6   :  { %5779 = vst [vmem:[#allocation5 + $0x1a0] sm:$0xff] %v5699_v19  ;;  %v5440_v63 = vpop.xlane.xlu0 %5439 }
 0x8d7   :  { %v5700_v60 = vsub.f32 %v9541_v7, %v5594_v39  ;;  %7783 = vlog2.f32 %v5440_v63 }
 0x8d9   :  { %v7780_v31 = vpop.eup %7779  ;;  %5780 = vst [vmem:[#allocation5 + $0x1a8] sm:$0xff] %v5700_v60  ;;  %v5442_v35 = vpop.xlane.xlu1 %5441 }
 0x8da   :  { %v5596_v34 = vmul.f32 0.6931472, %v7780_v31  ;;  %7785 = vlog2.f32 %v5442_v35 }
 0x8dc   :  { %v7782_v18 = vpop.eup %7781  ;;  %v5701_v11 = vsub.f32 %v9546_v37, %v5596_v34 }
 0x8dd   :  { %v5598_v2 = vmul.f32 0.6931472, %v7782_v18 }
 0x8de   :  { %5781 = vst [vmem:[#allocation5 + $0x1b0] sm:$0xff] %v5701_v11  ;;  %v5444_v22 = vpop.xlane.xlu0 %5443 }
 0x8df   :  { %v5702_v47 = vsub.f32 %v9551_v45, %v5598_v2  ;;  %7787 = vlog2.f32 %v5444_v22 }
 0x8e1   :  { %v7784_v25 = vpop.eup %7783  ;;  %5782 = vst [vmem:[#allocation5 + $0x1b8] sm:$0xff] %v5702_v47  ;;  %v5446_v21 = vpop.xlane.xlu1 %5445 }
 0x8e2   :  { %v5600_v6 = vmul.f32 0.6931472, %v7784_v25  ;;  %7789 = vlog2.f32 %v5446_v21 }
 0x8e4   :  { %v7786_v7 = vpop.eup %7785  ;;  %v5703_v24 = vsub.f32 %v9556_v15, %v5600_v6 }
 0x8e5   :  { %v5602_v8 = vmul.f32 0.6931472, %v7786_v7 }
 0x8e6   :  { %5783 = vst [vmem:[#allocation5 + $0x1c0] sm:$0xff] %v5703_v24  ;;  %v5448_v13 = vpop.xlane.xlu0 %5447 }
 0x8e7   :  { %v5704_v32 = vsub.f32 %v9561_v1, %v5602_v8  ;;  %7791 = vlog2.f32 %v5448_v13 }
 0x8e9   :  { %v7788_v37 = vpop.eup %7787  ;;  %5784 = vst [vmem:[#allocation5 + $0x1c8] sm:$0xff] %v5704_v32  ;;  %v5450_v30 = vpop.xlane.xlu1 %5449 }
 0x8ea   :  { %v5604_v41 = vmul.f32 0.6931472, %v7788_v37  ;;  %7793 = vlog2.f32 %v5450_v30 }
 0x8ec   :  { %v7790_v45 = vpop.eup %7789  ;;  %v5705_v33 = vsub.f32 %v9566_v48, %v5604_v41 }
 0x8ed   :  { %v5606_v14 = vmul.f32 0.6931472, %v7790_v45 }
 0x8ee   :  { %5785 = vst [vmem:[#allocation5 + $0x1d0] sm:$0xff] %v5705_v33  ;;  %v5452_v5 = vpop.xlane.xlu0 %5451 }
 0x8ef   :  { %v5706_v0 = vsub.f32 %v9571_v3, %v5606_v14  ;;  %7795 = vlog2.f32 %v5452_v5 }
 0x8f1   :  { %v7792_v15 = vpop.eup %7791  ;;  %5786 = vst [vmem:[#allocation5 + $0x1d8] sm:$0xff] %v5706_v0  ;;  %v5454_v56 = vpop.xlane.xlu1 %5453 }
 0x8f2   :  { %v5608_v49 = vmul.f32 0.6931472, %v7792_v15  ;;  %7797 = vlog2.f32 %v5454_v56 }
 0x8f4   :  { %v7794_v1 = vpop.eup %7793  ;;  %v5707_v55 = vsub.f32 %v9576_v26, %v5608_v49 }
 0x8f5   :  { %v5610_v54 = vmul.f32 0.6931472, %v7794_v1 }
 0x8f6   :  { %5787 = vst [vmem:[#allocation5 + $0x1e0] sm:$0xff] %v5707_v55  ;;  %v5456_v59 = vpop.xlane.xlu0 %5455 }
 0x8f7   :  { %v5708_v17 = vsub.f32 %v9581_v46, %v5610_v54  ;;  %7799 = vlog2.f32 %v5456_v59 }
 0x8f9   :  { %v7796_v48 = vpop.eup %7795  ;;  %5788 = vst [vmem:[#allocation5 + $0x1e8] sm:$0xff] %v5708_v17  ;;  %v5458_v28 = vpop.xlane.xlu1 %5457 }
 0x8fa   :  { %v5612_v4 = vmul.f32 0.6931472, %v7796_v48  ;;  %7801 = vlog2.f32 %v5458_v28 }
 0x8fc   :  { %v7798_v3 = vpop.eup %7797  ;;  %v5709_v27 = vsub.f32 %v9586_v10, %v5612_v4 }
 0x8fd   :  { %v5614_v58 = vmul.f32 0.6931472, %v7798_v3 }
 0x8fe   :  { %5789 = vst [vmem:[#allocation5 + $0x1f0] sm:$0xff] %v5709_v27  ;;  %v5460_v53 = vpop.xlane.xlu0 %5459 }
 0x8ff   :  { %v5710_v50 = vsub.f32 %v9591_v42, %v5614_v58  ;;  %7803 = vlog2.f32 %v5460_v53 }
 0x901   :  { %v7800_v26 = vpop.eup %7799  ;;  %5790 = vst [vmem:[#allocation5 + $0x1f8] sm:$0xff] %v5710_v50  ;;  %v5462_v19 = vpop.xlane.xlu1 %5461 }
 0x902   :  { %v5616_v39 = vmul.f32 0.6931472, %v7800_v26  ;;  %7805 = vlog2.f32 %v5462_v19 }
 0x904   :  { %v7802_v46 = vpop.eup %7801  ;;  %v5711_v63 = vsub.f32 %v9596_v62, %v5616_v39 }
 0x905   :  { %v5618_v60 = vmul.f32 0.6931472, %v7802_v46 }
 0x906   :  { %5791 = vst [vmem:[#allocation5 + $0x200] sm:$0xff] %v5711_v63  ;;  %v5464_v31 = vpop.xlane.xlu0 %5463 }
 0x907   :  { %v5712_v35 = vsub.f32 %v9601_v40, %v5618_v60  ;;  %7807 = vlog2.f32 %v5464_v31 }
 0x909   :  { %v7804_v10 = vpop.eup %7803  ;;  %5792 = vst [vmem:[#allocation5 + $0x208] sm:$0xff] %v5712_v35  ;;  %v5466_v34 = vpop.xlane.xlu1 %5465 }
 0x90a   :  { %v5620_v18 = vmul.f32 0.6931472, %v7804_v10  ;;  %7809 = vlog2.f32 %v5466_v34 }
 0x90c   :  { %v7806_v42 = vpop.eup %7805  ;;  %v5713_v11 = vsub.f32 %v9606_v61, %v5620_v18 }
 0x90d   :  { %v5622_v2 = vmul.f32 0.6931472, %v7806_v42 }
 0x90e   :  { %5793 = vst [vmem:[#allocation5 + $0x210] sm:$0xff] %v5713_v11  ;;  %v5468_v22 = vpop.xlane.xlu0 %5467 }
 0x90f   :  { %v5714_v47 = vsub.f32 %v9611_v51, %v5622_v2  ;;  %7811 = vlog2.f32 %v5468_v22 }
 0x911   :  { %v7808_v62 = vpop.eup %7807  ;;  %5794 = vst [vmem:[#allocation5 + $0x218] sm:$0xff] %v5714_v47  ;;  %v5470_v25 = vpop.xlane.xlu1 %5469 }
 0x912   :  { %v5624_v21 = vmul.f32 0.6931472, %v7808_v62  ;;  %7813 = vlog2.f32 %v5470_v25 }
 0x914   :  { %v7810_v40 = vpop.eup %7809  ;;  %v5715_v6 = vsub.f32 %v9616_v38, %v5624_v21 }
 0x915   :  { %v5626_v7 = vmul.f32 0.6931472, %v7810_v40 }
 0x916   :  { %5795 = vst [vmem:[#allocation5 + $0x220] sm:$0xff] %v5715_v6  ;;  %v5472_v24 = vpop.xlane.xlu0 %5471 }
 0x917   :  { %v5716_v8 = vsub.f32 %v9621_v44, %v5626_v7  ;;  %7815 = vlog2.f32 %v5472_v24 }
 0x919   :  { %v7812_v61 = vpop.eup %7811  ;;  %5796 = vst [vmem:[#allocation5 + $0x228] sm:$0xff] %v5716_v8  ;;  %v5474_v13 = vpop.xlane.xlu1 %5473 }
 0x91a   :  { %v5628_v32 = vmul.f32 0.6931472, %v7812_v61  ;;  %7817 = vlog2.f32 %v5474_v13 }
 0x91c   :  { %v7814_v51 = vpop.eup %7813  ;;  %v5717_v37 = vsub.f32 %v9626_v20, %v5628_v32 }
 0x91d   :  { %v5630_v30 = vmul.f32 0.6931472, %v7814_v51 }
 0x91e   :  { %5797 = vst [vmem:[#allocation5 + $0x230] sm:$0xff] %v5717_v37  ;;  %v5476_v41 = vpop.xlane.xlu0 %5475 }
 0x91f   :  { %v5718_v45 = vsub.f32 %v9631_v29, %v5630_v30  ;;  %7819 = vlog2.f32 %v5476_v41 }
 0x921   :  { %v7816_v38 = vpop.eup %7815  ;;  %5798 = vst [vmem:[#allocation5 + $0x238] sm:$0xff] %v5718_v45  ;;  %v5478_v33 = vpop.xlane.xlu1 %5477 }
 0x922   :  { %v5632_v14 = vmul.f32 0.6931472, %v7816_v38  ;;  %7821 = vlog2.f32 %v5478_v33 }
 0x924   :  { %v7818_v44 = vpop.eup %7817  ;;  %v5719_v5 = vsub.f32 %v9636_v57, %v5632_v14  ;;  %v5480_v0 = vpop.xlane.xlu0 %5479 }
 0x925   :  { %v5634_v15 = vmul.f32 0.6931472, %v7818_v44  ;;  %7823 = vlog2.f32 %v5480_v0 }
 0x926   :  { %5799 = vst [vmem:[#allocation5 + $0x240] sm:$0xff] %v5719_v5  ;;  %v5482_v56 = vpop.xlane.xlu1 %5481 }
 0x927   :  { %v5720_v20 = vsub.f32 %v9641_v52, %v5634_v15  ;;  %7825 = vlog2.f32 %v5482_v56 }
 0x929   :  { %v7820_v49 = vpop.eup %7819  ;;  %5800 = vst [vmem:[#allocation5 + $0x248] sm:$0xff] %v5720_v20 }
 0x92a   :  { %v5636_v29 = vmul.f32 0.6931472, %v7820_v49 }
 0x92c   :  { %v7822_v1 = vpop.eup %7821  ;;  %v5721_v55 = vsub.f32 %v9646_v23, %v5636_v29  ;;  %v5484_v54 = vpop.xlane.xlu0 %5483 }
 0x92d   :  { %v5638_v59 = vmul.f32 0.6931472, %v7822_v1  ;;  %7827 = vlog2.f32 %v5484_v54 }
 0x92e   :  { %5801 = vst [vmem:[#allocation5 + $0x250] sm:$0xff] %v5721_v55  ;;  %v5486_v17 = vpop.xlane.xlu1 %5485 }
 0x92f   :  { %v7824_v57 = vpop.eup %7823  ;;  %v5722_v48 = vsub.f32 %v9651_v9, %v5638_v59  ;;  %7829 = vlog2.f32 %v5486_v17 }
 0x930   :  { %v5640_v28 = vmul.f32 0.6931472, %v7824_v57 }
 0x931   :  { %v7826_v4 = vpop.eup %7825  ;;  %5802 = vst [vmem:[#allocation5 + $0x258] sm:$0xff] %v5722_v48 }
 0x932   :  { %v5723_v52 = vsub.f32 %v9656_v43, %v5640_v28  ;;  %v5642_v3 = vmul.f32 0.6931472, %v7826_v4 }
 0x934   :  { %5803 = vst [vmem:[#allocation5 + $0x260] sm:$0xff] %v5723_v52  ;;  %v5724_v27 = vsub.f32 %v9660_v12, %v5642_v3 }
 0x936   :  { %5804 = vst [vmem:[#allocation5 + $0x268] sm:$0xff] %v5724_v27 }
 0x937   :  { %v7828_v23 = vpop.eup %7827 }
 0x938   :  { %v5644_v58 = vmul.f32 0.6931472, %v7828_v23 }
 0x939   :  { %v7830_v53 = vpop.eup %7829 }
 0x93a   :  { %v5725_v50 = vsub.f32 %v9666_v36, %v5644_v58  ;;  %v5646_v26 = vmul.f32 0.6931472, %v7830_v53 }
 0x93c   :  { %5805 = vst [vmem:[#allocation5 + $0x270] sm:$0xff] %v5725_v50  ;;  %v5726_v9 = vsub.f32 %v9670_v16, %v5646_v26 }
 0x93e   :  { %5806 = vst [vmem:[#allocation5 + $0x278] sm:$0xff] %v5726_v9 }
 0x93f   :  { %8066 = shalt.err (!%p8063_p12)
}
 0x940   :  { %s8067_s8 = scalar_lea.hbm %s9735_s6, 10240 }
 0x941   :  { %p8068_p13 = scmp.ne.s32.totalorder %s9735_s6, %s8067_s8  ;;  %p8071_p0 = scmp.lt.u32.totalorder %s8067_s8, %s9735_s6 }
 0x943   :  { %p8073_p1 = pnand %p8071_p0, %p8068_p13 }
 0x945   :  { %8076 = shalt.err (!%p8073_p1)
}
 0x946   :  { %s8086_s13 = smov 128   ;;  %s8087_s14 = smov 8  }
 0x947   :  { %5818 = dma.vmem_to_hbm [thread:$0]  %s5813_s28, 10240, %s9735_s6, [#allocation4], %s8086_s13, %s8086_s13, %s8087_s14  }
 0x948   :  { %8079 = dma.done.wait [#allocation4], 10240  }
 0x949   :  { %8080 = vsyncadd [#allocation4], 4294957056 }
 0x94a   :  { %5822 = vsyncpa [#allocation3], 1 }
 0x94b   :  { %5823 = vsyncpa [#allocation4], 1 }

</bundles_post_ra>
